<compile_context>
chip_gen: v5e
topology: v5e:2x2
jax: 0.10.0
libtpu: 0.0.40
codegen_flags: <defaults>
</compile_context>

<pallas_src>
import jax
import jax.numpy as jnp
from jax.experimental import pallas as pl
from jax.experimental.pallas import tpu as pltpu


OUT_PAD = 128  # lane-dense padding for the (..., 1) output


def _mish(x):
    # mish(x) = x * tanh(softplus(x))
    # tanh(log(1 + e^x)) = ((1 + e^x)^2 - 1) / ((1 + e^x)^2 + 1)
    # -> one exp + a few VPU ops; for x > 20, mish(x) == x in f32.
    t = jnp.exp(jnp.minimum(x, 20.0))
    n = (1.0 + t) * (1.0 + t)
    y = x * (n - 1.0) / (n + 1.0)
    return jnp.where(x > 20.0, x, y)


def _mlp_kernel(x_ref, w1_ref, b1_ref, w2_ref, b2_ref, w3_ref, b3_ref, o_ref):
    x = x_ref[...]

    h1 = _mish(jnp.dot(x, w1_ref[...], preferred_element_type=jnp.float32)
               + b1_ref[...])
    h2 = _mish(jnp.dot(h1, w2_ref[...], preferred_element_type=jnp.float32)
               + b2_ref[...])

    # Third layer has out_dim == 1: skip the MXU (an N=1 matmul wastes the
    # array) and use a VPU multiply + cross-lane reduction instead.
    col = jnp.sum(h2 * w3_ref[...], axis=-1, keepdims=True)      # (tile, 1)

    # Broadcast across the 128-lane padded output -> unmasked lane-dense store.
    o_ref[...] = (jnp.broadcast_to(col, o_ref.shape) + b3_ref[...]
                  ).astype(o_ref.dtype)


def weights_model_forward(x, params, *, batch_tile=128):
    """Fused forward of WeightsModel. x: (B, D_in) f32 -> (B, 1) f32."""
    w1, b1, w2, b2, w3, b3 = params
    B, D_in = x.shape
    H = w1.shape[1]
    D_out = w3.shape[1]
    assert D_out == 1, "WeightsModel emits a single weight per row"

    # Pad ragged batches instead of asserting divisibility.
    B_pad = ((B + batch_tile - 1) // batch_tile) * batch_tile
    if B_pad != B:
        x = jnp.pad(x, ((0, B_pad - B), (0, 0)))
    grid = (B_pad // batch_tile,)

    # Final layer as a row vector + lane-padded bias for the reduction path.
    w3_row = w3.T.reshape(1, H)
    b3_pad = jnp.broadcast_to(b3.reshape(1, 1), (1, OUT_PAD)).astype(jnp.float32)

    # Fully-resident weights: make sure they (plus tiles/intermediates) fit.
    weight_bytes = 4 * (D_in * H + H * H + 4 * H + OUT_PAD)
    tile_bytes = 4 * 2 * batch_tile * (D_in + OUT_PAD)   # double-buffered I/O
    live_bytes = 4 * 2 * batch_tile * H                  # h1 / h2 values
    vmem_need = weight_bytes + tile_bytes + live_bytes
    # TODO(synk): add a K-tiled grid axis over H (accumulator + pl.when) once
    # the weights no longer fit fully resident (e.g. H >= 4096 on v7x).
    assert vmem_need < 48 * 1024 * 1024, "weights too large for resident-VMEM path"
    vmem_limit = None
    if 2 * vmem_need > 32 * 1024 * 1024:
        vmem_limit = min(2 * vmem_need, 56 * 1024 * 1024)

    out = pl.pallas_call(
        _mlp_kernel,
        out_shape=jax.ShapeDtypeStruct((B_pad, OUT_PAD), jnp.float32),
        grid_spec=pltpu.PrefetchScalarGridSpec(
            num_scalar_prefetch=0,
            grid=grid,
            in_specs=[
                pl.BlockSpec((batch_tile, D_in), lambda i: (i, 0)),  # x tile
                pl.BlockSpec((D_in, H), lambda i: (0, 0)),           # w1
                pl.BlockSpec((1, H), lambda i: (0, 0)),              # b1
                pl.BlockSpec((H, H), lambda i: (0, 0)),              # w2
                pl.BlockSpec((1, H), lambda i: (0, 0)),              # b2
                pl.BlockSpec((1, H), lambda i: (0, 0)),              # w3 (row)
                pl.BlockSpec((1, OUT_PAD), lambda i: (0, 0)),        # b3 (padded)
            ],
            out_specs=pl.BlockSpec((batch_tile, OUT_PAD), lambda i: (i, 0)),
        ),
        compiler_params=pltpu.CompilerParams(
            dimension_semantics=("parallel",),
            vmem_limit_bytes=vmem_limit,
        ),
    )(x, w1, b1, w2, b2, w3_row, b3_pad)

    return out[:B, :1]


def init_params(key, input_dim, hidden_dim, output_dim):
    """Deterministic synthetic parameters (shapes mirror the PyTorch module)."""
    ks = jax.random.split(key, 6)
    s1 = 1.0 / jnp.sqrt(input_dim)
    s2 = 1.0 / jnp.sqrt(hidden_dim)
    w1 = jax.random.uniform(ks[0], (input_dim, hidden_dim), jnp.float32, -s1, s1)
    b1 = jax.random.uniform(ks[1], (1, hidden_dim), jnp.float32, -s1, s1)
    w2 = jax.random.uniform(ks[2], (hidden_dim, hidden_dim), jnp.float32, -s2, s2)
    b2 = jax.random.uniform(ks[3], (1, hidden_dim), jnp.float32, -s2, s2)
    w3 = jax.random.uniform(ks[4], (hidden_dim, output_dim), jnp.float32, -s2, s2)
    b3 = jax.random.uniform(ks[5], (1, output_dim), jnp.float32, -s2, s2)
    return (w1, b1, w2, b2, w3, b3)


def reference_forward(x, params):
    """Pure-JAX reference using the canonical mish formulation."""
    w1, b1, w2, b2, w3, b3 = params

    def mish(v):
        return v * jnp.tanh(jnp.logaddexp(v, 0.0))

    h1 = mish(x @ w1 + b1)
    h2 = mish(h1 @ w2 + b2)
    return h2 @ w3 + b3


if __name__ == "__main__":
    key = jax.random.PRNGKey(0)
    k_x, k_p = jax.random.split(key)

    batch = 200          # ragged: exercises zero-padding + a 2-step grid
    input_dim = 32
    hidden_dim = 256
    output_dim = 1

    x = jax.random.normal(k_x, (batch, input_dim), jnp.float32)
    params = init_params(k_p, input_dim, hidden_dim, output_dim)

    out = jax.block_until_ready(weights_model_forward(x, params))
    ref = reference_forward(x, params)

    assert out.shape == (batch, output_dim)
    max_err = float(jnp.max(jnp.abs(out - ref)))
    assert max_err < 1e-3, f"max abs err {max_err}"

    print("KERNEL_OK")
</pallas_src>

<mosaic_0001>
module attributes {stable_mosaic.version = 11 : i64} {
  func.func @_mlp_kernel(%arg0: i32, %arg1: memref<128x32xf32, #tpu.memory_space<vmem>>, %arg2: memref<32x256xf32, #tpu.memory_space<vmem>>, %arg3: memref<1x256xf32, #tpu.memory_space<vmem>>, %arg4: memref<256x256xf32, #tpu.memory_space<vmem>>, %arg5: memref<1x256xf32, #tpu.memory_space<vmem>>, %arg6: memref<1x256xf32, #tpu.memory_space<vmem>>, %arg7: memref<1x128xf32, #tpu.memory_space<vmem>>, %arg8: memref<128x128xf32, #tpu.memory_space<vmem>>) attributes {dimension_semantics = [#tpu.dimension_semantics<parallel>], iteration_bounds = array<i64: 2>, scalar_prefetch = 0 : i64, scratch_operands = 0 : i64, tpu.core_type = #tpu.core_type<tc>, window_params = [{transform_indices = @transform_0, window_bounds = array<i64: 128, 32>}, {pipeline_mode = #tpu.pipeline_mode<synchronous>, transform_indices = @transform_1, window_bounds = array<i64: 32, 256>}, {pipeline_mode = #tpu.pipeline_mode<synchronous>, transform_indices = @transform_2, window_bounds = array<i64: 1, 256>}, {pipeline_mode = #tpu.pipeline_mode<synchronous>, transform_indices = @transform_3, window_bounds = array<i64: 256, 256>}, {pipeline_mode = #tpu.pipeline_mode<synchronous>, transform_indices = @transform_4, window_bounds = array<i64: 1, 256>}, {pipeline_mode = #tpu.pipeline_mode<synchronous>, transform_indices = @transform_5, window_bounds = array<i64: 1, 256>}, {pipeline_mode = #tpu.pipeline_mode<synchronous>, transform_indices = @transform_6, window_bounds = array<i64: 1, 128>}, {transform_indices = @transform_7, window_bounds = array<i64: 128, 128>}]} {
    %c0 = arith.constant 0 : index
    %c0_0 = arith.constant 0 : index
    %0 = vector.load %arg1[%c0, %c0_0] : memref<128x32xf32, #tpu.memory_space<vmem>>, vector<128x32xf32>
    %c0_1 = arith.constant 0 : index
    %c0_2 = arith.constant 0 : index
    %1 = vector.load %arg2[%c0_1, %c0_2] : memref<32x256xf32, #tpu.memory_space<vmem>>, vector<32x256xf32>
    %cst = arith.constant dense<0.000000e+00> : vector<128x256xf32>
    %2 = tpu.matmul %0, %1, %cst {dimension_numbers = #tpu.dot_dimension_numbers<[1], [0], [0], [1], [0, 0, 1, 1], [], []>} : vector<128x32xf32>, vector<32x256xf32>, vector<128x256xf32> -> vector<128x256xf32>
    %c0_3 = arith.constant 0 : index
    %c0_4 = arith.constant 0 : index
    %3 = vector.load %arg3[%c0_3, %c0_4] : memref<1x256xf32, #tpu.memory_space<vmem>>, vector<1x256xf32>
    %4 = vector.broadcast %3 : vector<1x256xf32> to vector<128x256xf32>
    %5 = arith.addf %2, %4 : vector<128x256xf32>
    %cst_5 = arith.constant 2.000000e+01 : f32
    %6 = vector.broadcast %cst_5 : f32 to vector<128x256xf32>
    %7 = arith.minimumf %5, %6 : vector<128x256xf32>
    %8 = math.exp %7 : vector<128x256xf32>
    %cst_6 = arith.constant 1.000000e+00 : f32
    %9 = vector.broadcast %cst_6 : f32 to vector<128x256xf32>
    %10 = arith.addf %9, %8 : vector<128x256xf32>
    %cst_7 = arith.constant 1.000000e+00 : f32
    %11 = vector.broadcast %cst_7 : f32 to vector<128x256xf32>
    %12 = arith.addf %11, %8 : vector<128x256xf32>
    %13 = arith.mulf %10, %12 : vector<128x256xf32>
    %cst_8 = arith.constant 1.000000e+00 : f32
    %14 = vector.broadcast %cst_8 : f32 to vector<128x256xf32>
    %15 = arith.subf %13, %14 : vector<128x256xf32>
    %16 = arith.mulf %5, %15 : vector<128x256xf32>
    %cst_9 = arith.constant 1.000000e+00 : f32
    %17 = vector.broadcast %cst_9 : f32 to vector<128x256xf32>
    %18 = arith.addf %13, %17 : vector<128x256xf32>
    %19 = arith.divf %16, %18 : vector<128x256xf32>
    %cst_10 = arith.constant 2.000000e+01 : f32
    %20 = vector.broadcast %cst_10 : f32 to vector<128x256xf32>
    %21 = arith.cmpf ogt, %5, %20 : vector<128x256xf32>
    %22 = arith.select %21, %5, %19 : vector<128x256xi1>, vector<128x256xf32>
    %c0_11 = arith.constant 0 : index
    %c0_12 = arith.constant 0 : index
    %23 = vector.load %arg4[%c0_11, %c0_12] : memref<256x256xf32, #tpu.memory_space<vmem>>, vector<256x256xf32>
    %cst_13 = arith.constant dense<0.000000e+00> : vector<128x256xf32>
    %24 = tpu.matmul %22, %23, %cst_13 {dimension_numbers = #tpu.dot_dimension_numbers<[1], [0], [0], [1], [0, 0, 1, 1], [], []>} : vector<128x256xf32>, vector<256x256xf32>, vector<128x256xf32> -> vector<128x256xf32>
    %c0_14 = arith.constant 0 : index
    %c0_15 = arith.constant 0 : index
    %25 = vector.load %arg5[%c0_14, %c0_15] : memref<1x256xf32, #tpu.memory_space<vmem>>, vector<1x256xf32>
    %26 = vector.broadcast %25 : vector<1x256xf32> to vector<128x256xf32>
    %27 = arith.addf %24, %26 : vector<128x256xf32>
    %cst_16 = arith.constant 2.000000e+01 : f32
    %28 = vector.broadcast %cst_16 : f32 to vector<128x256xf32>
    %29 = arith.minimumf %27, %28 : vector<128x256xf32>
    %30 = math.exp %29 : vector<128x256xf32>
    %cst_17 = arith.constant 1.000000e+00 : f32
    %31 = vector.broadcast %cst_17 : f32 to vector<128x256xf32>
    %32 = arith.addf %31, %30 : vector<128x256xf32>
    %cst_18 = arith.constant 1.000000e+00 : f32
    %33 = vector.broadcast %cst_18 : f32 to vector<128x256xf32>
    %34 = arith.addf %33, %30 : vector<128x256xf32>
    %35 = arith.mulf %32, %34 : vector<128x256xf32>
    %cst_19 = arith.constant 1.000000e+00 : f32
    %36 = vector.broadcast %cst_19 : f32 to vector<128x256xf32>
    %37 = arith.subf %35, %36 : vector<128x256xf32>
    %38 = arith.mulf %27, %37 : vector<128x256xf32>
    %cst_20 = arith.constant 1.000000e+00 : f32
    %39 = vector.broadcast %cst_20 : f32 to vector<128x256xf32>
    %40 = arith.addf %35, %39 : vector<128x256xf32>
    %41 = arith.divf %38, %40 : vector<128x256xf32>
    %cst_21 = arith.constant 2.000000e+01 : f32
    %42 = vector.broadcast %cst_21 : f32 to vector<128x256xf32>
    %43 = arith.cmpf ogt, %27, %42 : vector<128x256xf32>
    %44 = arith.select %43, %27, %41 : vector<128x256xi1>, vector<128x256xf32>
    %c0_22 = arith.constant 0 : index
    %c0_23 = arith.constant 0 : index
    %45 = vector.load %arg6[%c0_22, %c0_23] : memref<1x256xf32, #tpu.memory_space<vmem>>, vector<1x256xf32>
    %46 = vector.broadcast %45 : vector<1x256xf32> to vector<128x256xf32>
    %47 = arith.mulf %44, %46 : vector<128x256xf32>
    %cst_24 = arith.constant dense<0.000000e+00> : vector<128xf32>
    %48 = vector.multi_reduction <add>, %47, %cst_24 [1] : vector<128x256xf32> to vector<128xf32>
    %49 = vector.shape_cast %48 : vector<128xf32> to vector<128x1xf32>
    %50 = vector.shape_cast %49 : vector<128x1xf32> to vector<128x1xf32>
    %51 = vector.broadcast %50 : vector<128x1xf32> to vector<128x128xf32>
    %c0_25 = arith.constant 0 : index
    %c0_26 = arith.constant 0 : index
    %52 = vector.load %arg7[%c0_25, %c0_26] : memref<1x128xf32, #tpu.memory_space<vmem>>, vector<1x128xf32>
    %53 = vector.broadcast %52 : vector<1x128xf32> to vector<128x128xf32>
    %54 = arith.addf %51, %53 : vector<128x128xf32>
    %c0_27 = arith.constant 0 : index
    %c0_28 = arith.constant 0 : index
    %55 = vector.load %arg8[%c0_27, %c0_28] : memref<128x128xf32, #tpu.memory_space<vmem>>, vector<128x128xf32>
    tpu.vector_store %arg8[%c0_27, %c0_28], %54 {strides = array<i32>} : memref<128x128xf32, #tpu.memory_space<vmem>>, vector<128x128xf32>,
    return
  }
  func.func @transform_0(%arg0: i32) -> (i32, i32) {
    %c0_i32 = arith.constant 0 : i32
    %c0_i32_0 = arith.constant 0 : i32
    return %arg0, %c0_i32 : i32, i32
  }
  func.func @transform_1(%arg0: i32) -> (i32, i32) {
    %c0_i32 = arith.constant 0 : i32
    %c0_i32_0 = arith.constant 0 : i32
    %c0_i32_1 = arith.constant 0 : i32
    return %c0_i32, %c0_i32_0 : i32, i32
  }
  func.func @transform_2(%arg0: i32) -> (i32, i32) {
    %c0_i32 = arith.constant 0 : i32
    %c0_i32_0 = arith.constant 0 : i32
    %c0_i32_1 = arith.constant 0 : i32
    return %c0_i32, %c0_i32_0 : i32, i32
  }
  func.func @transform_3(%arg0: i32) -> (i32, i32) {
    %c0_i32 = arith.constant 0 : i32
    %c0_i32_0 = arith.constant 0 : i32
    %c0_i32_1 = arith.constant 0 : i32
    return %c0_i32, %c0_i32_0 : i32, i32
  }
  func.func @transform_4(%arg0: i32) -> (i32, i32) {
    %c0_i32 = arith.constant 0 : i32
    %c0_i32_0 = arith.constant 0 : i32
    %c0_i32_1 = arith.constant 0 : i32
    return %c0_i32, %c0_i32_0 : i32, i32
  }
  func.func @transform_5(%arg0: i32) -> (i32, i32) {
    %c0_i32 = arith.constant 0 : i32
    %c0_i32_0 = arith.constant 0 : i32
    %c0_i32_1 = arith.constant 0 : i32
    return %c0_i32, %c0_i32_0 : i32, i32
  }
  func.func @transform_6(%arg0: i32) -> (i32, i32) {
    %c0_i32 = arith.constant 0 : i32
    %c0_i32_0 = arith.constant 0 : i32
    %c0_i32_1 = arith.constant 0 : i32
    return %c0_i32, %c0_i32_0 : i32, i32
  }
  func.func @transform_7(%arg0: i32) -> (i32, i32) {
    %c0_i32 = arith.constant 0 : i32
    %c0_i32_0 = arith.constant 0 : i32
    return %arg0, %c0_i32 : i32, i32
  }
}

</mosaic_0001>

<bundles_post_ra>
// kernel: tpu_custom_call.1
= control target key start
LH: loop header
LB: loop body
LE: loop exit
PB: predicated region body
PF: predicated region fallthrough
CT: control target
= control target key end

     0   :  { %12 = vsyncpa [#allocation3], 0  ;;  %s5363_s0 = inlined_call_operand.vmem [shape: f32[256,32], index: 0, kind: input, shape index: {}]   ;;  %s5364_s1 = inlined_call_operand.vmem [shape: f32[32,256], index: 1, kind: input, shape index: {}]   ;;  %s5365_s2 = inlined_call_operand.vmem [shape: f32[1,256], index: 2, kind: input, shape index: {}]   ;;  %s5366_s3 = inlined_call_operand.hbm [shape: f32[256,256], index: 3, kind: input, shape index: {}]   ;;  %s5367_s4 = inlined_call_operand.vmem [shape: f32[1,256], index: 4, kind: input, shape index: {}]   ;;  %s5368_s5 = inlined_call_operand.vmem [shape: f32[1,256], index: 5, kind: input, shape index: {}]   ;;  %s5369_s6 = inlined_call_operand.vmem [shape: f32[1,128], index: 6, kind: input, shape index: {}]   ;;  %s5370_s7 = inlined_call_operand.hbm [shape: f32[256,128], index: 7, kind: output, shape index: {}]  }
   0x1   :  { %13 = vsyncpa [#allocation4], 0 }
   0x2   :  { %15 = vsyncpa [#allocation4 + $0x1], 0  ;;  %s3237_s24 = smov 0   ;;  %s3239_s25 = smov 0  }
   0x3   :  { %s3241_s26 = smov 0   ;;  %s3243_s27 = smov 0  }
   0x4 LB: > { %s3258_s28 = sadd.s32 4294967295, %s3190_s27   ;;  %s2648_s29 = sadd.s32 4294967294, %s3190_s27   ;;  %s3190_s27 = sphi %s3243_s27, %s5482_s27   ;;  %s3186_s26 = sphi %s3241_s26, %s5481_s26   ;;  %s3182_s25 = sphi %s3239_s25, %s5480_s25   ;;  %s3178_s24 = sphi %s3237_s24, %s5479_s24  }
   0x5   : > { %s3262_s30 = sadd.s32 1, %s3190_s27   ;;  %s180_s8 = sadd.s32 1, %s3186_s26 }
   0x6   : > { %s177_s9 = ssub.s32 %s3190_s27, %s3262_s30  ;;  %p190_p0 = scmp.ne.s32.totalorder %s3186_s26, %s3182_s25 }
   0x7   : > { %p178_p1 = scmp.eq.s32.totalorder %s177_s9, 0  ;;  %p191_p2 = scmp.eq.s32.totalorder %s3258_s28, 1 }
   0x8   : > { %p196_p3 = scmp.ne.s32.totalorder %s3182_s25, %s3178_s24  ;;  %p197_p4 = scmp.eq.s32.totalorder %s2648_s29, 1 }
   0x9   : > { %s3273_s10 = scalar_select %p178_p1, %s3186_s26, %s180_s8  }
   0xa   : > { %p3275_p5 = por %p191_p2, %p190_p0  ;;  %p3279_p6 = por %p197_p4, %p196_p3 }
   0xb   : > { %p2649_p7 = scmp.ge.s32.totalorder %s3190_s27, 1  ;;  %p204_p8 = scmp.lt.s32.totalorder %s3190_s27, 3 }
   0xc   : > { %p2797_p9 = scmp.eq.s32.totalorder %s3258_s28, 0  ;;  %s221_s15 = sshll.u32 %s5366_s3, 4  ;;  %s222_s15 = int_to_ptr.hbm [resolvable:$true] %s221_s15 }
   0xd   : > { %p205_p10 = pnand %p2649_p7, %p204_p8  ;;  %s3192_s16 = smov [#allocation2]  }
   0xe   : > { %s223_s17 = sshll.u32 %s3192_s16, 4  ;;  %s3193_s18 = smov 256   ;;  %s224_s17 = int_to_ptr.vmem [resolvable:$true] %s223_s17 }
   0xf   : > { %p2789_p11 = pneg %p205_p10  ;;  %s3194_s19 = smov 16  }
  0x10   : > { %257 = sbr.rel (%p205_p10) target bundleno = 717 (0x2cd), region = 48 }
  0x11   : > { %p2790_p12 = pnand %p2797_p9, %p2789_p11 }
  0x13   : > { %2792 = dma.hbm_to_vmem [thread:$0]  (!%p2790_p12), %s222_s15, 8192, %s224_s17, [#allocation3], %s3193_s18, %s3193_s18, %s3194_s19  }
  0x15   : > { %3169 = dma.done.wait (%p2797_p9), [#allocation3], 8192  }
  0x16   : > { %3171 = vsyncadd (%p2797_p9), [#allocation3], 4294959104  ;;  %s2655_s20 = sshll.u32 %s3258_s28, 4  ;;  %v319_v0 = vld [vmem:[%s5364_s1 + $0x30] sm:$0xff]  ;;  %v320_v1 = vld [vmem:[%s5364_s1 + $0x38] sm:$0xff]  ;;  %vm327_vm0 = vcmask 261120  }
  0x17   : > { %p291_p13 = scmp.lt.s32.totalorder %s2655_s20, 31  ;;  %v317_v2 = vld [vmem:[%s5364_s1 + $0x20] sm:$0xff]  ;;  %388 = vmatpush.msra.mxu0 %v319_v0  ;;  %453 = vmatpush.msra.mxu1 %v320_v1  ;;  %v318_v3 = vld [vmem:[%s5364_s1 + $0x28] sm:$0xff]  ;;  %v315_v4 = vld [vmem:[%s5364_s1 + $0x10] sm:$0xff]  ;;  %s287_s19 = sand.u32 1, %s3182_s25  }
  0x18   : > { %v316_v5 = vld [vmem:[%s5364_s1 + $0x18] sm:$0xff]  ;;  %2759 = vmatpush.msra.mxu2 %v319_v0  ;;  %2763 = vmatpush.msra.mxu3 %v320_v1  ;;  %v313_v6 = vld [vmem:[%s5364_s1] sm:$0xff]  ;;  %v314_v7 = vld [vmem:[%s5364_s1 + $0x8] sm:$0xff]  ;;  %s2758_s8 = sshll.u32 %s3258_s28, 7  ;;  %s2559_s16 = scalar_lea.sflag [#allocation4], %s287_s19 }
  0x19   : > { %s5484_s20 = smov (!%p291_p13, %s2655_s20), 31  ;;  %389 = vmatpush.msra.mxu0 %v317_v2  ;;  %454 = vmatpush.msra.mxu1 %v318_v3  ;;  %v1336_v19 = vld [vmem:[#allocation2 + $0xf0] sm:$0xff]  ;;  %v1334_v21 = vld [vmem:[#allocation2 + $0xe0] sm:$0xff]  ;;  %v3359_v23 = vld [vmem:[#allocation2 + $0xf8] sm:$0xff]  ;;  %s3144_s22 = scalar_lea.hbm %s5370_s7, 256 }
  0x1a   : > { %s2656_s21 = sshll.u32 %s5484_s20, 3  ;;  %2760 = vmatpush.msra.mxu2 %v317_v2  ;;  %2764 = vmatpush.msra.mxu3 %v318_v3  ;;  %v1368_v20 = vld [vmem:[#allocation2 + $0x1f0] sm:$0xff]  ;;  %v1366_v22 = vld [vmem:[#allocation2 + $0x1e0] sm:$0xff]  ;;  %v1369_v25 = vld [vmem:[#allocation2 + $0x1f8] sm:$0xff]  ;;  %s2654_s20 = sshll.u32 %s287_s19, 7 }
  0x1b   : > { %s3317_s23 = scalar_lea.vmem %s5363_s0, %s2656_s21  ;;  %390 = vmatpush.msra.mxu0 %v315_v4  ;;  %455 = vmatpush.msra.mxu1 %v316_v5  ;;  %v1332_v24 = vld [vmem:[#allocation2 + $0xd0] sm:$0xff]  ;;  %v3361_v26 = vld [vmem:[#allocation2 + $0xe8] sm:$0xff]  ;;  %v1330_v28 = vld [vmem:[#allocation2 + $0xc0] sm:$0xff]  ;;  %s5257_s29 = scalar_lea.vmem [#allocation5], %s2654_s20 }
  0x1c   : > { %v297_v8 = vld [vmem:[%s3317_s23] sm:$0xff]  ;;  %2761 = vmatpush.msra.mxu2 %v315_v4  ;;  %2765 = vmatpush.msra.mxu3 %v316_v5  ;;  %v306_v9 = vld [vmem:[%s3317_s23 + $0x48] sm:$0xff]  ;;  %v307_v12 = vld [vmem:[%s3317_s23 + $0x50] sm:$0xff]  ;;  %s2570_s21 = scalar_lea.hbm %s5370_s7, %s2758_s8  ;;  %s2571_s14 = sshll.u32 %s5257_s29, 4  ;;  %s2572_s14 = int_to_ptr.vmem [resolvable:$true] %s2571_s14 }
  0x1d   : > { %391 = vmatpush.msra.mxu0 %v313_v6  ;;  %456 = vmatpush.msra.mxu1 %v314_v7  ;;  %v3328_v10 = vld [vmem:[%s3317_s23 + $0x40] sm:$0xff]  ;;  %v298_v11 = vld [vmem:[%s3317_s23 + $0x8] sm:$0xff]  ;;  %v299_v13 = vld [vmem:[%s3317_s23 + $0x10] sm:$0xff]  ;;  %s2573_s15 = sshll.u32 %s2570_s21, 4  ;;  %s2574_s15 = int_to_ptr.hbm [resolvable:$true] %s2573_s15 }
  0x1e   : > { %2657 = vmatmul.msk.f32.vlgmr.msra.gmra.mxu0 %vm327_vm0, %v297_v8  ;;  %2673 = vmatmul.msk.f32.vlgmr.msra.gmra.mxu1 %vm327_vm0, %v297_v8  ;;  %v308_v14 = vld [vmem:[%s3317_s23 + $0x58] sm:$0xff]  ;;  %v309_v16 = vld [vmem:[%s3317_s23 + $0x60] sm:$0xff]  ;;  %v310_v18 = vld [vmem:[%s3317_s23 + $0x68] sm:$0xff]  ;;  %s3138_s17 = sshra.s32 %s2574_s15, 4  ;;  %s3139_s17 = int_to_ptr.hbm [resolvable:$true] %s3138_s17 }
  0x1f   : > { %2762 = vmatpush.msra.mxu2 %v313_v6  ;;  %2766 = vmatpush.msra.mxu3 %v314_v7  ;;  %v300_v15 = vld [vmem:[%s3317_s23 + $0x18] sm:$0xff]  ;;  %v301_v17 = vld [vmem:[%s3317_s23 + $0x20] sm:$0xff]  ;;  %v1364_v27 = vld [vmem:[#allocation2 + $0x1d0] sm:$0xff]  ;;  %s3140_s18 = scalar_lea.hbm %s3139_s17, 128  ;;  %p3145_p3 = scmp.lt.s32.totalorder %s3139_s17, %s5370_s7 }
  0x20   : > { %2666 = vmatmul.msk.f32.vlgmr.msra.gmra.mxu2 %vm327_vm0, %v306_v9  ;;  %2681 = vmatmul.msk.f32.vlgmr.msra.gmra.mxu3 %vm327_vm0, %v3328_v10  ;;  %v1367_v29 = vld [vmem:[#allocation2 + $0x1e8] sm:$0xff]  ;;  %v1328_v31 = vld [vmem:[#allocation2 + $0xb0] sm:$0xff]  ;;  %v1362_v32 = vld [vmem:[#allocation2 + $0x1c0] sm:$0xff]  ;;  %p3141_p0 = scmp.ne.s32.totalorder %s3139_s17, %s3140_s18  ;;  %p3146_p4 = scmp.lt.s32.totalorder %s3144_s22, %s3140_s18 }
  0x21   : > { %1376 = vmatpush.msrb.mxu2 %v1336_v19  ;;  %1441 = vmatpush.msrb.mxu3 %v1368_v20  ;;  %v302_v30 = vld [vmem:[%s3317_s23 + $0x28] sm:$0xff]  ;;  %v311_v33 = vld [vmem:[%s3317_s23 + $0x70] sm:$0xff]  ;;  %v3369_v34 = vld [vmem:[#allocation2 + $0xd8] sm:$0xff] }
  0x22   : > { %1506 = vmatpush.msrb.mxu0 %v3359_v23  ;;  %1571 = vmatpush.msrb.mxu1 %v1369_v25  ;;  %v303_v35 = vld [vmem:[%s3317_s23 + $0x30] sm:$0xff]  ;;  %v312_v36 = vld [vmem:[%s3317_s23 + $0x78] sm:$0xff]  ;;  %v3386_v39 = vld [vmem:[#allocation2 + $0xc8] sm:$0xff]  ;;  %p3142_p1 = pnand %p3141_p0, %p3275_p5  ;;  %p3147_p7 = por %p3146_p4, %p3145_p3 }
  0x23   : > { %1377 = vmatpush.msrb.mxu2 %v1334_v21  ;;  %1442 = vmatpush.msrb.mxu3 %v1366_v22  ;;  %v304_v37 = vld [vmem:[%s3317_s23 + $0x38] sm:$0xff]  ;;  %v1363_v40 = vld [vmem:[#allocation2 + $0x1c8] sm:$0xff]  ;;  %v1360_v41 = vld [vmem:[#allocation2 + $0x1b0] sm:$0xff] }
  0x24   : > { %1507 = vmatpush.msrb.mxu0 %v3361_v26  ;;  %1572 = vmatpush.msrb.mxu1 %v1367_v29  ;;  %v1365_v38 = vld [vmem:[#allocation2 + $0x1d8] sm:$0xff]  ;;  %v1326_v44 = vld [vmem:[#allocation2 + $0xa0] sm:$0xff]  ;;  %v1359_v46 = vld [vmem:[#allocation2 + $0x1a8] sm:$0xff]  ;;  %p3143_p2 = pneg %p3142_p1 }
  0x25   : > { %1378 = vmatpush.msrb.mxu2 %v1332_v24  ;;  %1443 = vmatpush.msrb.mxu3 %v1364_v27  ;;  %v3389_v42 = vld [vmem:[#allocation2 + $0xb8] sm:$0xff]  ;;  %v1358_v45 = vld [vmem:[#allocation2 + $0x1a0] sm:$0xff]  ;;  %v3392_v47 = vld [vmem:[#allocation2 + $0xa8] sm:$0xff] }
  0x26   : > { %2658 = vmatmul.msk.f32.gmra.mxu0 %vm327_vm0, %v298_v11  ;;  %2674 = vmatmul.msk.f32.gmra.mxu1 %vm327_vm0, %v298_v11  ;;  %v1361_v43 = vld [vmem:[#allocation2 + $0x1b8] sm:$0xff]  ;;  %v1324_v48 = vld [vmem:[#allocation2 + $0x90] sm:$0xff]  ;;  %v1322_v52 = vld [vmem:[#allocation2 + $0x80] sm:$0xff]  ;;  %p3148_p8 = pnand %p3147_p7, %p3143_p2 }
  0x27   : > { %1379 = vmatpush.msrb.mxu2 %v1330_v28  ;;  %1444 = vmatpush.msrb.mxu3 %v1362_v32  ;;  %v1356_v49 = vld [vmem:[#allocation2 + $0x190] sm:$0xff]  ;;  %v1357_v50 = vld [vmem:[#allocation2 + $0x198] sm:$0xff]  ;;  %v1354_v54 = vld [vmem:[#allocation2 + $0x180] sm:$0xff] }
  0x28   : > { %2667 = vmatmul.msk.f32.gmra.mxu2 %vm327_vm0, %v307_v12  ;;  %2682 = vmatmul.msk.f32.gmra.mxu3 %vm327_vm0, %v306_v9  ;;  %v3395_v51 = vld [vmem:[#allocation2 + $0x98] sm:$0xff]  ;;  %v1320_v53 = vld [vmem:[#allocation2 + $0x70] sm:$0xff]  ;;  %v1355_v55 = vld [vmem:[#allocation2 + $0x188] sm:$0xff] }
  0x29   : > { %1380 = vmatpush.msrb.mxu2 %v1328_v31  ;;  %1508 = vmatpush.msrb.mxu0 %v3369_v34  ;;  %v3398_v56 = vld [vmem:[#allocation2 + $0x88] sm:$0xff]  ;;  %v1352_v57 = vld [vmem:[#allocation2 + $0x170] sm:$0xff]  ;;  %v1353_v58 = vld [vmem:[#allocation2 + $0x178] sm:$0xff] }
  0x2a   : > { %1573 = vmatpush.msrb.mxu1 %v1365_v38  ;;  %1445 = vmatpush.msrb.mxu3 %v1360_v41  ;;  %v3401_v59 = vld [vmem:[#allocation2 + $0x78] sm:$0xff]  ;;  %v321_v60 = vld [vmem:[%s5365_s2] sm:$0x3]  ;;  %v3407_v63 = vld [vmem:[#allocation2 + $0x68] sm:$0xff] }
  0x2b   : > { %1509 = vmatpush.msrb.mxu0 %v3386_v39  ;;  %1381 = vmatpush.msrb.mxu2 %v1326_v44  ;;  %v1318_v61 = vld [vmem:[#allocation2 + $0x60] sm:$0xff]  ;;  %v1351_v0 = vld [vmem:[#allocation2 + $0x168] sm:$0xff]  ;;  %v3409_v1 = vperm.slane %v321_v60, 0  ;;  %v3411_v2 = vperm.slane %v321_v60, 1  ;;  %v1316_v3 = vld [vmem:[#allocation2 + $0x50] sm:$0xff] }
  0x2c   : > { %1574 = vmatpush.msrb.mxu1 %v1363_v40  ;;  %1446 = vmatpush.msrb.mxu3 %v1358_v45  ;;  %v1350_v62 = vld [vmem:[#allocation2 + $0x160] sm:$0xff]  ;;  %v1348_v4 = vld [vmem:[#allocation2 + $0x150] sm:$0xff]  ;;  %v3414_v5 = vld [vmem:[#allocation2 + $0x58] sm:$0xff] }
  0x2d   : > { %1510 = vmatpush.msrb.mxu0 %v3389_v42  ;;  %1382 = vmatpush.msrb.mxu2 %v1324_v48  ;;  %v1349_v6 = vld [vmem:[#allocation2 + $0x158] sm:$0xff]  ;;  %v1314_v7 = vld [vmem:[#allocation2 + $0x40] sm:$0xff]  ;;  %v3417_v9 = vld [vmem:[#allocation2 + $0x48] sm:$0xff] }
  0x2e   : > { %2659 = vmatmul.msk.f32.gmra.mxu0 %vm327_vm0, %v299_v13  ;;  %2675 = vmatmul.msk.f32.gmra.mxu1 %vm327_vm0, %v299_v13  ;;  %v1346_v8 = vld [vmem:[#allocation2 + $0x140] sm:$0xff]  ;;  %v3431_v24 = vld [vmem:[#allocation2 + $0x28] sm:$0xff]  ;;  %v1308_v29 = vld [vmem:[#allocation2 + $0x10] sm:$0xff] }
  0x2f   : > { %1575 = vmatpush.msrb.mxu1 %v1361_v43  ;;  %1511 = vmatpush.msrb.mxu0 %v3392_v47  ;;  %v1310_v21 = vld [vmem:[#allocation2 + $0x20] sm:$0xff]  ;;  %v1343_v25 = vld [vmem:[#allocation2 + $0x128] sm:$0xff]  ;;  %v3434_v31 = vld [vmem:[#allocation2 + $0x18] sm:$0xff] }
  0x30   : > { %2668 = vmatmul.msk.f32.gmra.mxu2 %vm327_vm0, %v308_v14  ;;  %2683 = vmatmul.msk.f32.gmra.mxu3 %vm327_vm0, %v307_v12  ;;  %v1347_v12 = vld [vmem:[#allocation2 + $0x148] sm:$0xff]  ;;  %v1342_v22 = vld [vmem:[#allocation2 + $0x120] sm:$0xff]  ;;  %v1341_v32 = vld [vmem:[#allocation2 + $0x118] sm:$0xff] }
  0x31   : > { %1576 = vmatpush.msrb.mxu1 %v1359_v46  ;;  %1447 = vmatpush.msrb.mxu3 %v1356_v49  ;;  %v1339_v40 = vld [vmem:[#allocation2 + $0x108] sm:$0xff] }
  0x32   : > { %1512 = vmatpush.msrb.mxu0 %v3395_v51  ;;  %1383 = vmatpush.msrb.mxu2 %v1322_v52 }
  0x33   : > { %1577 = vmatpush.msrb.mxu1 %v1357_v50  ;;  %1448 = vmatpush.msrb.mxu3 %v1354_v54 }
  0x34   : > { %1513 = vmatpush.msrb.mxu0 %v3398_v56  ;;  %1384 = vmatpush.msrb.mxu2 %v1320_v53 }
  0x35   : > { %1578 = vmatpush.msrb.mxu1 %v1355_v55  ;;  %1449 = vmatpush.msrb.mxu3 %v1352_v57 }
  0x36   : > { %2660 = vmatmul.msk.f32.gmra.mxu0 %vm327_vm0, %v300_v15  ;;  %2676 = vmatmul.msk.f32.gmra.mxu1 %vm327_vm0, %v300_v15  ;;  %v1312_v15 = vld [vmem:[#allocation2 + $0x30] sm:$0xff] }
  0x37   : > { %1579 = vmatpush.msrb.mxu1 %v1353_v58  ;;  %1514 = vmatpush.msrb.mxu0 %v3401_v59 }
  0x38   : > { %2669 = vmatmul.msk.f32.gmra.mxu2 %vm327_vm0, %v309_v16  ;;  %2684 = vmatmul.msk.f32.gmra.mxu3 %vm327_vm0, %v308_v14 }
  0x39   : > { %1385 = vmatpush.msrb.mxu2 %v1318_v61  ;;  %1450 = vmatpush.msrb.mxu3 %v1350_v62 }
  0x3a   : > { %1515 = vmatpush.msrb.mxu0 %v3407_v63  ;;  %1580 = vmatpush.msrb.mxu1 %v1351_v0 }
  0x3b   : > { %1386 = vmatpush.msrb.mxu2 %v1316_v3  ;;  %1451 = vmatpush.msrb.mxu3 %v1348_v4 }
  0x3c   : > { %1516 = vmatpush.msrb.mxu0 %v3414_v5  ;;  %1581 = vmatpush.msrb.mxu1 %v1349_v6 }
  0x3d   : > { %1387 = vmatpush.msrb.mxu2 %v1314_v7  ;;  %1452 = vmatpush.msrb.mxu3 %v1346_v8 }
  0x3e   : > { %2661 = vmatmul.msk.f32.gmra.mxu0 %vm327_vm0, %v301_v17  ;;  %2677 = vmatmul.msk.f32.gmra.mxu1 %vm327_vm0, %v301_v17  ;;  %v3426_v17 = vld [vmem:[#allocation2 + $0x38] sm:$0xff] }
  0x3f   : > { %1517 = vmatpush.msrb.mxu0 %v3417_v9  ;;  %1582 = vmatpush.msrb.mxu1 %v1347_v12 }
  0x40   : > { %2670 = vmatmul.msk.f32.gmra.mxu2 %vm327_vm0, %v310_v18  ;;  %2685 = vmatmul.msk.f32.gmra.mxu3 %vm327_vm0, %v309_v16  ;;  %v1344_v16 = vld [vmem:[#allocation2 + $0x130] sm:$0xff] }
  0x41   : > { %1388 = vmatpush.msrb.mxu2 %v1312_v15  ;;  %1453 = vmatpush.msrb.mxu3 %v1344_v16 }
  0x42   : > { %1518 = vmatpush.msrb.mxu0 %v3426_v17 }
  0x43   : > { %1389 = vmatpush.msrb.mxu2 %v1310_v21  ;;  %1454 = vmatpush.msrb.mxu3 %v1342_v22 }
  0x44   : > { %1519 = vmatpush.msrb.mxu0 %v3431_v24 }
  0x45   : > { %1390 = vmatpush.msrb.mxu2 %v1308_v29 }
  0x46   : > { %2662 = vmatmul.msk.f32.gmra.mxu0 %vm327_vm0, %v302_v30  ;;  %2678 = vmatmul.msk.f32.gmra.mxu1 %vm327_vm0, %v302_v30  ;;  %v1340_v30 = vld [vmem:[#allocation2 + $0x110] sm:$0xff] }
  0x47   : > { %1455 = vmatpush.msrb.mxu3 %v1340_v30  ;;  %1520 = vmatpush.msrb.mxu0 %v3434_v31 }
  0x48   : > { %2671 = vmatmul.msk.f32.gmra.mxu2 %vm327_vm0, %v311_v33  ;;  %2686 = vmatmul.msk.f32.gmra.mxu3 %vm327_vm0, %v310_v18  ;;  %v1345_v18 = vld [vmem:[#allocation2 + $0x138] sm:$0xff] }
  0x49   : > { %1583 = vmatpush.msrb.mxu1 %v1345_v18 }
  0x4b   : > { %1584 = vmatpush.msrb.mxu1 %v1343_v25 }
  0x4d   : > { %1585 = vmatpush.msrb.mxu1 %v1341_v32 }
  0x4e   : > { %2663 = vmatmul.msk.f32.gmra.mxu0 %vm327_vm0, %v303_v35  ;;  %2679 = vmatmul.msk.f32.gmra.mxu1 %vm327_vm0, %v303_v35  ;;  %v1338_v35 = vld [vmem:[#allocation2 + $0x100] sm:$0xff] }
  0x4f   : > { %1456 = vmatpush.msrb.mxu3 %v1338_v35  ;;  %1586 = vmatpush.msrb.mxu1 %v1339_v40 }
  0x50   : > { %2672 = vmatmul.msk.f32.gmra.mxu2 %vm327_vm0, %v312_v36  ;;  %2687 = vmatmul.msk.f32.gmra.mxu3 %vm327_vm0, %v311_v33  ;;  %v1306_v33 = vld [vmem:[#allocation2] sm:$0xff] }
  0x51   : > { %1391 = vmatpush.msrb.mxu2 %v1306_v33 }
  0x53   : > { %2767 = vmatpush.msra.mxu2 %v3359_v23 }
  0x55   : > { %2768 = vmatpush.msra.mxu2 %v3361_v26 }
  0x56   : > { %2664 = vmatmul.msk.f32.gmra.mxu0 %vm327_vm0, %v304_v37  ;;  %2680 = vmatmul.msk.f32.gmra.mxu1 %vm327_vm0, %v304_v37 }
  0x57   : > { %2769 = vmatpush.msra.mxu2 %v3369_v34 }
  0x58   : > { %2688 = vmatmul.msk.f32.gmra.mxu3 %vm327_vm0, %v312_v36  ;;  %v3437_v36 = vld [vmem:[#allocation2 + $0x8] sm:$0xff] }
  0x59   : > { %1521 = vmatpush.msrb.mxu0 %v3437_v36  ;;  %2770 = vmatpush.msra.mxu2 %v3386_v39 }
  0x5b   : > { %2771 = vmatpush.msra.mxu2 %v3389_v42 }
  0x5d   : > { %2772 = vmatpush.msra.mxu2 %v3392_v47 }
  0x5e   : > { %2665 = vmatmul.msk.f32.gmra.mxu0 %vm327_vm0, %v3328_v10 }
  0x5f   : > { %2773 = vmatpush.msra.mxu2 %v3395_v51 }
  0x61   : > { %2774 = vmatpush.msra.mxu2 %v3398_v56 }
  0x63   : > { %2775 = vmatpush.msra.mxu2 %v3401_v59 }
  0x65   : > { %2776 = vmatpush.msra.mxu2 %v3407_v63 }
  0x67   : > { %2777 = vmatpush.msra.mxu2 %v3414_v5 }
  0x69   : > { %2778 = vmatpush.msra.mxu2 %v3417_v9 }
  0x6b   : > { %2779 = vmatpush.msra.mxu2 %v3426_v17 }
  0x6d   : > { %2780 = vmatpush.msra.mxu2 %v3431_v24 }
  0x6f   : > { %2781 = vmatpush.msra.mxu2 %v3434_v31 }
  0x71   : > { %2782 = vmatpush.msra.mxu2 %v3437_v36 }
  0x9b   : > { %v393_v10 = vpop.f32.mrf.mxu0  ;;  %v458_v11 = vpop.f32.mrf.mxu1 }
  0x9c   : > { %v3420_v13 = vadd.f32 %v393_v10, %v3409_v1  ;;  %v3423_v14 = vadd.f32 %v458_v11, %v3411_v2 }
  0x9e   : > { %v506_v19 = vmin.f32 %v3420_v13, 20.0  ;;  %v507_v20 = vmin.f32 %v3423_v14, 20.0  ;;  %vm1242_vm9 = vcmp.gt.f32.partialorder %v3420_v13, 20.0  ;;  %vm1243_vm10 = vcmp.gt.f32.partialorder %v3423_v14, 20.0 }
  0xa0   : > { %v538_v27 = vmul.f32 1.442695, %v506_v19  ;;  %v540_v28 = vmul.f32 1.442695, %v507_v20 }
  0xa2   : > { %2838 = vpow2.f32 %v538_v27 }
  0xa3   : > { %2840 = vpow2.f32 %v540_v28  ;;  %v396_v37 = vpop.f32.mrf.mxu0  ;;  %v461_v38 = vpop.f32.mrf.mxu1 }
  0xa4   : > { %v3440_v41 = vadd.f32 %v396_v37, %v3409_v1  ;;  %v420_v43 = vpop.f32.mrf.mxu2  ;;  %v482_v44 = vpop.f32.mrf.mxu3  ;;  %v3446_v46 = vadd.f32 %v461_v38, %v3411_v2 }
  0xa5   : > { %v3449_v48 = vadd.f32 %v420_v43, %v3409_v1  ;;  %v3453_v52 = vadd.f32 %v482_v44, %v3411_v2 }
  0xa6   : > { %v508_v45 = vmin.f32 %v3440_v41, 20.0  ;;  %v509_v55 = vmin.f32 %v3446_v46, 20.0  ;;  %vm1244_vm12 = vcmp.gt.f32.partialorder %v3440_v41, 20.0 }
  0xa7   : > { %v524_v61 = vmin.f32 %v3449_v48, 20.0  ;;  %v523_v62 = vmin.f32 %v3453_v52, 20.0 }
  0xa8   : > { %v2839_v49 = vpop.eup %2838  ;;  %v542_v50 = vmul.f32 1.442695, %v508_v45  ;;  %v544_v34 = vmul.f32 1.442695, %v509_v55 }
  0xa9   : > { %v2841_v53 = vpop.eup %2840  ;;  %v602_v54 = vadd.f32 1.0, %v2839_v49  ;;  %v574_v7 = vmul.f32 1.442695, %v524_v61  ;;  %v572_v8 = vmul.f32 1.442695, %v523_v62 }
  0xaa   : > { %v603_v23 = vadd.f32 1.0, %v2841_v53  ;;  %2842 = vpow2.f32 %v542_v50 }
  0xab   : > { %v634_v57 = vmul.f32 %v602_v54, %v602_v54  ;;  %v399_v58 = vpop.f32.mrf.mxu0  ;;  %v464_v60 = vpop.f32.mrf.mxu1 }
  0xac   : > { %v635_v26 = vmul.f32 %v603_v23, %v603_v23  ;;  %v3466_v4 = vadd.f32 %v399_v58, %v3409_v1  ;;  %v3469_v6 = vadd.f32 %v464_v60, %v3411_v2  ;;  %v423_v11 = vpop.f32.mrf.mxu2  ;;  %v485_v38 = vpop.f32.mrf.mxu3 }
  0xad   : > { %v3460_v0 = vadd.f32 1.0, %v634_v57  ;;  %v2689_v42 = vadd.f32 -1.0, %v634_v57  ;;  %v3480_v20 = vadd.f32 %v423_v11, %v3409_v1  ;;  %v3517_v57 = vadd.f32 %v485_v38, %v3411_v2 }
  0xae   : > { %v3463_v3 = vadd.f32 1.0, %v635_v26  ;;  %v510_v12 = vmin.f32 %v3466_v4, 20.0  ;;  %v511_v15 = vmin.f32 %v3469_v6, 20.0  ;;  %v2690_v47 = vadd.f32 -1.0, %v635_v26 }
  0xaf   : > { %2844 = vrcp.f32 %v3460_v0  ;;  %v771_v19 = vand.u32 2147483647, %v3460_v0  ;;  %v698_v22 = vmul.f32 %v2689_v42, %v3420_v13  ;;  %vm767_vm1 = vweird.f32 %v3460_v0 }
  0xb0   : > { %v2843_v39 = vpop.eup %2842  ;;  %2846 = vrcp.f32 %v3463_v3  ;;  %v546_v28 = vmul.f32 1.442695, %v510_v12  ;;  %v548_v29 = vmul.f32 1.442695, %v511_v15  ;;  %v773_v33 = vand.u32 2147483648, %v3460_v0 }
  0xb1   : > { %v604_v10 = vadd.f32 1.0, %v2843_v39  ;;  %2848 = vpow2.f32 %v544_v34  ;;  %vm3494_vm2 = vcmp.eq.f32.partialorder %v771_v19, 8.507059e+37  ;;  %v699_v35 = vmul.f32 %v2690_v47, %v3423_v14 }
  0xb2   : > { %2850 = vpow2.f32 %v574_v7  ;;  %vm782_vm3 = vweird.f32 %v3463_v3  ;;  %v786_v43 = vand.u32 2147483647, %v3463_v3  ;;  %v526_v44 = vmin.f32 %v3480_v20, 20.0 }
  0xb3   : > { %v402_v16 = vpop.f32.mrf.mxu0  ;;  %v467_v18 = vpop.f32.mrf.mxu1  ;;  %2852 = vpow2.f32 %v572_v8  ;;  %v3487_v25 = vmul.f32 %v604_v10, %v604_v10  ;;  %v788_v53 = vand.u32 2147483648, %v3463_v3  ;;  %v774_v5 = vor.u32 1.1754944e-38, %v773_v33 }
  0xb4   : > { %v3483_v51 = vadd.f32 %v402_v16, %v3409_v1  ;;  %v3491_v56 = vadd.f32 %v467_v18, %v3411_v2  ;;  %2854 = vpow2.f32 %v546_v28  ;;  %v578_v34 = vmul.f32 1.442695, %v526_v44 }
  0xb5   : > { %v2845_v21 = vpop.eup %2844  ;;  %v3510_v54 = vadd.f32 1.0, %v3487_v25  ;;  %2856 = vpow2.f32 %v548_v29  ;;  %vm787_vm7 = vcmp.eq.f32.partialorder %v786_v43, 8.507059e+37  ;;  %v789_v9 = vor.u32 1.1754944e-38, %v788_v53 }
  0xb6   : > { %v2847_v27 = vpop.eup %2846  ;;  %v763_v30 = vmul.f32 %v2845_v21, %v3460_v0  ;;  %v512_v49 = vmin.f32 %v3483_v51, 20.0  ;;  %v513_v23 = vmin.f32 %v3491_v56, 20.0  ;;  %vm768_vm4 = vweird.f32 %v2845_v21 }
  0xb7   : > { %v778_v37 = vmul.f32 %v2847_v27, %v3463_v3  ;;  %v2849_v59 = vpop.eup %2848  ;;  %vm783_vm5 = vweird.f32 %v2847_v27  ;;  %vm769_vm6 = vmor %vm767_vm1, %vm768_vm4  ;;  %2858 = vrcp.f32 %v3510_v54  ;;  %v525_v42 = vmin.f32 %v3517_v57, 20.0 }
  0xb8   : > { %v764_v40 = vsub.f32 1.0, %v763_v30  ;;  %v3505_v45 = vpop.eup %2850  ;;  %v605_v58 = vadd.f32 1.0, %v2849_v59  ;;  %v550_v7 = vmul.f32 1.442695, %v512_v49  ;;  %v552_v8 = vmul.f32 1.442695, %v513_v23  ;;  %vm784_vm8 = vmor %vm782_vm3, %vm783_vm5 }
  0xb9   : > { %v779_v50 = vsub.f32 1.0, %v778_v37  ;;  %v3513_v63 = vpop.eup %2852  ;;  %2860 = vpow2.f32 %v578_v34  ;;  %v576_v32 = vmul.f32 1.442695, %v525_v42  ;;  %v2691_v33 = vadd.f32 -1.0, %v3487_v25 }
  0xba   : > { %v765_v55 = vmul.f32 %v2845_v21, %v764_v40  ;;  %v637_v15 = vmul.f32 %v605_v58, %v605_v58  ;;  %v2855_v3 = vpop.eup %2854  ;;  %2862 = vpow2.f32 %v550_v7  ;;  %v801_v38 = vand.u32 2147483647, %v3510_v54 }
  0xbb   : > { %v405_v60 = vpop.f32.mrf.mxu0  ;;  %v470_v61 = vpop.f32.mrf.mxu1  ;;  %v780_v26 = vmul.f32 %v2847_v27, %v779_v50  ;;  %2864 = vpow2.f32 %v552_v8  ;;  %v606_v37 = vadd.f32 1.0, %v2855_v3  ;;  %v803_v59 = vand.u32 2147483648, %v3510_v54 }
  0xbc   : > { %v766_v62 = vadd.f32 %v2845_v21, %v765_v55  ;;  %v3528_v11 = vadd.f32 %v405_v60, %v3409_v1  ;;  %v3534_v17 = vadd.f32 %v470_v61, %v3411_v2  ;;  %v3537_v47 = vadd.f32 1.0, %v637_v15  ;;  %v488_v60 = vpop.f32.mrf.mxu3 }
  0xbd   : > { %v781_v39 = vadd.f32 %v2847_v27, %v780_v26  ;;  %v3555_v40 = vadd.f32 1.0, %v3505_v45  ;;  %v3558_v43 = vadd.f32 1.0, %v3513_v63  ;;  %v700_v53 = vmul.f32 %v2691_v33, %v3440_v41  ;;  %v426_v45 = vpop.f32.mrf.mxu2 }
  0xbe   : > { %v770_v10 = vsel %vm769_vm6, %v2845_v21, %v766_v62  ;;  %v2857_v21 = vpop.eup %2856  ;;  %v515_v31 = vmin.f32 %v3534_v17, 20.0  ;;  %2866 = vrcp.f32 %v3537_v47  ;;  %vm797_vm11 = vweird.f32 %v3510_v54 }
  0xbf   : > { %v775_v0 = vsel %vm3494_vm2, %v774_v5, %v770_v10  ;;  %v785_v12 = vsel %vm784_vm8, %v2847_v27, %v781_v39  ;;  %v2859_v24 = vpop.eup %2858  ;;  %v607_v25 = vadd.f32 1.0, %v2857_v21  ;;  %2868 = vpow2.f32 %v576_v32 }
  0xc0   : > { %v776_v16 = vmul.f32 %v775_v0, %v698_v22  ;;  %v790_v18 = vsel %vm787_vm7, %v789_v9, %v785_v12  ;;  %v514_v22 = vmin.f32 %v3528_v11, 20.0  ;;  %v556_v36 = vmul.f32 1.442695, %v515_v31 }
  0xc1   : > { %v791_v19 = vmul.f32 %v790_v18, %v699_v35  ;;  %vm798_vm13 = vweird.f32 %v2859_v24  ;;  %vm3566_vm14 = vcmp.eq.f32.partialorder %v801_v38, 8.507059e+37  ;;  %v804_v26 = vor.u32 1.1754944e-38, %v803_v59 }
  0xc2   : > { %v1274_v27 = vsel %vm1242_vm9, %v3420_v13, %v776_v16  ;;  %v793_v13 = vmul.f32 %v2859_v24, %v3510_v54  ;;  %v554_v50 = vmul.f32 1.442695, %v514_v22  ;;  %v638_v62 = vmul.f32 %v606_v37, %v606_v37  ;;  %vm799_vm15 = vmor %vm797_vm11, %vm798_vm13 }
  0xc3   : > { %v408_v28 = vpop.f32.mrf.mxu0  ;;  %v473_v29 = vpop.f32.mrf.mxu1  ;;  %1392 = vmatmul.f32.vlgmr.msrb.gmra.mxu2 %v1274_v27  ;;  %v1275_v30 = vsel %vm1243_vm10, %v3423_v14, %v791_v19  ;;  %1522 = vmatmul.f32.vlgmr.msrb.gmra.mxu0 %v1274_v27  ;;  %v2692_v39 = vadd.f32 -1.0, %v637_v15  ;;  %v3581_v0 = vadd.f32 %v426_v45, %v3409_v1  ;;  %v3584_v12 = vadd.f32 %v488_v60, %v3411_v2 }
  0xc4   : > { %v3547_v35 = vadd.f32 %v408_v28, %v3409_v1  ;;  %1457 = vmatmul.f32.vlgmr.msrb.gmra.mxu3 %v1275_v30  ;;  %1587 = vmatmul.f32.vlgmr.msrb.gmra.mxu1 %v1275_v30  ;;  %v2861_v14 = vpop.eup %2860  ;;  %v794_v44 = vsub.f32 1.0, %v793_v13  ;;  %v3573_v34 = vadd.f32 %v473_v29, %v3411_v2  ;;  %2870 = vpow2.f32 %v554_v50 }
  0xc5   : > { %v2863_v49 = vpop.eup %2862  ;;  %v3564_v63 = vadd.f32 1.0, %v2861_v14  ;;  %2872 = vpow2.f32 %v556_v36  ;;  %vm812_vm0 = vweird.f32 %v3537_v47  ;;  %v816_v54 = vand.u32 2147483647, %v3537_v47 }
  0xc6   : > { %v2865_v23 = vpop.eup %2864  ;;  %v516_v55 = vmin.f32 %v3547_v35, 20.0  ;;  %v795_v58 = vmul.f32 %v2859_v24, %v794_v44  ;;  %v3570_v5 = vadd.f32 1.0, %v2863_v49  ;;  %v3591_v21 = vadd.f32 1.0, %v638_v62 }
  0xc7   : > { %v2867_v8 = vpop.eup %2866  ;;  %v3575_v10 = vadd.f32 1.0, %v2865_v23  ;;  %v517_v27 = vmin.f32 %v3573_v34, 20.0  ;;  %v818_v29 = vand.u32 2147483648, %v3537_v47  ;;  %vm1245_vm1 = vcmp.gt.f32.partialorder %v3446_v46, 20.0 }
  0xc8   : > { %v796_v7 = vadd.f32 %v2859_v24, %v795_v58  ;;  %v558_v16 = vmul.f32 1.442695, %v516_v55  ;;  %v808_v15 = vmul.f32 %v2867_v8, %v3537_v47  ;;  %v2869_v3 = vpop.eup %2868  ;;  %v528_v30 = vmin.f32 %v3581_v0, 20.0 }
  0xc9   : > { %v527_v32 = vmin.f32 %v3584_v12, 20.0  ;;  %v639_v33 = vmul.f32 %v607_v25, %v607_v25  ;;  %vm813_vm2 = vweird.f32 %v2867_v8  ;;  %v3604_v38 = vadd.f32 1.0, %v2869_v3 }
  0xca   : > { %v800_v18 = vsel %vm799_vm15, %v2859_v24, %v796_v7  ;;  %v809_v28 = vsub.f32 1.0, %v808_v15  ;;  %2874 = vpow2.f32 %v558_v16  ;;  %v2871_v37 = vpop.eup %2870  ;;  %v701_v14 = vmul.f32 %v2692_v39, %v3446_v46  ;;  %vm814_vm4 = vmor %vm812_vm0, %vm813_vm2 }
  0xcb   : > { %v411_v9 = vpop.f32.mrf.mxu0  ;;  %v476_v42 = vpop.f32.mrf.mxu1  ;;  %v805_v19 = vsel %vm3566_vm14, %v804_v26, %v800_v18  ;;  %2876 = vrcp.f32 %v3591_v21  ;;  %v560_v44 = vmul.f32 1.442695, %v517_v27  ;;  %vm817_vm3 = vcmp.eq.f32.partialorder %v816_v54, 8.507059e+37 }
  0xcc   : > { %v806_v22 = vmul.f32 %v805_v19, %v700_v53  ;;  %v3596_v24 = vadd.f32 %v411_v9, %v3409_v1  ;;  %v810_v13 = vmul.f32 %v2867_v8, %v809_v28  ;;  %v3607_v59 = vadd.f32 %v476_v42, %v3411_v2  ;;  %v2873_v25 = vpop.eup %2872  ;;  %v429_v19 = vpop.f32.mrf.mxu2 }
  0xcd   : > { %v3611_v50 = vadd.f32 1.0, %v639_v33  ;;  %v819_v53 = vor.u32 1.1754944e-38, %v818_v29  ;;  %v582_v23 = vmul.f32 1.442695, %v528_v30  ;;  %v2693_v55 = vadd.f32 -1.0, %v638_v62 }
  0xce   : > { %v1276_v31 = vsel %vm1244_vm12, %v3440_v41, %v806_v22  ;;  %v811_v49 = vadd.f32 %v2867_v8, %v810_v13  ;;  %v518_v41 = vmin.f32 %v3596_v24, 20.0  ;;  %v3616_v58 = vadd.f32 1.0, %v2871_v37  ;;  %v491_v22 = vpop.f32.mrf.mxu3 }
  0xcf   : > { %1395 = vmatmul.f32.gmra.mxu2 %v1276_v31  ;;  %1525 = vmatmul.f32.gmra.mxu0 %v1276_v31  ;;  %v580_v60 = vmul.f32 1.442695, %v527_v32  ;;  %v831_v26 = vand.u32 2147483647, %v3591_v21  ;;  %v519_v7 = vmin.f32 %v3607_v59, 20.0  ;;  %2878 = vrcp.f32 %v3611_v50 }
  0xd0   : > { %v815_v45 = vsel %vm814_vm4, %v2867_v8, %v811_v49  ;;  %v2875_v47 = vpop.eup %2874  ;;  %v3624_v42 = vadd.f32 1.0, %v2873_v25  ;;  %2880 = vpow2.f32 %v560_v44  ;;  %v833_v16 = vand.u32 2147483648, %v3591_v21 }
  0xd1   : > { %v820_v39 = vsel %vm817_vm3, %v819_v53, %v815_v45  ;;  %v2877_v8 = vpop.eup %2876  ;;  %v562_v18 = vmul.f32 1.442695, %v518_v41  ;;  %2882 = vpow2.f32 %v582_v23  ;;  %v702_v3 = vmul.f32 %v2693_v55, %v3466_v4 }
  0xd2   : > { %v821_v62 = vmul.f32 %v820_v39, %v701_v14  ;;  %2884 = vpow2.f32 %v580_v60  ;;  %v823_v27 = vmul.f32 %v2877_v8, %v3591_v21  ;;  %vm827_vm5 = vweird.f32 %v3591_v21 }
  0xd3   : > { %v414_v36 = vpop.f32.mrf.mxu0  ;;  %v479_v61 = vpop.f32.mrf.mxu1  ;;  %v3636_v28 = vadd.f32 1.0, %v2875_v47  ;;  %v564_v29 = vmul.f32 1.442695, %v519_v7  ;;  %vm3639_vm6 = vcmp.eq.f32.partialorder %v831_v26, 8.507059e+37  ;;  %v834_v13 = vor.u32 1.1754944e-38, %v833_v16 }
  0xd4   : > { %v3621_v9 = vadd.f32 %v414_v36, %v3409_v1  ;;  %v3628_v15 = vadd.f32 %v479_v61, %v3411_v2  ;;  %v1277_v54 = vsel %vm1245_vm1, %v3446_v46, %v821_v62  ;;  %v824_v31 = vsub.f32 1.0, %v823_v27 }
  0xd5   : > { %1460 = vmatmul.f32.gmra.mxu3 %v1277_v54  ;;  %1590 = vmatmul.f32.gmra.mxu1 %v1277_v54  ;;  %v2694_v46 = vadd.f32 -1.0, %v639_v33  ;;  %v3644_v37 = vadd.f32 %v429_v19, %v3409_v1  ;;  %v2879_v14 = vpop.eup %2878  ;;  %2886 = vpow2.f32 %v562_v18  ;;  %vm1246_vm7 = vcmp.gt.f32.partialorder %v3466_v4, 20.0 }
  0xd6   : > { %v520_v30 = vmin.f32 %v3621_v9, 20.0  ;;  %v521_v25 = vmin.f32 %v3628_v15, 20.0  ;;  %v3649_v44 = vadd.f32 %v491_v22, %v3411_v2  ;;  %v640_v49 = vmul.f32 %v3570_v5, %v3570_v5  ;;  %v2881_v41 = vpop.eup %2880 }
  0xd7   : > { %v825_v53 = vmul.f32 %v2877_v8, %v824_v31  ;;  %vm828_vm8 = vweird.f32 %v2877_v8  ;;  %v838_v33 = vmul.f32 %v2879_v14, %v3611_v50  ;;  %v641_v23 = vmul.f32 %v3575_v10, %v3575_v10  ;;  %v2883_v36 = vpop.eup %2882 }
  0xd8   : > { %2888 = vpow2.f32 %v564_v29  ;;  %v566_v55 = vmul.f32 1.442695, %v520_v30  ;;  %vm842_vm9 = vweird.f32 %v3611_v50  ;;  %v3657_v45 = vadd.f32 1.0, %v640_v49  ;;  %v2885_v60 = vpop.eup %2884  ;;  %vm829_vm10 = vmor %vm827_vm5, %vm828_vm8 }
  0xd9   : > { %v826_v61 = vadd.f32 %v2877_v8, %v825_v53  ;;  %v839_v26 = vsub.f32 1.0, %v838_v33  ;;  %v846_v5 = vand.u32 2147483647, %v3611_v50  ;;  %v530_v7 = vmin.f32 %v3644_v37, 20.0 }
  0xda   : > { %v568_v39 = vmul.f32 1.442695, %v521_v25  ;;  %vm843_vm11 = vweird.f32 %v2879_v14  ;;  %v848_v10 = vand.u32 2147483648, %v3611_v50  ;;  %v529_v47 = vmin.f32 %v3649_v44, 20.0 }
  0xdb   : > { %v417_v62 = vpop.f32.mrf.mxu0  ;;  %v830_v16 = vsel %vm829_vm10, %v2877_v8, %v826_v61  ;;  %v840_v18 = vmul.f32 %v2879_v14, %v839_v26  ;;  %2890 = vrcp.f32 %v3657_v45  ;;  %v3666_v19 = vadd.f32 1.0, %v641_v23  ;;  %v2887_v54 = vpop.eup %2886  ;;  %vm844_vm12 = vmor %vm842_vm9, %vm843_vm11 }
  0xdc   : > { %v3668_v27 = vadd.f32 1.0, %v2881_v41  ;;  %2892 = vpow2.f32 %v566_v55  ;;  %v835_v21 = vsel %vm3639_vm6, %v834_v13, %v830_v16  ;;  %v703_v22 = vmul.f32 %v2694_v46, %v3469_v6  ;;  %v432_v55 = vpop.f32.mrf.mxu2 }
  0xdd   : > { %v836_v29 = vmul.f32 %v835_v21, %v702_v3  ;;  %v841_v30 = vadd.f32 %v2879_v14, %v840_v18  ;;  %v586_v31 = vmul.f32 1.442695, %v530_v7  ;;  %v3674_v25 = vadd.f32 %v417_v62, %v3409_v1 }
  0xde   : > { %v2889_v8 = vpop.eup %2888  ;;  %2894 = vpow2.f32 %v568_v39  ;;  %v849_v41 = vor.u32 1.1754944e-38, %v848_v10  ;;  %vm1247_vm13 = vcmp.gt.f32.partialorder %v3469_v6, 20.0  ;;  %v584_v53 = vmul.f32 1.442695, %v529_v47 }
  0xdf   : > { %v1278_v32 = vsel %vm1246_vm7, %v3466_v4, %v836_v29  ;;  %v845_v3 = vsel %vm844_vm12, %v2879_v14, %v841_v30  ;;  %vm847_vm14 = vcmp.eq.f32.partialorder %v846_v5, 8.507059e+37  ;;  %2896 = vrcp.f32 %v3666_v19  ;;  %v494_v14 = vpop.f32.mrf.mxu3 }
  0xe0   : > { %v3684_v13 = vadd.f32 1.0, %v2887_v54  ;;  %v3686_v46 = vadd.f32 1.0, %v2883_v36  ;;  %v3688_v33 = vadd.f32 1.0, %v2885_v60  ;;  %1398 = vmatmul.f32.gmra.mxu2 %v1278_v32  ;;  %v850_v50 = vsel %vm847_vm14, %v849_v41, %v845_v3  ;;  %1528 = vmatmul.f32.gmra.mxu0 %v1278_v32 }
  0xe1   : > { %v2891_v61 = vpop.eup %2890  ;;  %v851_v26 = vmul.f32 %v850_v50, %v703_v22  ;;  %2898 = vpow2.f32 %v586_v31  ;;  %v522_v7 = vmin.f32 %v3674_v25, 20.0  ;;  %v2695_v4 = vadd.f32 -1.0, %v640_v49 }
  0xe2   : > { %v2893_v5 = vpop.eup %2892  ;;  %v3691_v39 = vadd.f32 1.0, %v2889_v8  ;;  %2900 = vpow2.f32 %v584_v53  ;;  %v853_v36 = vmul.f32 %v2891_v61, %v3657_v45  ;;  %v2696_v10 = vadd.f32 -1.0, %v641_v23 }
  0xe3   : > { %v1279_v60 = vsel %vm1247_vm13, %v3469_v6, %v851_v26  ;;  %v861_v47 = vand.u32 2147483647, %v3657_v45  ;;  %v3699_v62 = vadd.f32 %v432_v55, %v3409_v1  ;;  %v642_v49 = vmul.f32 %v3616_v58, %v3616_v58 }
  0xe4   : > { %v2895_v16 = vpop.eup %2894  ;;  %1463 = vmatmul.f32.gmra.mxu3 %v1279_v60  ;;  %1593 = vmatmul.f32.gmra.mxu1 %v1279_v60  ;;  %v854_v18 = vsub.f32 1.0, %v853_v36  ;;  %v863_v54 = vand.u32 2147483648, %v3657_v45  ;;  %v3705_v23 = vadd.f32 %v494_v14, %v3411_v2  ;;  %v643_v6 = vmul.f32 %v3624_v42, %v3624_v42 }
  0xe5   : > { %5387 = vst [vmem:[#allocation8_spill] sm:$0xff] %v3699_v62  ;;  %v2897_v21 = vpop.eup %2896  ;;  %v3709_v22 = vadd.f32 1.0, %v2893_v5  ;;  %v570_v29 = vmul.f32 1.442695, %v522_v7  ;;  %v704_v30 = vmul.f32 %v2695_v4, %v3483_v51  ;;  %vm857_vm15 = vweird.f32 %v3657_v45 }
  0xe6   : > { %5388 = vst [vmem:[#allocation9_spill] sm:$0xff] %v3705_v23  ;;  %vm1248_vm0 = vcmp.gt.f32.partialorder %v3483_v51, 20.0  ;;  %v855_v58 = vmul.f32 %v2891_v61, %v854_v18  ;;  %vm858_vm1 = vweird.f32 %v2891_v61  ;;  %v868_v31 = vmul.f32 %v2897_v21, %v3666_v19 }
  0xe7   : > { %v3715_v8 = vadd.f32 1.0, %v642_v49  ;;  %v2899_v41 = vpop.eup %2898  ;;  %v3717_v53 = vadd.f32 1.0, %v2895_v16  ;;  %vm3719_vm2 = vcmp.eq.f32.partialorder %v861_v47, 8.507059e+37  ;;  %v532_v32 = vmin.f32 %v3699_v62, 20.0  ;;  %vm859_vm3 = vmor %vm857_vm15, %vm858_vm1 }
  0xe8   : > { %v3724_v3 = vadd.f32 1.0, %v643_v6  ;;  %v2901_v50 = vpop.eup %2900  ;;  %v856_v55 = vadd.f32 %v2891_v61, %v855_v58  ;;  %v864_v26 = vor.u32 1.1754944e-38, %v863_v54  ;;  %v869_v7 = vsub.f32 1.0, %v868_v31  ;;  %v435_v54 = vpop.f32.mrf.mxu2 }
  0xe9   : > { %v531_v4 = vmin.f32 %v3705_v23, 20.0  ;;  %vm872_vm4 = vweird.f32 %v3666_v19  ;;  %v876_v14 = vand.u32 2147483647, %v3666_v19  ;;  %v878_v5 = vand.u32 2147483648, %v3666_v19 }
  0xea   : > { %2902 = vrcp.f32 %v3715_v8  ;;  %v860_v36 = vsel %vm859_vm3, %v2891_v61, %v856_v55  ;;  %v870_v60 = vmul.f32 %v2897_v21, %v869_v7  ;;  %vm873_vm5 = vweird.f32 %v2897_v21 }
  0xeb   : > { %2904 = vrcp.f32 %v3724_v3  ;;  %v3734_v47 = vadd.f32 1.0, %v2899_v41  ;;  %v865_v16 = vsel %vm3719_vm2, %v864_v26, %v860_v36  ;;  %v590_v45 = vmul.f32 1.442695, %v532_v32  ;;  %vm874_vm6 = vmor %vm872_vm4, %vm873_vm5  ;;  %v497_v41 = vpop.f32.mrf.mxu3 }
  0xec   : > { %v2697_v18 = vadd.f32 -1.0, %v642_v49  ;;  %2906 = vpow2.f32 %v570_v29  ;;  %v866_v58 = vmul.f32 %v865_v16, %v704_v30  ;;  %v871_v31 = vadd.f32 %v2897_v21, %v870_v60 }
  0xed   : > { %v588_v62 = vmul.f32 1.442695, %v531_v4  ;;  %v3738_v23 = vadd.f32 1.0, %v2901_v50  ;;  %v705_v61 = vmul.f32 %v2696_v10, %v3491_v56  ;;  %v879_v55 = vor.u32 1.1754944e-38, %v878_v5 }
  0xee   : > { %vm1249_vm7 = vcmp.gt.f32.partialorder %v3491_v56, 20.0  ;;  %v1280_v49 = vsel %vm1248_vm0, %v3483_v51, %v866_v58  ;;  %v875_v42 = vsel %vm874_vm6, %v2897_v21, %v871_v31  ;;  %vm877_vm8 = vcmp.eq.f32.partialorder %v876_v14, 8.507059e+37 }
  0xef   : > { %v644_v29 = vmul.f32 %v3636_v28, %v3636_v28  ;;  %1401 = vmatmul.f32.gmra.mxu2 %v1280_v49  ;;  %v880_v32 = vsel %vm877_vm8, %v879_v55, %v875_v42  ;;  %1531 = vmatmul.f32.gmra.mxu0 %v1280_v49  ;;  %2908 = vpow2.f32 %v590_v45  ;;  %v706_v19 = vmul.f32 %v2697_v18, %v3528_v11 }
  0xf0   : > { %v2903_v30 = vpop.eup %2902  ;;  %v2698_v10 = vadd.f32 -1.0, %v643_v6  ;;  %v881_v26 = vmul.f32 %v880_v32, %v705_v61  ;;  %2910 = vpow2.f32 %v588_v62  ;;  %v3752_v51 = vadd.f32 %v435_v54, %v3409_v1  ;;  %v438_v55 = vpop.f32.mrf.mxu2 }
  0xf1   : > { %v2905_v50 = vpop.eup %2904  ;;  %v883_v7 = vmul.f32 %v2903_v30, %v3715_v8  ;;  %vm887_vm9 = vweird.f32 %v3715_v8  ;;  %v891_v28 = vand.u32 2147483647, %v3715_v8  ;;  %v3758_v4 = vadd.f32 %v497_v41, %v3411_v2 }
  0xf2   : > { %v898_v21 = vmul.f32 %v2905_v50, %v3724_v3  ;;  %v2907_v14 = vpop.eup %2906  ;;  %v1281_v6 = vsel %vm1249_vm7, %v3491_v56, %v881_v26  ;;  %v893_v5 = vand.u32 2147483648, %v3715_v8  ;;  %v3764_v36 = vadd.f32 1.0, %v644_v29 }
  0xf3   : > { %v884_v62 = vsub.f32 1.0, %v883_v7  ;;  %1466 = vmatmul.f32.gmra.mxu3 %v1281_v6  ;;  %1596 = vmatmul.f32.gmra.mxu1 %v1281_v6  ;;  %vm1250_vm10 = vcmp.gt.f32.partialorder %v3528_v11, 20.0  ;;  %vm902_vm11 = vweird.f32 %v3724_v3  ;;  %v908_v16 = vand.u32 2147483648, %v3724_v3  ;;  %v500_v6 = vpop.f32.mrf.mxu3 }
  0xf4   : > { %v899_v60 = vsub.f32 1.0, %v898_v21  ;;  %v645_v45 = vmul.f32 %v3668_v27, %v3668_v27  ;;  %vm888_vm12 = vweird.f32 %v2903_v30  ;;  %v906_v56 = vand.u32 2147483647, %v3724_v3 }
  0xf5   : > { %v885_v18 = vmul.f32 %v2903_v30, %v884_v62  ;;  %vm1251_vm13 = vcmp.gt.f32.partialorder %v3534_v17, 20.0  ;;  %v534_v54 = vmin.f32 %v3752_v51, 20.0  ;;  %v2909_v58 = vpop.eup %2908  ;;  %vm903_vm14 = vweird.f32 %v2905_v50  ;;  %vm889_vm0 = vmor %vm887_vm9, %vm888_vm12 }
  0xf6   : > { %v900_v31 = vmul.f32 %v2905_v50, %v899_v60  ;;  %v533_v61 = vmin.f32 %v3758_v4, 20.0  ;;  %2912 = vrcp.f32 %v3764_v36  ;;  %v2911_v41 = vpop.eup %2910  ;;  %vm892_vm15 = vcmp.eq.f32.partialorder %v891_v28, 8.507059e+37  ;;  %vm904_vm1 = vmor %vm902_vm11, %vm903_vm14 }
  0xf7   : > { %v886_v49 = vadd.f32 %v2903_v30, %v885_v18  ;;  %v707_v27 = vmul.f32 %v2698_v10, %v3534_v17  ;;  %v3777_v42 = vadd.f32 1.0, %v645_v45  ;;  %v894_v32 = vor.u32 1.1754944e-38, %v893_v5 }
  0xf8   : > { %v901_v26 = vadd.f32 %v2905_v50, %v900_v31  ;;  %v909_v7 = vor.u32 1.1754944e-38, %v908_v16  ;;  %v2699_v21 = vadd.f32 -1.0, %v644_v29  ;;  %v594_v60 = vmul.f32 1.442695, %v534_v54 }
  0xf9   : > { %v890_v62 = vsel %vm889_vm0, %v2903_v30, %v886_v49  ;;  %2914 = vrcp.f32 %v3777_v42  ;;  %v3787_v10 = vadd.f32 %v438_v55, %v3409_v1  ;;  %vm907_vm2 = vcmp.eq.f32.partialorder %v906_v56, 8.507059e+37 }
  0xfa   : > { %v895_v28 = vsel %vm892_vm15, %v894_v32, %v890_v62  ;;  %v905_v18 = vsel %vm904_vm1, %v2905_v50, %v901_v26  ;;  %v592_v8 = vmul.f32 1.442695, %v533_v61  ;;  %v3789_v5 = vadd.f32 1.0, %v2907_v14 }
  0xfb   : > { %v896_v16 = vmul.f32 %v895_v28, %v706_v19  ;;  %v910_v29 = vsel %vm907_vm2, %v909_v7, %v905_v18  ;;  %v3792_v30 = vadd.f32 %v500_v6, %v3411_v2  ;;  %v3794_v3 = vadd.f32 1.0, %v2909_v58 }
  0xfc   : > { %v2913_v31 = vpop.eup %2912  ;;  %v3796_v54 = vadd.f32 1.0, %v2911_v41  ;;  %v911_v49 = vmul.f32 %v910_v29, %v707_v27  ;;  %v708_v1 = vmul.f32 %v2699_v21, %v3547_v35  ;;  %2916 = vpow2.f32 %v594_v60 }
  0xfd   : > { %v1282_v50 = vsel %vm1250_vm10, %v3528_v11, %v896_v16  ;;  %v913_v14 = vmul.f32 %v2913_v31, %v3764_v36  ;;  %v536_v19 = vmin.f32 %v3787_v10, 20.0  ;;  %2918 = vpow2.f32 %v592_v8 }
  0xfe   : > { %1404 = vmatmul.f32.gmra.mxu2 %v1282_v50  ;;  %v1283_v56 = vsel %vm1251_vm13, %v3534_v17, %v911_v49  ;;  %1534 = vmatmul.f32.gmra.mxu0 %v1282_v50  ;;  %v923_v58 = vand.u32 2147483648, %v3764_v36  ;;  %v646_v61 = vmul.f32 %v3684_v13, %v3684_v13  ;;  %vm917_vm3 = vweird.f32 %v3764_v36 }
  0xff   : > { %v2915_v55 = vpop.eup %2914  ;;  %1469 = vmatmul.f32.gmra.mxu3 %v1283_v56  ;;  %1599 = vmatmul.f32.gmra.mxu1 %v1283_v56  ;;  %v914_v11 = vsub.f32 1.0, %v913_v14  ;;  %v535_v41 = vmin.f32 %v3792_v30, 20.0  ;;  %v647_v27 = vmul.f32 %v3691_v39, %v3691_v39  ;;  %v921_v17 = vand.u32 2147483647, %v3764_v36 }
 0x100   : > { %vm1252_vm4 = vcmp.gt.f32.partialorder %v3547_v35, 20.0  ;;  %v2700_v32 = vadd.f32 -1.0, %v645_v45  ;;  %v928_v26 = vmul.f32 %v2915_v55, %v3777_v42  ;;  %v3817_v7 = vadd.f32 1.0, %v646_v61 }
 0x101   : > { %v915_v13 = vmul.f32 %v2913_v31, %v914_v11  ;;  %vm918_vm5 = vweird.f32 %v2913_v31  ;;  %v598_v21 = vmul.f32 1.442695, %v536_v19  ;;  %v3819_v6 = vadd.f32 1.0, %v647_v27  ;;  %v503_v11 = vpop.f32.mrf.mxu3 }
 0x102   : > { %v924_v62 = vor.u32 1.1754944e-38, %v923_v58  ;;  %v929_v60 = vsub.f32 1.0, %v928_v26  ;;  %v936_v28 = vand.u32 2147483647, %v3777_v42  ;;  %2920 = vrcp.f32 %v3817_v7  ;;  %v2917_v39 = vpop.eup %2916  ;;  %vm919_vm8 = vmor %vm917_vm3, %vm918_vm5 }
 0x103   : > { %v916_v18 = vadd.f32 %v2913_v31, %v915_v13  ;;  %vm932_vm6 = vweird.f32 %v3777_v42  ;;  %v938_v45 = vand.u32 2147483648, %v3777_v42  ;;  %vm1253_vm7 = vcmp.gt.f32.partialorder %v3573_v34, 20.0  ;;  %v2919_v16 = vpop.eup %2918 }
 0x104   : > { %v596_v8 = vmul.f32 1.442695, %v535_v41  ;;  %v930_v29 = vmul.f32 %v2915_v55, %v929_v60  ;;  %vm933_vm9 = vweird.f32 %v2915_v55  ;;  %v2701_v49 = vadd.f32 -1.0, %v646_v61 }
 0x105   : > { %2922 = vrcp.f32 %v3819_v6  ;;  %v920_v50 = vsel %vm919_vm8, %v2913_v31, %v916_v18  ;;  %vm922_vm10 = vcmp.eq.f32.partialorder %v921_v17, 8.507059e+37  ;;  %v709_v14 = vmul.f32 %v2700_v32, %v3573_v34  ;;  %vm934_vm12 = vmor %vm932_vm6, %vm933_vm9 }
 0x106   : > { %2924 = vpow2.f32 %v598_v21  ;;  %v3830_v19 = vadd.f32 1.0, %v2917_v39  ;;  %v925_v56 = vsel %vm922_vm10, %v924_v62, %v920_v50  ;;  %v931_v58 = vadd.f32 %v2915_v55, %v930_v29 }
 0x107   : > { %vm937_vm11 = vcmp.eq.f32.partialorder %v936_v28, 8.507059e+37  ;;  %v3832_v41 = vadd.f32 1.0, %v2919_v16  ;;  %v926_v36 = vmul.f32 %v925_v56, %v708_v1  ;;  %v939_v61 = vor.u32 1.1754944e-38, %v938_v45 }
 0x108   : > { %v648_v31 = vmul.f32 %v3709_v22, %v3709_v22  ;;  %v2921_v17 = vpop.eup %2920  ;;  %v935_v26 = vsel %vm934_vm12, %v2915_v55, %v931_v58  ;;  %2926 = vpow2.f32 %v596_v8  ;;  %v710_v32 = vmul.f32 %v2701_v49, %v3596_v24 }
 0x109   : > { %v2702_v13 = vadd.f32 -1.0, %v647_v27  ;;  %v1284_v21 = vsel %vm1252_vm4, %v3547_v35, %v926_v36  ;;  %v940_v62 = vsel %vm937_vm11, %v939_v61, %v935_v26  ;;  %v943_v1 = vmul.f32 %v2921_v17, %v3817_v7 }
 0x10a   : > { %v3844_v42 = vadd.f32 %v503_v11, %v3411_v2  ;;  %1407 = vmatmul.f32.gmra.mxu2 %v1284_v21  ;;  %v941_v28 = vmul.f32 %v940_v62, %v709_v14  ;;  %1537 = vmatmul.f32.gmra.mxu0 %v1284_v21  ;;  %vm947_vm13 = vweird.f32 %v3817_v7  ;;  %v3847_v22 = vadd.f32 1.0, %v648_v31 }
 0x10b   : > { %v2923_v60 = vpop.eup %2922  ;;  %v649_v55 = vmul.f32 %v3717_v53, %v3717_v53  ;;  %v944_v39 = vsub.f32 1.0, %v943_v1  ;;  %v951_v35 = vand.u32 2147483647, %v3817_v7  ;;  %v953_v18 = vand.u32 2147483648, %v3817_v7 }
 0x10c   : > { %v2925_v27 = vpop.eup %2924  ;;  %v958_v2 = vmul.f32 %v2923_v60, %v3819_v6  ;;  %v1285_v45 = vsel %vm1253_vm7, %v3573_v34, %v941_v28  ;;  %vm1254_vm14 = vcmp.gt.f32.partialorder %v3596_v24, 20.0  ;;  %v711_v8 = vmul.f32 %v2702_v13, %v3607_v59 }
 0x10d   : > { %v966_v16 = vand.u32 2147483647, %v3819_v6  ;;  %2928 = vrcp.f32 %v3847_v22  ;;  %1472 = vmatmul.f32.gmra.mxu3 %v1285_v45  ;;  %1602 = vmatmul.f32.gmra.mxu1 %v1285_v45  ;;  %v945_v53 = vmul.f32 %v2921_v17, %v944_v39  ;;  %vm948_vm15 = vweird.f32 %v2921_v17 }
 0x10e   : > { %v959_v29 = vsub.f32 1.0, %v958_v2  ;;  %v537_v49 = vmin.f32 %v3844_v42, 20.0  ;;  %v2927_v50 = vpop.eup %2926  ;;  %v3862_v14 = vadd.f32 1.0, %v2925_v27  ;;  %vm962_vm0 = vweird.f32 %v3819_v6  ;;  %vm949_vm3 = vmor %vm947_vm13, %vm948_vm15 }
 0x10f   : > { %v968_v34 = vand.u32 2147483648, %v3819_v6  ;;  %vm1255_vm1 = vcmp.gt.f32.partialorder %v3607_v59, 20.0  ;;  %v3867_v56 = vadd.f32 1.0, %v649_v55  ;;  %v946_v58 = vadd.f32 %v2921_v17, %v945_v53 }
 0x110   : > { %v960_v11 = vmul.f32 %v2923_v60, %v959_v29  ;;  %vm963_vm2 = vweird.f32 %v2923_v60  ;;  %v2703_v36 = vadd.f32 -1.0, %v648_v31  ;;  %vm952_vm4 = vcmp.eq.f32.partialorder %v951_v35, 8.507059e+37 }
 0x111   : > { %v954_v61 = vor.u32 1.1754944e-38, %v953_v18  ;;  %vm3871_vm5 = vcmp.eq.f32.partialorder %v966_v16, 8.507059e+37  ;;  %2930 = vrcp.f32 %v3867_v56  ;;  %v950_v13 = vsel %vm949_vm3, %v2921_v17, %v946_v58  ;;  %vm964_vm6 = vmor %vm962_vm0, %vm963_vm2 }
 0x112   : > { %v961_v21 = vadd.f32 %v2923_v60, %v960_v11  ;;  %v600_v62 = vmul.f32 1.442695, %v537_v49  ;;  %v650_v1 = vmul.f32 %v3789_v5, %v3789_v5  ;;  %v3878_v27 = vadd.f32 1.0, %v2927_v50 }
 0x113   : > { %v2929_v28 = vpop.eup %2928  ;;  %v955_v31 = vsel %vm952_vm4, %v954_v61, %v950_v13  ;;  %v969_v7 = vor.u32 1.1754944e-38, %v968_v34  ;;  %v2704_v39 = vadd.f32 -1.0, %v649_v55  ;;  %v712_v2 = vmul.f32 %v2703_v36, %v3621_v9 }
 0x114   : > { %v956_v35 = vmul.f32 %v955_v31, %v710_v32  ;;  %v965_v18 = vsel %vm964_vm6, %v2923_v60, %v961_v21  ;;  %v973_v17 = vmul.f32 %v2929_v28, %v3847_v22  ;;  %v981_v5 = vand.u32 2147483647, %v3847_v22 }
 0x115   : > { %v970_v45 = vsel %vm3871_vm5, %v969_v7, %v965_v18  ;;  %v3887_v16 = vadd.f32 1.0, %v650_v1  ;;  %v651_v53 = vmul.f32 %v3558_v43, %v3558_v43  ;;  %2932 = vpow2.f32 %v600_v62 }
 0x116   : > { %v1286_v6 = vsel %vm1254_vm14, %v3596_v24, %v956_v35  ;;  %v971_v32 = vmul.f32 %v970_v45, %v711_v8  ;;  %v974_v60 = vsub.f32 1.0, %v973_v17  ;;  %vm977_vm7 = vweird.f32 %v3847_v22 }
 0x117   : > { %v2931_v55 = vpop.eup %2930  ;;  %1410 = vmatmul.f32.gmra.mxu2 %v1286_v6  ;;  %1540 = vmatmul.f32.gmra.mxu0 %v1286_v6  ;;  %v983_v29 = vand.u32 2147483648, %v3847_v22  ;;  %vm1256_vm8 = vcmp.gt.f32.partialorder %v3621_v9, 20.0  ;;  %v713_v49 = vmul.f32 %v2704_v39, %v3628_v15  ;;  %2934 = vrcp.f32 %v3887_v16 }
 0x118   : > { %v1287_v43 = vsel %vm1255_vm1, %v3607_v59, %v971_v32  ;;  %v975_v24 = vmul.f32 %v2929_v28, %v974_v60  ;;  %vm978_vm9 = vweird.f32 %v2929_v28  ;;  %v988_v8 = vmul.f32 %v2931_v55, %v3867_v56 }
 0x119   : > { %1475 = vmatmul.f32.gmra.mxu3 %v1287_v43  ;;  %1605 = vmatmul.f32.gmra.mxu1 %v1287_v43  ;;  %vm3903_vm10 = vcmp.eq.f32.partialorder %v981_v5, 8.507059e+37  ;;  %v996_v34 = vand.u32 2147483647, %v3867_v56  ;;  %v998_v58 = vand.u32 2147483648, %v3867_v56  ;;  %v3909_v11 = vadd.f32 1.0, %v651_v53  ;;  %vm979_vm11 = vmor %vm977_vm7, %vm978_vm9 }
 0x11a   : > { %v976_v36 = vadd.f32 %v2929_v28, %v975_v24  ;;  %v989_v61 = vsub.f32 1.0, %v988_v8  ;;  %v2705_v26 = vadd.f32 -1.0, %v650_v1  ;;  %v652_v59 = vmul.f32 %v3555_v40, %v3555_v40 }
 0x11b   : > { %v984_v13 = vor.u32 1.1754944e-38, %v983_v29  ;;  %vm992_vm12 = vweird.f32 %v3867_v56  ;;  %vm1257_vm13 = vcmp.gt.f32.partialorder %v3628_v15, 20.0  ;;  %2936 = vrcp.f32 %v3909_v11  ;;  %v3918_v21 = vpop.eup %2932 }
 0x11c   : > { %v980_v62 = vsel %vm979_vm11, %v2929_v28, %v976_v36  ;;  %v990_v31 = vmul.f32 %v2931_v55, %v989_v61  ;;  %vm993_vm14 = vweird.f32 %v2931_v55  ;;  %v1011_v1 = vand.u32 2147483647, %v3887_v16 }
 0x11d   : > { %v2935_v7 = vpop.eup %2934  ;;  %v985_v40 = vsel %vm3903_vm10, %v984_v13, %v980_v62  ;;  %vm3923_vm15 = vcmp.eq.f32.partialorder %v996_v34, 8.507059e+37  ;;  %v999_v39 = vor.u32 1.1754944e-38, %v998_v58  ;;  %v3927_v35 = vadd.f32 1.0, %v652_v59  ;;  %vm994_vm0 = vmor %vm992_vm12, %vm993_vm14 }
 0x11e   : > { %v986_v18 = vmul.f32 %v985_v40, %v712_v2  ;;  %v991_v17 = vadd.f32 %v2931_v55, %v990_v31  ;;  %v714_v45 = vmul.f32 %v2705_v26, %v3674_v25  ;;  %v1003_v28 = vmul.f32 %v2935_v7, %v3887_v16 }
 0x11f   : > { %vm1007_vm1 = vweird.f32 %v3887_v16  ;;  %v1013_v5 = vand.u32 2147483648, %v3887_v16  ;;  %v2706_v6 = vadd.f32 -1.0, %v651_v53  ;;  %2938 = vrcp.f32 %v3927_v35 }
 0x120   : > { %v1288_v32 = vsel %vm1256_vm8, %v3621_v9, %v986_v18  ;;  %v995_v2 = vsel %vm994_vm0, %v2931_v55, %v991_v17  ;;  %v1004_v60 = vsub.f32 1.0, %v1003_v28  ;;  %vm3939_vm2 = vcmp.eq.f32.partialorder %v1011_v1, 8.507059e+37 }
 0x121   : > { %v2937_v43 = vpop.eup %2936  ;;  %1413 = vmatmul.f32.gmra.mxu2 %v1288_v32  ;;  %v1000_v56 = vsel %vm3923_vm15, %v999_v39, %v995_v2  ;;  %1543 = vmatmul.f32.gmra.mxu0 %v1288_v32  ;;  %vm1258_vm3 = vcmp.gt.f32.partialorder %v3674_v25, 20.0  ;;  %v1026_v53 = vand.u32 2147483647, %v3909_v11  ;;  %v1028_v24 = vand.u32 2147483648, %v3909_v11 }
 0x122   : > { %v653_v9 = vmul.f32 %v3604_v38, %v3604_v38  ;;  %v1001_v55 = vmul.f32 %v1000_v56, %v713_v49  ;;  %v1005_v8 = vmul.f32 %v2935_v7, %v1004_v60  ;;  %vm1008_vm4 = vweird.f32 %v2935_v7 }
 0x123   : > { %v1018_v50 = vmul.f32 %v2937_v43, %v3909_v11  ;;  %v1014_v34 = vor.u32 1.1754944e-38, %v1013_v5  ;;  %v715_v58 = vmul.f32 %v2706_v6, %v3453_v52  ;;  %vm1022_vm5 = vweird.f32 %v3909_v11  ;;  %vm1009_vm7 = vmor %vm1007_vm1, %vm1008_vm4 }
 0x124   : > { %v3953_v36 = vadd.f32 1.0, %v653_v9  ;;  %v1289_v61 = vsel %vm1257_vm13, %v3628_v15, %v1001_v55  ;;  %v1006_v26 = vadd.f32 %v2935_v7, %v1005_v8  ;;  %vm1023_vm6 = vweird.f32 %v2937_v43 }
 0x125   : > { %v1019_v13 = vsub.f32 1.0, %v1018_v50  ;;  %v2939_v38 = vpop.eup %2938  ;;  %1478 = vmatmul.f32.gmra.mxu3 %v1289_v61  ;;  %1608 = vmatmul.f32.gmra.mxu1 %v1289_v61  ;;  %vm3960_vm8 = vcmp.eq.f32.partialorder %v1026_v53, 8.507059e+37  ;;  %v1029_v62 = vor.u32 1.1754944e-38, %v1028_v24  ;;  %v2707_v31 = vadd.f32 -1.0, %v652_v59  ;;  %vm3971_vm9 = vmor %vm1022_vm5, %vm1023_vm6 }
 0x126   : > { %2940 = vrcp.f32 %v3953_v36  ;;  %v1010_v1 = vsel %vm1009_vm7, %v2935_v7, %v1006_v26  ;;  %v1033_v15 = vmul.f32 %v2939_v38, %v3927_v35  ;;  %v1041_v22 = vand.u32 2147483647, %v3927_v35 }
 0x127   : > { %v1020_v40 = vmul.f32 %v2937_v43, %v1019_v13  ;;  %v1015_v39 = vsel %vm3939_vm2, %v1014_v34, %v1010_v1  ;;  %vm1037_vm10 = vweird.f32 %v3927_v35  ;;  %v1043_v59 = vand.u32 2147483648, %v3927_v35 }
 0x128   : > { %v654_v7 = vmul.f32 %v3564_v63, %v3564_v63  ;;  %v1016_v18 = vmul.f32 %v1015_v39, %v714_v45  ;;  %v1034_v28 = vsub.f32 1.0, %v1033_v15  ;;  %vm1038_vm11 = vweird.f32 %v2939_v38 }
 0x129   : > { %v1021_v17 = vadd.f32 %v2937_v43, %v1020_v40  ;;  %vm1259_vm12 = vcmp.gt.f32.partialorder %v3453_v52, 20.0  ;;  %v716_v5 = vmul.f32 %v2707_v31, %v3449_v48  ;;  %v655_v6 = vmul.f32 %v3688_v33, %v3688_v33  ;;  %vm3998_vm14 = vmor %vm1037_vm10, %vm1038_vm11 }
 0x12a   : > { %v3981_v11 = vadd.f32 1.0, %v654_v7  ;;  %v1290_v32 = vsel %vm1258_vm3, %v3674_v25, %v1016_v18  ;;  %v1035_v45 = vmul.f32 %v2939_v38, %v1034_v28  ;;  %vm3990_vm13 = vcmp.eq.f32.partialorder %v1041_v22, 8.507059e+37 }
 0x12b   : > { %v1025_v63 = vsel %vm3971_vm9, %v2937_v43, %v1021_v17  ;;  %1416 = vmatmul.f32.gmra.mxu2 %v1290_v32  ;;  %1546 = vmatmul.f32.gmra.mxu0 %v1290_v32  ;;  %v1044_v25 = vor.u32 1.1754944e-38, %v1043_v59  ;;  %v2708_v56 = vadd.f32 -1.0, %v653_v9  ;;  %v1056_v55 = vand.u32 2147483647, %v3953_v36 }
 0x12c   : > { %v2941_v60 = vpop.eup %2940  ;;  %v1030_v29 = vsel %vm3960_vm8, %v1029_v62, %v1025_v63  ;;  %2942 = vrcp.f32 %v3981_v11  ;;  %v1036_v53 = vadd.f32 %v2939_v38, %v1035_v45  ;;  %vm1052_vm15 = vweird.f32 %v3953_v36 }
 0x12d   : > { %v1031_v43 = vmul.f32 %v1030_v29, %v715_v58  ;;  %v1048_v24 = vmul.f32 %v2941_v60, %v3953_v36  ;;  %vm1053_vm0 = vweird.f32 %v2941_v60  ;;  %v1058_v8 = vand.u32 2147483648, %v3953_v36 }
 0x12e   : > { %v4007_v35 = vadd.f32 1.0, %v655_v6  ;;  %v1040_v9 = vsel %vm3998_vm14, %v2939_v38, %v1036_v53  ;;  %v656_v58 = vmul.f32 %v3686_v46, %v3686_v46  ;;  %v4017_v61 = vadd.f32 1.0, %v3918_v21  ;;  %vm4031_vm3 = vmor %vm1052_vm15, %vm1053_vm0 }
 0x12f   : > { %v1291_v50 = vsel %vm1259_vm12, %v3453_v52, %v1031_v43  ;;  %v1049_v34 = vsub.f32 1.0, %v1048_v24  ;;  %v1045_v26 = vsel %vm3990_vm13, %v1044_v25, %v1040_v9  ;;  %vm1260_vm1 = vcmp.gt.f32.partialorder %v3449_v48, 20.0 }
 0x130   : > { %1481 = vmatmul.f32.gmra.mxu3 %v1291_v50  ;;  %1611 = vmatmul.f32.gmra.mxu1 %v1291_v50  ;;  %v717_v13 = vmul.f32 %v2708_v56, %v3517_v57  ;;  %v1046_v52 = vmul.f32 %v1045_v26, %v716_v5  ;;  %vm4023_vm2 = vcmp.eq.f32.partialorder %v1056_v55, 8.507059e+37  ;;  %2944 = vrcp.f32 %v4007_v35 }
 0x131   : > { %v1050_v49 = vmul.f32 %v2941_v60, %v1049_v34  ;;  %v1059_v62 = vor.u32 1.1754944e-38, %v1058_v8  ;;  %v2709_v31 = vadd.f32 -1.0, %v654_v7  ;;  %v1071_v1 = vand.u32 2147483647, %v3981_v11 }
 0x132   : > { %v2943_v46 = vpop.eup %2942  ;;  %v4036_v40 = vadd.f32 1.0, %v656_v58  ;;  %v1292_v15 = vsel %vm1260_vm1, %v3449_v48, %v1046_v52  ;;  %v1073_v16 = vand.u32 2147483648, %v3981_v11  ;;  %vm1261_vm4 = vcmp.gt.f32.partialorder %v3517_v57, 20.0 }
 0x133   : > { %v1051_v22 = vadd.f32 %v2941_v60, %v1050_v49  ;;  %v1063_v39 = vmul.f32 %v2943_v46, %v3981_v11  ;;  %1419 = vmatmul.f32.gmra.mxu2 %v1292_v15  ;;  %1549 = vmatmul.f32.gmra.mxu0 %v1292_v15  ;;  %vm1262_vm5 = vcmp.gt.f32.partialorder %v3480_v20, 20.0  ;;  %v2710_v36 = vadd.f32 -1.0, %v655_v6 }
 0x134   : > { %2946 = vrcp.f32 %v4036_v40  ;;  %vm1067_vm6 = vweird.f32 %v3981_v11  ;;  %vm1068_vm7 = vweird.f32 %v2943_v46  ;;  %v718_v18 = vmul.f32 %v2709_v31, %v3480_v20 }
 0x135   : > { %v1055_v59 = vsel %vm4031_vm3, %v2941_v60, %v1051_v22  ;;  %v1064_v7 = vsub.f32 1.0, %v1063_v39  ;;  %v1088_v17 = vand.u32 2147483648, %v4007_v35  ;;  %v657_v28 = vmul.f32 %v3738_v23, %v3738_v23  ;;  %vm4057_vm9 = vmor %vm1067_vm6, %vm1068_vm7 }
 0x136   : > { %v1060_v48 = vsel %vm4023_vm2, %v1059_v62, %v1055_v59  ;;  %v2945_v5 = vpop.eup %2944  ;;  %vm4053_vm8 = vcmp.eq.f32.partialorder %v1071_v1, 8.507059e+37  ;;  %v1074_v45 = vor.u32 1.1754944e-38, %v1073_v16  ;;  %v719_v2 = vmul.f32 %v2710_v36, %v3584_v12 }
 0x137   : > { %v1061_v6 = vmul.f32 %v1060_v48, %v717_v13  ;;  %v1065_v32 = vmul.f32 %v2943_v46, %v1064_v7  ;;  %v1078_v60 = vmul.f32 %v2945_v5, %v4007_v35  ;;  %vm1082_vm10 = vweird.f32 %v4007_v35 }
 0x138   : > { %v1086_v23 = vand.u32 2147483647, %v4007_v35  ;;  %vm1263_vm11 = vcmp.gt.f32.partialorder %v3584_v12, 20.0  ;;  %v2711_v25 = vadd.f32 -1.0, %v656_v58  ;;  %v4069_v56 = vadd.f32 1.0, %v657_v28 }
 0x139   : > { %v1293_v29 = vsel %vm1261_vm4, %v3517_v57, %v1061_v6  ;;  %v1066_v33 = vadd.f32 %v2943_v46, %v1065_v32  ;;  %v1079_v53 = vsub.f32 1.0, %v1078_v60  ;;  %vm1083_vm12 = vweird.f32 %v2945_v5 }
 0x13a   : > { %v2947_v43 = vpop.eup %2946  ;;  %1484 = vmatmul.f32.gmra.mxu3 %v1293_v29  ;;  %1614 = vmatmul.f32.gmra.mxu1 %v1293_v29  ;;  %v1089_v24 = vor.u32 1.1754944e-38, %v1088_v17  ;;  %v658_v55 = vmul.f32 %v3734_v47, %v3734_v47  ;;  %vm1097_vm13 = vweird.f32 %v4036_v40  ;;  %2948 = vrcp.f32 %v4069_v56  ;;  %vm4084_vm14 = vmor %vm1082_vm10, %vm1083_vm12 }
 0x13b   : > { %v1070_v8 = vsel %vm4057_vm9, %v2943_v46, %v1066_v33  ;;  %v1093_v57 = vmul.f32 %v2947_v43, %v4036_v40  ;;  %v1080_v9 = vmul.f32 %v2945_v5, %v1079_v53  ;;  %v1101_v34 = vand.u32 2147483647, %v4036_v40 }
 0x13c   : > { %v1075_v50 = vsel %vm4053_vm8, %v1074_v45, %v1070_v8  ;;  %v1103_v58 = vand.u32 2147483648, %v4036_v40  ;;  %vm1098_vm15 = vweird.f32 %v2947_v43  ;;  %v2712_v52 = vadd.f32 -1.0, %v657_v28 }
 0x13d   : > { %v1076_v26 = vmul.f32 %v1075_v50, %v718_v18  ;;  %v1094_v13 = vsub.f32 1.0, %v1093_v57  ;;  %v1081_v49 = vadd.f32 %v2945_v5, %v1080_v9  ;;  %vm1087_vm0 = vcmp.eq.f32.partialorder %v1086_v23, 8.507059e+37  ;;  %vm4101_vm2 = vmor %vm1097_vm13, %vm1098_vm15  ;;  %v5427_v9 = vld [vmem:[#allocation9_spill] sm:$0xff] }
 0x13e   : > { %v720_v38 = vmul.f32 %v2711_v25, %v3581_v0  ;;  %v4089_v46 = vadd.f32 1.0, %v658_v55  ;;  %vm1264_vm1 = vcmp.gt.f32.partialorder %v3581_v0, 20.0  ;;  %v659_v35 = vmul.f32 %v3796_v54, %v3796_v54 }
 0x13f   : > { %v1294_v21 = vsel %vm1262_vm5, %v3480_v20, %v1076_v26  ;;  %v1095_v62 = vmul.f32 %v2947_v43, %v1094_v13  ;;  %v1085_v31 = vsel %vm4084_vm14, %v2945_v5, %v1081_v49  ;;  %vm4105_vm3 = vcmp.eq.f32.partialorder %v1101_v34, 8.507059e+37 }
 0x140   : > { %1422 = vmatmul.f32.gmra.mxu2 %v1294_v21  ;;  %1552 = vmatmul.f32.gmra.mxu0 %v1294_v21  ;;  %v1104_v20 = vor.u32 1.1754944e-38, %v1103_v58  ;;  %2950 = vrcp.f32 %v4089_v46  ;;  %v2949_v22 = vpop.eup %2948  ;;  %v1090_v54 = vsel %vm1087_vm0, %v1089_v24, %v1085_v31  ;;  %v721_v16 = vmul.f32 %v2712_v52, %v3649_v44 }
 0x141   : > { %v1096_v39 = vadd.f32 %v2947_v43, %v1095_v62  ;;  %v1116_v36 = vand.u32 2147483647, %v4069_v56  ;;  %v1091_v59 = vmul.f32 %v1090_v54, %v719_v2  ;;  %v1108_v40 = vmul.f32 %v2949_v22, %v4069_v56 }
 0x142   : > { %vm1112_vm4 = vweird.f32 %v4069_v56  ;;  %v1118_v7 = vand.u32 2147483648, %v4069_v56  ;;  %vm1113_vm5 = vweird.f32 %v2949_v22  ;;  %vm1265_vm6 = vcmp.gt.f32.partialorder %v3649_v44, 20.0 }
 0x143   : > { %v1100_v48 = vsel %vm4101_vm2, %v2947_v43, %v1096_v39  ;;  %v2713_v18 = vadd.f32 -1.0, %v658_v55  ;;  %v4118_v17 = vadd.f32 1.0, %v659_v35  ;;  %v1295_v28 = vsel %vm1263_vm11, %v3584_v12, %v1091_v59  ;;  %vm4141_vm8 = vmor %vm1112_vm4, %vm1113_vm5 }
 0x144   : > { %v1105_v5 = vsel %vm4105_vm3, %v1104_v20, %v1100_v48  ;;  %v1109_v6 = vsub.f32 1.0, %v1108_v40  ;;  %v660_v32 = vmul.f32 %v3794_v3, %v3794_v3  ;;  %1487 = vmatmul.f32.gmra.mxu3 %v1295_v28  ;;  %1617 = vmatmul.f32.gmra.mxu1 %v1295_v28  ;;  %vm4127_vm7 = vcmp.eq.f32.partialorder %v1116_v36, 8.507059e+37 }
 0x145   : > { %v1106_v63 = vmul.f32 %v1105_v5, %v720_v38  ;;  %v2714_v11 = vadd.f32 -1.0, %v659_v35  ;;  %2952 = vrcp.f32 %v4118_v17  ;;  %v1119_v12 = vor.u32 1.1754944e-38, %v1118_v7  ;;  %v5432_v35 = vld [vmem:[#allocation8_spill] sm:$0xff] }
 0x146   : > { %v2951_v2 = vpop.eup %2950  ;;  %v1110_v60 = vmul.f32 %v2949_v22, %v1109_v6  ;;  %v1131_v23 = vand.u32 2147483647, %v4089_v46  ;;  %v4133_v29 = vadd.f32 1.0, %v660_v32  ;;  %v722_v25 = vmul.f32 %v2713_v18, %v3644_v37  ;;  %v4253_v21 = vpop.f32.mrf.mxu2 }
 0x147   : > { %v1296_v3 = vsel %vm1264_vm1, %v3581_v0, %v1106_v63  ;;  %v1123_v43 = vmul.f32 %v2951_v2, %v4089_v46  ;;  %v1133_v53 = vand.u32 2147483648, %v4089_v46  ;;  %vm1266_vm9 = vcmp.gt.f32.partialorder %v3644_v37, 20.0 }
 0x148   : > { %1425 = vmatmul.f32.gmra.mxu2 %v1296_v3  ;;  %v1111_v24 = vadd.f32 %v2949_v22, %v1110_v60  ;;  %1555 = vmatmul.f32.gmra.mxu0 %v1296_v3  ;;  %v1146_v0 = vand.u32 2147483647, %v4118_v17  ;;  %v1148_v55 = vand.u32 2147483648, %v4118_v17  ;;  %2954 = vrcp.f32 %v4133_v29 }
 0x149   : > { %v1124_v56 = vsub.f32 1.0, %v1123_v43  ;;  %vm1127_vm10 = vweird.f32 %v4089_v46  ;;  %vm1128_vm11 = vweird.f32 %v2951_v2  ;;  %v2715_v8 = vadd.f32 -1.0, %v660_v32 }
 0x14a   : > { %v1115_v57 = vsel %vm4141_vm8, %v2949_v22, %v1111_v24  ;;  %vm4155_vm12 = vcmp.eq.f32.partialorder %v1131_v23, 8.507059e+37  ;;  %v723_v34 = vmul.f32 %v2714_v11, %v5427_v9  ;;  %v661_v58 = vmul.f32 %v3832_v41, %v3832_v41  ;;  %vm4165_vm14 = vmor %vm1127_vm10, %vm1128_vm11 }
 0x14b   : > { %v2953_v26 = vpop.eup %2952  ;;  %v1120_v47 = vsel %vm4127_vm7, %v1119_v12, %v1115_v57  ;;  %v1125_v13 = vmul.f32 %v2951_v2, %v1124_v56  ;;  %v1134_v52 = vor.u32 1.1754944e-38, %v1133_v53  ;;  %vm1142_vm13 = vweird.f32 %v4118_v17  ;;  %v4235_v56 = vpop.f32.mrf.mxu0 }
 0x14c   : > { %v1121_v49 = vmul.f32 %v1120_v47, %v721_v16  ;;  %v1138_v46 = vmul.f32 %v2953_v26, %v4118_v17  ;;  %vm4170_vm15 = vcmp.eq.f32.partialorder %v1146_v0, 8.507059e+37  ;;  %v1149_v41 = vor.u32 1.1754944e-38, %v1148_v55 }
 0x14d   : > { %v1126_v62 = vadd.f32 %v2951_v2, %v1125_v13  ;;  %vm1267_vm0 = vcmp.gt.f32.partialorder %v5427_v9, 20.0  ;;  %v724_v31 = vmul.f32 %v2715_v8, %v5432_v35  ;;  %v1161_v1 = vand.u32 2147483647, %v4133_v29  ;;  %v4237_v8 = vpop.f32.mrf.mxu1 }
 0x14e   : > { %v4177_v15 = vadd.f32 1.0, %v661_v58  ;;  %v2955_v20 = vpop.eup %2954  ;;  %v1297_v22 = vsel %vm1265_vm6, %v3649_v44, %v1121_v49  ;;  %v1139_v54 = vsub.f32 1.0, %v1138_v46  ;;  %vm1143_vm1 = vweird.f32 %v2953_v26 }
 0x14f   : > { %v662_v39 = vmul.f32 %v3830_v19, %v3830_v19  ;;  %1490 = vmatmul.f32.gmra.mxu3 %v1297_v22  ;;  %1620 = vmatmul.f32.gmra.mxu1 %v1297_v22  ;;  %v1130_v16 = vsel %vm4165_vm14, %v2951_v2, %v1126_v62  ;;  %v1153_v36 = vmul.f32 %v2955_v20, %v4133_v29  ;;  %vm1157_vm2 = vweird.f32 %v4133_v29  ;;  %vm4194_vm3 = vmor %vm1142_vm13, %vm1143_vm1 }
 0x150   : > { %2956 = vrcp.f32 %v4177_v15  ;;  %v1135_v59 = vsel %vm4155_vm12, %v1134_v52, %v1130_v16  ;;  %v1140_v44 = vmul.f32 %v2953_v26, %v1139_v54  ;;  %v1163_v40 = vand.u32 2147483648, %v4133_v29 }
 0x151   : > { %v2716_v7 = vadd.f32 -1.0, %v661_v58  ;;  %v1136_v48 = vmul.f32 %v1135_v59, %v722_v25  ;;  %v1154_v18 = vsub.f32 1.0, %v1153_v36  ;;  %vm1158_vm4 = vweird.f32 %v2955_v20 }
 0x152   : > { %vm1268_vm5 = vcmp.gt.f32.partialorder %v5432_v35, 20.0  ;;  %v1141_v28 = vadd.f32 %v2953_v26, %v1140_v44  ;;  %vm4199_vm6 = vcmp.eq.f32.partialorder %v1161_v1, 8.507059e+37  ;;  %v1176_v6 = vand.u32 2147483647, %v4177_v15  ;;  %vm4216_vm7 = vmor %vm1157_vm2, %vm1158_vm4  ;;  %v4268_v1 = vpop.f32.mrf.mxu3  ;;  %v1370_v44 = vld [vmem:[%s5367_s4] sm:$0x3] }
 0x153   : > { %v4204_v32 = vadd.f32 1.0, %v662_v39  ;;  %v1298_v17 = vsel %vm1266_vm9, %v3644_v37, %v1136_v48  ;;  %v1155_v63 = vmul.f32 %v2955_v20, %v1154_v18  ;;  %v1178_v45 = vand.u32 2147483648, %v4177_v15 }
 0x154   : > { %v663_v11 = vmul.f32 %v3878_v27, %v3878_v27  ;;  %1428 = vmatmul.f32.gmra.mxu2 %v1298_v17  ;;  %v1145_v2 = vsel %vm4194_vm3, %v2953_v26, %v1141_v28  ;;  %1558 = vmatmul.f32.gmra.mxu0 %v1298_v17  ;;  %v1164_v12 = vor.u32 1.1754944e-38, %v1163_v40  ;;  %v725_v37 = vmul.f32 %v2716_v7, %v3758_v4  ;;  %v1526_v28 = vpop.f32.mrf.mxu0 }
 0x155   : > { %2958 = vrcp.f32 %v4204_v32  ;;  %v1150_v27 = vsel %vm4170_vm15, %v1149_v41, %v1145_v2  ;;  %v1156_v3 = vadd.f32 %v2955_v20, %v1155_v63  ;;  %vm1172_vm8 = vweird.f32 %v4177_v15 }
 0x156   : > { %v2957_v23 = vpop.eup %2956  ;;  %v2717_v33 = vadd.f32 -1.0, %v662_v39  ;;  %v1151_v25 = vmul.f32 %v1150_v27, %v723_v34  ;;  %vm4226_vm9 = vcmp.eq.f32.partialorder %v1176_v6, 8.507059e+37  ;;  %v2718_v53 = vadd.f32 -1.0, %v663_v11  ;;  %v1396_v27 = vpop.f32.mrf.mxu2 }
 0x157   : > { %v1168_v29 = vmul.f32 %v2957_v23, %v4177_v15  ;;  %v1160_v24 = vsel %vm4216_vm7, %v2955_v20, %v1156_v3  ;;  %vm1173_vm10 = vweird.f32 %v2957_v23  ;;  %v1179_v0 = vor.u32 1.1754944e-38, %v1178_v45  ;;  %v1591_v45 = vpop.f32.mrf.mxu1 }
 0x158   : > { %vm1269_vm11 = vcmp.gt.f32.partialorder %v3758_v4, 20.0  ;;  %v4233_v55 = vadd.f32 1.0, %v663_v11  ;;  %v1299_v57 = vsel %vm1267_vm0, %v5427_v9, %v1151_v25  ;;  %v1165_v50 = vsel %vm4199_vm6, %v1164_v12, %v1160_v24  ;;  %vm4261_vm12 = vmor %vm1172_vm8, %vm1173_vm10 }
 0x159   : > { %v1169_v34 = vsub.f32 1.0, %v1168_v29  ;;  %v664_v58 = vmul.f32 %v3862_v14, %v3862_v14  ;;  %1493 = vmatmul.f32.gmra.mxu3 %v1299_v57  ;;  %1623 = vmatmul.f32.gmra.mxu1 %v1299_v57  ;;  %v1166_v26 = vmul.f32 %v1165_v50, %v724_v31  ;;  %v1191_v47 = vand.u32 2147483647, %v4204_v32 }
 0x15a   : > { %v1193_v13 = vand.u32 2147483648, %v4204_v32  ;;  %2960 = vrcp.f32 %v4233_v55  ;;  %v726_v9 = vmul.f32 %v2717_v33, %v3752_v51  ;;  %v1206_v38 = vand.u32 2147483647, %v4233_v55 }
 0x15b   : > { %v2959_v52 = vpop.eup %2958  ;;  %v1170_v49 = vmul.f32 %v2957_v23, %v1169_v34  ;;  %v4251_v46 = vadd.f32 1.0, %v664_v58  ;;  %v1300_v14 = vsel %vm1268_vm5, %v5432_v35, %v1166_v26  ;;  %vm1187_vm13 = vweird.f32 %v4204_v32  ;;  %v1461_v34 = vpop.f32.mrf.mxu3 }
 0x15c   : > { %v1183_v62 = vmul.f32 %v2959_v52, %v4204_v32  ;;  %v1208_v31 = vand.u32 2147483648, %v4233_v55  ;;  %1431 = vmatmul.f32.gmra.mxu2 %v1300_v14  ;;  %1561 = vmatmul.f32.gmra.mxu0 %v1300_v14  ;;  %vm1270_vm14 = vcmp.gt.f32.partialorder %v3752_v51, 20.0  ;;  %v4272_v35 = vmul.f32 %v2718_v53, %v3792_v30 }
 0x15d   : > { %v1171_v20 = vadd.f32 %v2957_v23, %v1170_v49  ;;  %v2719_v15 = vadd.f32 -1.0, %v664_v58  ;;  %2962 = vrcp.f32 %v4251_v46  ;;  %vm1188_vm15 = vweird.f32 %v2959_v52 }
 0x15e   : > { %v1184_v22 = vsub.f32 1.0, %v1183_v62  ;;  %vm4275_vm0 = vcmp.eq.f32.partialorder %v1191_v47, 8.507059e+37  ;;  %v1194_v39 = vor.u32 1.1754944e-38, %v1193_v13  ;;  %vm1202_vm1 = vweird.f32 %v4233_v55  ;;  %vm4297_vm3 = vmor %vm1187_vm13, %vm1188_vm15 }
 0x15f   : > { %v1175_v16 = vsel %vm4261_vm12, %v2957_v23, %v1171_v20  ;;  %vm4282_vm2 = vcmp.eq.f32.partialorder %v1206_v38, 8.507059e+37  ;;  %v665_v59 = vmul.f32 %v4017_v61, %v4017_v61  ;;  %v1209_v19 = vor.u32 1.1754944e-38, %v1208_v31 }
 0x160   : > { %v2961_v40 = vpop.eup %2960  ;;  %v1180_v7 = vsel %vm4226_vm9, %v1179_v0, %v1175_v16  ;;  %v1185_v48 = vmul.f32 %v2959_v52, %v1184_v22  ;;  %v1221_v18 = vand.u32 2147483647, %v4251_v46  ;;  %v4303_v17 = vmul.f32 %v2719_v15, %v3787_v10 }
 0x161   : > { %v1181_v5 = vmul.f32 %v1180_v7, %v725_v37  ;;  %v1198_v61 = vmul.f32 %v2961_v40, %v4233_v55  ;;  %v1223_v63 = vand.u32 2147483648, %v4251_v46  ;;  %vm1271_vm4 = vcmp.gt.f32.partialorder %v3792_v30, 20.0 }
 0x162   : > { %v1186_v11 = vadd.f32 %v2959_v52, %v1185_v48  ;;  %vm1217_vm5 = vweird.f32 %v4251_v46  ;;  %v4308_v2 = vadd.f32 1.0, %v665_v59  ;;  %v4310_v32 = vperm.slane %v1370_v44, 1 }
 0x163   : > { %v2963_v60 = vpop.eup %2962  ;;  %v1301_v12 = vsel %vm1269_vm11, %v3758_v4, %v1181_v5  ;;  %v1199_v37 = vsub.f32 1.0, %v1198_v61  ;;  %vm1203_vm6 = vweird.f32 %v2961_v40  ;;  %v4315_v23 = vperm.slane %v1370_v44, 0 }
 0x164   : > { %1496 = vmatmul.f32.gmra.mxu3 %v1301_v12  ;;  %1626 = vmatmul.f32.gmra.mxu1 %v1301_v12  ;;  %v1190_v3 = vsel %vm4297_vm3, %v2959_v52, %v1186_v11  ;;  %v1213_v33 = vmul.f32 %v2963_v60, %v4251_v46  ;;  %vm4320_vm7 = vcmp.eq.f32.partialorder %v1221_v18, 8.507059e+37  ;;  %2964 = vrcp.f32 %v4308_v2  ;;  %vm4331_vm9 = vmor %vm1202_vm1, %vm1203_vm6 }
 0x165   : > { %v1195_v4 = vsel %vm4275_vm0, %v1194_v39, %v1190_v3  ;;  %v1200_v29 = vmul.f32 %v2961_v40, %v1199_v37  ;;  %v1224_v43 = vor.u32 1.1754944e-38, %v1223_v63  ;;  %vm1272_vm8 = vcmp.gt.f32.partialorder %v3787_v10, 20.0 }
 0x166   : > { %v2720_v53 = vadd.f32 -1.0, %v665_v59  ;;  %v1196_v24 = vmul.f32 %v1195_v4, %v726_v9  ;;  %v1214_v57 = vsub.f32 1.0, %v1213_v33  ;;  %vm1218_vm10 = vweird.f32 %v2963_v60  ;;  %v1399_v59 = vpop.f32.mrf.mxu2 }
 0x167   : > { %v1524_v50 = vadd.f32 %v4235_v56, %v4310_v32  ;;  %v1201_v58 = vadd.f32 %v2961_v40, %v1200_v29  ;;  %vm1232_vm11 = vweird.f32 %v4308_v2  ;;  %v1394_v26 = vadd.f32 %v4253_v21, %v4315_v23  ;;  %v1529_v56 = vpop.f32.mrf.mxu0  ;;  %vm4353_vm12 = vmor %vm1217_vm5, %vm1218_vm10 }
 0x168   : > { %v1527_v47 = vadd.f32 %v1526_v28, %v4310_v32  ;;  %v1302_v55 = vsel %vm1270_vm14, %v3752_v51, %v1196_v24  ;;  %v1215_v13 = vmul.f32 %v2963_v60, %v1214_v57  ;;  %v1236_v52 = vand.u32 2147483647, %v4308_v2 }
 0x169   : > { %v4346_v49 = vadd.f32 %v4237_v8, %v1524_v50  ;;  %1434 = vmatmul.f32.gmra.mxu2 %v1302_v55  ;;  %v1205_v9 = vsel %vm4331_vm9, %v2961_v40, %v1201_v58  ;;  %1564 = vmatmul.f32.gmra.mxu0 %v1302_v55  ;;  %v1238_v51 = vand.u32 2147483648, %v4308_v2  ;;  %v4359_v21 = vadd.f32 %v4268_v1, %v1394_v26  ;;  %v1594_v1 = vpop.f32.mrf.mxu1 }
 0x16a   : > { %v4361_v8 = vadd.f32 %v1591_v45, %v1527_v47  ;;  %v2965_v14 = vpop.eup %2964  ;;  %v1210_v41 = vsel %vm4282_vm2, %v1209_v19, %v1205_v9  ;;  %v1216_v62 = vadd.f32 %v2963_v60, %v1215_v13  ;;  %v1397_v46 = vadd.f32 %v1396_v27, %v4315_v23  ;;  %v1464_v45 = vpop.f32.mrf.mxu3 }
 0x16b   : > { %v1637_v31 = vmin.f32 %v4346_v49, 20.0  ;;  %v1211_v20 = vmul.f32 %v1210_v41, %v4272_v35  ;;  %v1228_v15 = vmul.f32 %v2965_v14, %v4308_v2  ;;  %vm1233_vm13 = vweird.f32 %v2965_v14 }
 0x16c   : > { %v1636_v22 = vmin.f32 %v4359_v21, 20.0  ;;  %v1220_v54 = vsel %vm4353_vm12, %v2963_v60, %v1216_v62  ;;  %v1639_v16 = vmin.f32 %v4361_v8, 20.0  ;;  %v4373_v36 = vadd.f32 %v1461_v34, %v1397_v46  ;;  %vm4391_vm14 = vmor %vm1232_vm11, %vm1233_vm13 }
 0x16d   : > { %v1670_v39 = vmul.f32 1.442695, %v1637_v31  ;;  %v1303_v44 = vsel %vm1271_vm4, %v3792_v30, %v1211_v20  ;;  %v1225_v35 = vsel %vm4320_vm7, %v1224_v43, %v1220_v54  ;;  %v1229_v40 = vsub.f32 1.0, %v1228_v15 }
 0x16e   : > { %v1668_v7 = vmul.f32 1.442695, %v1636_v22  ;;  %1499 = vmatmul.f32.gmra.mxu3 %v1303_v44  ;;  %1629 = vmatmul.f32.gmra.mxu1 %v1303_v44  ;;  %v1226_v48 = vmul.f32 %v1225_v35, %v4303_v17  ;;  %v1638_v19 = vmin.f32 %v4373_v36, 20.0  ;;  %v1530_v28 = vadd.f32 %v1529_v56, %v4310_v32 }
 0x16f   : > { %2966 = vpow2.f32 %v1670_v39  ;;  %v1230_v18 = vmul.f32 %v2965_v14, %v1229_v40  ;;  %v1400_v5 = vadd.f32 %v1399_v59, %v4315_v23  ;;  %v729_v6 = vmul.f32 %v2720_v53, %v3844_v42  ;;  %v1532_v11 = vpop.f32.mrf.mxu0 }
 0x170   : > { %2968 = vpow2.f32 %v1668_v7  ;;  %v1304_v30 = vsel %vm1272_vm8, %v3787_v10, %v1226_v48  ;;  %v1239_v17 = vor.u32 1.1754944e-38, %v1238_v51  ;;  %v1674_v63 = vmul.f32 1.442695, %v1639_v16 }
 0x171   : > { %1437 = vmatmul.f32.gmra.mxu2 %v1304_v30  ;;  %v1231_v60 = vadd.f32 %v2965_v14, %v1230_v18  ;;  %vm1237_vm15 = vcmp.eq.f32.partialorder %v1236_v52, 8.507059e+37  ;;  %v4395_v12 = vadd.f32 %v1594_v1, %v1530_v28  ;;  %v4397_v37 = vadd.f32 %v1464_v45, %v1400_v5  ;;  %v1597_v0 = vpop.f32.mrf.mxu1 }
 0x172   : > { %v1672_v10 = vmul.f32 1.442695, %v1638_v19  ;;  %v1533_v27 = vadd.f32 %v1532_v11, %v4310_v32  ;;  %vm1273_vm0 = vcmp.gt.f32.partialorder %v3844_v42, 20.0  ;;  %2970 = vpow2.f32 %v1674_v63  ;;  %v1402_v34 = vpop.f32.mrf.mxu2 }
 0x173   : > { %v1235_v2 = vsel %vm4391_vm14, %v2965_v14, %v1231_v60  ;;  %v1641_v3 = vmin.f32 %v4395_v12, 20.0  ;;  %v1640_v33 = vmin.f32 %v4397_v37, 20.0  ;;  %v1403_v55 = vadd.f32 %v1402_v34, %v4315_v23 }
 0x174   : > { %v1240_v4 = vsel %vm1237_vm15, %v1239_v17, %v1235_v2  ;;  %2972 = vpow2.f32 %v1672_v10  ;;  %v4405_v50 = vadd.f32 %v1597_v0, %v1533_v27  ;;  %vm2372_vm3 = vcmp.gt.f32.partialorder %v4359_v21, 20.0 }
 0x175   : > { %v2967_v25 = vpop.eup %2966  ;;  %v1241_v43 = vmul.f32 %v1240_v4, %v729_v6  ;;  %v1678_v53 = vmul.f32 1.442695, %v1641_v3  ;;  %v1676_v24 = vmul.f32 1.442695, %v1640_v33  ;;  %vm2373_vm6 = vcmp.gt.f32.partialorder %v4346_v49, 20.0 }
 0x176   : > { %v2969_v29 = vpop.eup %2968  ;;  %v1733_v26 = vadd.f32 1.0, %v2967_v25  ;;  %v1643_v47 = vmin.f32 %v4405_v50, 20.0  ;;  %v1467_v9 = vpop.f32.mrf.mxu3  ;;  %vm2375_vm15 = vcmp.gt.f32.partialorder %v4361_v8, 20.0 }
 0x177   : > { %v1732_v57 = vadd.f32 1.0, %v2969_v29  ;;  %v1305_v58 = vsel %vm1273_vm0, %v3844_v42, %v1241_v43  ;;  %2974 = vpow2.f32 %v1678_v53  ;;  %v4410_v14 = vadd.f32 %v1467_v9, %v1403_v55 }
 0x178   : > { %1502 = vmatmul.f32.gmra.mxu3 %v1305_v58  ;;  %1632 = vmatmul.f32.gmra.mxu1 %v1305_v58  ;;  %2976 = vpow2.f32 %v1676_v24  ;;  %v2971_v13 = vpop.eup %2970  ;;  %v1682_v56 = vmul.f32 1.442695, %v1643_v47  ;;  %v1765_v51 = vmul.f32 %v1733_v26, %v1733_v26 }
 0x179   : > { %1567 = vmatmul.f32.vlgmr.msra.gmra.mxu2 %v1304_v30  ;;  %v1764_v52 = vmul.f32 %v1732_v57, %v1732_v57  ;;  %v1735_v42 = vadd.f32 1.0, %v2971_v13  ;;  %v1642_v15 = vmin.f32 %v4410_v14, 20.0 }
 0x17a   : > { %v2973_v38 = vpop.eup %2972  ;;  %2978 = vpow2.f32 %v1682_v56  ;;  %v4416_v1 = vadd.f32 1.0, %v1765_v51  ;;  %v2722_v40 = vadd.f32 -1.0, %v1765_v51 }
 0x17b   : > { %v4412_v31 = vadd.f32 1.0, %v1764_v52  ;;  %v1535_v46 = vpop.f32.mrf.mxu0  ;;  %v1734_v20 = vadd.f32 1.0, %v2973_v38  ;;  %v1767_v16 = vmul.f32 %v1735_v42, %v1735_v42  ;;  %v1680_v44 = vmul.f32 1.442695, %v1642_v15 }
 0x17c   : > { %v1536_v22 = vadd.f32 %v1535_v46, %v4310_v32  ;;  %v1600_v39 = vpop.f32.mrf.mxu1  ;;  %v2721_v18 = vadd.f32 -1.0, %v1764_v52  ;;  %v4427_v45 = vmul.f32 %v2722_v40, %v4346_v49  ;;  %vm1912_vm8 = vweird.f32 %v4416_v1 }
 0x17d   : > { %v2975_v41 = vpop.eup %2974  ;;  %2980 = vrcp.f32 %v4412_v31  ;;  %v1766_v7 = vmul.f32 %v1734_v20, %v1734_v20  ;;  %v4423_v30 = vadd.f32 1.0, %v1767_v16  ;;  %v2724_v11 = vadd.f32 -1.0, %v1767_v16 }
 0x17e   : > { %v2977_v62 = vpop.eup %2976  ;;  %v1737_v54 = vadd.f32 1.0, %v2975_v41  ;;  %v4418_v35 = vadd.f32 %v1600_v39, %v1536_v22  ;;  %2982 = vpow2.f32 %v1680_v44  ;;  %v4434_v3 = vmul.f32 %v2721_v18, %v4359_v21 }
 0x17f   : > { %v1736_v59 = vadd.f32 1.0, %v2977_v62  ;;  %2984 = vrcp.f32 %v4416_v1  ;;  %v4429_v60 = vadd.f32 1.0, %v1766_v7  ;;  %v2723_v29 = vadd.f32 -1.0, %v1766_v7 }
 0x180   : > { %v1645_v48 = vmin.f32 %v4418_v35, 20.0  ;;  %v2979_v19 = vpop.eup %2978  ;;  %v1769_v28 = vmul.f32 %v1737_v54, %v1737_v54  ;;  %v4447_v47 = vmul.f32 %v2724_v11, %v4361_v8  ;;  %v1901_v15 = vand.u32 2147483647, %v4412_v31 }
 0x181   : > { %v1405_v5 = vpop.f32.mrf.mxu2  ;;  %v1768_v6 = vmul.f32 %v1736_v59, %v1736_v59  ;;  %v1739_v61 = vadd.f32 1.0, %v2979_v19  ;;  %v4457_v38 = vmul.f32 %v2723_v29, %v4373_v36  ;;  %vm1897_vm1 = vweird.f32 %v4412_v31 }
 0x182   : > { %v1686_v17 = vmul.f32 1.442695, %v1645_v48  ;;  %v1406_v63 = vadd.f32 %v1405_v5, %v4315_v23  ;;  %v1470_v27 = vpop.f32.mrf.mxu3  ;;  %v4436_v33 = vadd.f32 1.0, %v1769_v28  ;;  %v2726_v43 = vadd.f32 -1.0, %v1769_v28 }
 0x183   : > { %v1771_v10 = vmul.f32 %v1739_v61, %v1739_v61  ;;  %v4431_v2 = vpop.eup %2980  ;;  %v4441_v53 = vadd.f32 1.0, %v1768_v6  ;;  %v2725_v0 = vadd.f32 -1.0, %v1768_v6  ;;  %v1903_v44 = vand.u32 2147483648, %v4412_v31 }
 0x184   : > { %2986 = vpow2.f32 %v1686_v17  ;;  %v4438_v25 = vadd.f32 %v1470_v27, %v1406_v63  ;;  %v2983_v4 = vpop.eup %2982  ;;  %v1893_v9 = vmul.f32 %v4431_v2, %v4412_v31  ;;  %v4460_v51 = vmul.f32 %v2726_v43, %v4395_v12  ;;  %v2436_v31 = vld [vmem:[%s5368_s5] sm:$0x3] }
 0x185   : > { %2988 = vrcp.f32 %v4423_v30  ;;  %v4443_v24 = vpop.eup %2984  ;;  %v2728_v57 = vadd.f32 -1.0, %v1771_v10  ;;  %v1738_v34 = vadd.f32 1.0, %v2983_v4  ;;  %v4450_v55 = vadd.f32 1.0, %v1771_v10 }
 0x186   : > { %v1644_v58 = vmin.f32 %v4438_v25, 20.0  ;;  %2990 = vrcp.f32 %v4429_v60  ;;  %v1908_v41 = vmul.f32 %v4443_v24, %v4416_v1  ;;  %v4466_v62 = vmul.f32 %v2725_v0, %v4397_v37 }
 0x187   : > { %v1538_v26 = vpop.f32.mrf.mxu0  ;;  %2992 = vrcp.f32 %v4436_v33  ;;  %v1770_v52 = vmul.f32 %v1738_v34, %v1738_v34  ;;  %v4469_v46 = vmul.f32 %v2728_v57, %v4405_v50  ;;  %v1894_v39 = vsub.f32 1.0, %v1893_v9 }
 0x188   : > { %v1539_v13 = vadd.f32 %v1538_v26, %v4310_v32  ;;  %v1684_v56 = vmul.f32 1.442695, %v1644_v58  ;;  %2994 = vrcp.f32 %v4441_v53  ;;  %vm1898_vm2 = vweird.f32 %v4431_v2 }
 0x189   : > { %v2727_v16 = vadd.f32 -1.0, %v1770_v52  ;;  %v1909_v40 = vsub.f32 1.0, %v1908_v41  ;;  %v1895_v28 = vmul.f32 %v4431_v2, %v1894_v39  ;;  %v4488_v6 = vadd.f32 1.0, %v1770_v52  ;;  %vm1899_vm7 = vmor %vm1897_vm1, %vm1898_vm2 }
 0x18a   : > { %v2987_v42 = vpop.eup %2986  ;;  %2996 = vpow2.f32 %v1684_v56  ;;  %v1603_v20 = vpop.f32.mrf.mxu1  ;;  %vm4490_vm4 = vcmp.eq.f32.partialorder %v1901_v15, 8.507059e+37  ;;  %vm1913_vm5 = vweird.f32 %v4443_v24  ;;  %v1916_v4 = vand.u32 2147483647, %v4416_v1 }
 0x18b   : > { %v4472_v22 = vpop.eup %2988  ;;  %2998 = vrcp.f32 %v4450_v55  ;;  %v4475_v54 = vadd.f32 %v1603_v20, %v1539_v13  ;;  %v1741_v48 = vadd.f32 1.0, %v2987_v42  ;;  %v1910_v17 = vmul.f32 %v4443_v24, %v1909_v40  ;;  %vm1914_vm9 = vmor %vm1912_vm8, %vm1913_vm5 }
 0x18c   : > { %v4480_v7 = vpop.eup %2990  ;;  %v1896_v27 = vadd.f32 %v4431_v2, %v1895_v28  ;;  %v1918_v29 = vand.u32 2147483648, %v4416_v1  ;;  %v1904_v57 = vor.u32 1.1754944e-38, %v1903_v44  ;;  %vm1917_vm10 = vcmp.eq.f32.partialorder %v1916_v4, 8.507059e+37 }
 0x18d   : > { %v1408_v59 = vpop.f32.mrf.mxu2  ;;  %v1647_v19 = vmin.f32 %v4475_v54, 20.0  ;;  %v4486_v5 = vpop.eup %2992  ;;  %v1911_v34 = vadd.f32 %v4443_v24, %v1910_v17  ;;  %v1773_v26 = vmul.f32 %v1741_v48, %v1741_v48  ;;  %v4524_v15 = vperm.slane %v2436_v31, 0 }
 0x18e   : > { %v1409_v18 = vadd.f32 %v1408_v59, %v4315_v23  ;;  %v4497_v63 = vpop.eup %2994  ;;  %v1900_v52 = vsel %vm1899_vm7, %v4431_v2, %v1896_v27  ;;  %v1919_v42 = vor.u32 1.1754944e-38, %v1918_v29  ;;  %v4526_v40 = vperm.slane %v2436_v31, 1 }
 0x18f   : > { %v1690_v11 = vmul.f32 1.442695, %v1647_v19  ;;  %v1905_v1 = vsel %vm4490_vm4, %v1904_v57, %v1900_v52  ;;  %v1915_v41 = vsel %vm1914_vm9, %v4443_v24, %v1911_v34  ;;  %v1923_v48 = vmul.f32 %v4480_v7, %v4429_v60 }
 0x190   : > { %v1473_v10 = vpop.f32.mrf.mxu3  ;;  %v2997_v43 = vpop.eup %2996  ;;  %v1906_v2 = vmul.f32 %v1905_v1, %v4434_v3  ;;  %v1920_v44 = vsel %vm1917_vm10, %v1919_v42, %v1915_v41  ;;  %v4531_v19 = vmul.f32 %v2727_v16, %v4410_v14  ;;  %vm1928_vm11 = vweird.f32 %v4480_v7 }
 0x191   : > { %v4502_v0 = vadd.f32 %v1473_v10, %v1409_v18  ;;  %v4510_v58 = vpop.eup %2998  ;;  %v1740_v13 = vadd.f32 1.0, %v2997_v43  ;;  %3000 = vpow2.f32 %v1690_v11  ;;  %v1921_v3 = vmul.f32 %v1920_v44, %v4427_v45 }
 0x192   : > { %3002 = vrcp.f32 %v4488_v6  ;;  %v2730_v18 = vadd.f32 -1.0, %v1773_v26  ;;  %v2404_v28 = vsel %vm2372_vm3, %v4359_v21, %v1906_v2  ;;  %v1924_v61 = vsub.f32 1.0, %v1923_v48 }
 0x193   : > { %v1646_v56 = vmin.f32 %v4502_v0, 20.0  ;;  %v4540_v11 = vadd.f32 1.0, %v1773_v26  ;;  %v1772_v10 = vmul.f32 %v1740_v13, %v1740_v13  ;;  %v2405_v27 = vsel %vm2373_vm6, %v4346_v49, %v1921_v3 }
 0x194   : > { %v1541_v9 = vpop.f32.mrf.mxu0  ;;  %v2442_v45 = vmul.f32 %v4524_v15, %v2404_v28  ;;  %v2443_v29 = vmul.f32 %v4526_v40, %v2405_v27  ;;  %v1925_v57 = vmul.f32 %v4480_v7, %v1924_v61  ;;  %v1931_v26 = vand.u32 2147483647, %v4429_v60 }
 0x195   : > { %v1542_v20 = vadd.f32 %v1541_v9, %v4310_v32  ;;  %v1688_v39 = vmul.f32 1.442695, %v1646_v56  ;;  %vm1927_vm12 = vweird.f32 %v4429_v60  ;;  %v1933_v49 = vand.u32 2147483648, %v4429_v60 }
 0x196   : > { %v1606_v59 = vpop.f32.mrf.mxu1  ;;  %v2474_v13 = vadd.f32 %v2443_v29, %v2442_v45  ;;  %v1926_v31 = vadd.f32 %v4480_v7, %v1925_v57  ;;  %v2729_v9 = vadd.f32 -1.0, %v1772_v10  ;;  %vm4559_vm13 = vmor %vm1927_vm12, %vm1928_vm11  ;;  %vm1932_vm14 = vcmp.eq.f32.partialorder %v1931_v26, 8.507059e+37 }
 0x197   : > { %v4534_v24 = vadd.f32 %v1606_v59, %v1542_v20  ;;  %3004 = vpow2.f32 %v1688_v39  ;;  %v3001_v17 = vpop.eup %3000  ;;  %v1938_v20 = vmul.f32 %v4472_v22, %v4423_v30  ;;  %v1934_v59 = vor.u32 1.1754944e-38, %v1933_v49 }
 0x198   : > { %v1743_v4 = vadd.f32 1.0, %v3001_v17  ;;  %v4555_v56 = vpop.eup %3002  ;;  %2475 = vadd.xlane.f32.xlu0 %v2474_v13  ;;  %v1930_v60 = vsel %vm4559_vm13, %v4480_v7, %v1926_v31  ;;  %v4571_v61 = vmul.f32 %v2730_v18, %v4418_v35  ;;  %v4574_v17 = vadd.f32 1.0, %v1772_v10 }
 0x199   : > { %v1649_v16 = vmin.f32 %v4534_v24, 20.0  ;;  %v1939_v28 = vsub.f32 1.0, %v1938_v20  ;;  %vm1943_vm0 = vweird.f32 %v4472_v22  ;;  %v1946_v18 = vand.u32 2147483647, %v4423_v30 }
 0x19a   : > { %v1411_v43 = vpop.f32.mrf.mxu2  ;;  %v1775_v1 = vmul.f32 %v1743_v4, %v1743_v4  ;;  %v1948_v57 = vand.u32 2147483648, %v4423_v30  ;;  %v4583_v10 = vmul.f32 %v2729_v9, %v4438_v25  ;;  %vm1942_vm1 = vweird.f32 %v4423_v30 }
 0x19b   : > { %v1694_v21 = vmul.f32 1.442695, %v1649_v16  ;;  %v1412_v34 = vadd.f32 %v1411_v43, %v4315_v23  ;;  %v1935_v16 = vsel %vm1932_vm14, %v1934_v59, %v1930_v60  ;;  %v1940_v45 = vmul.f32 %v4472_v22, %v1939_v28  ;;  %vm1944_vm3 = vmor %vm1942_vm1, %vm1943_vm0 }
 0x19c   : > { %v1476_v52 = vpop.f32.mrf.mxu3  ;;  %v2732_v27 = vadd.f32 -1.0, %v1775_v1  ;;  %v1936_v7 = vmul.f32 %v1935_v16, %v4457_v38  ;;  %vm2374_vm2 = vcmp.gt.f32.partialorder %v4373_v36, 20.0  ;;  %v1949_v49 = vor.u32 1.1754944e-38, %v1948_v57 }
 0x19d   : > { %v4557_v41 = vadd.f32 %v1476_v52, %v1412_v34  ;;  %v3005_v2 = vpop.eup %3004  ;;  %3006 = vpow2.f32 %v1694_v21  ;;  %v4585_v21 = vadd.f32 1.0, %v1775_v1  ;;  %v1941_v26 = vadd.f32 %v4472_v22, %v1940_v45 }
 0x19e   : > { %v1544_v39 = vpop.f32.mrf.mxu0  ;;  %v1742_v44 = vadd.f32 1.0, %v3005_v2  ;;  %3008 = vrcp.f32 %v4540_v11  ;;  %v4594_v52 = vmul.f32 %v2732_v27, %v4475_v54  ;;  %v2406_v9 = vsel %vm2374_vm2, %v4373_v36, %v1936_v7 }
 0x19f   : > { %v1648_v48 = vmin.f32 %v4557_v41, 20.0  ;;  %v1545_v3 = vadd.f32 %v1544_v39, %v4310_v32  ;;  %v1945_v20 = vsel %vm1944_vm3, %v4472_v22, %v1941_v26  ;;  %vm1947_vm4 = vcmp.eq.f32.partialorder %v1946_v18, 8.507059e+37 }
 0x1a0   : > { %v1774_v29 = vmul.f32 %v1742_v44, %v1742_v44  ;;  %v1950_v39 = vsel %vm1947_vm4, %v1949_v49, %v1945_v20  ;;  %v1953_v60 = vmul.f32 %v4497_v63, %v4441_v53  ;;  %vm1958_vm5 = vweird.f32 %v4497_v63 }
 0x1a1   : > { %v1692_v4 = vmul.f32 1.442695, %v1648_v48  ;;  %v1951_v36 = vmul.f32 %v1950_v39, %v4447_v47  ;;  %v2444_v48 = vmul.f32 %v4524_v15, %v2406_v9  ;;  %vm1957_vm6 = vweird.f32 %v4441_v53 }
 0x1a2   : > { %v1609_v43 = vpop.f32.mrf.mxu1  ;;  %v2731_v42 = vadd.f32 -1.0, %v1774_v29  ;;  %v4607_v59 = vadd.f32 1.0, %v1774_v29  ;;  %v1968_v49 = vmul.f32 %v4486_v5, %v4436_v33  ;;  %vm1959_vm7 = vmor %vm1957_vm6, %vm1958_vm5  ;;  %vm1973_vm9 = vweird.f32 %v4486_v5 }
 0x1a3   : > { %3010 = vpow2.f32 %v1692_v4  ;;  %v4587_v34 = vadd.f32 %v1609_v43, %v1545_v3  ;;  %v3007_v38 = vpop.eup %3006  ;;  %v1954_v4 = vsub.f32 1.0, %v1953_v60  ;;  %v2407_v47 = vsel %vm2375_vm15, %v4361_v8, %v1951_v36 }
 0x1a4   : > { %3012 = vrcp.f32 %v4574_v17  ;;  %v1414_v13 = vpop.f32.mrf.mxu2  ;;  %v4600_v1 = vpop.eup %3008  ;;  %v1745_v44 = vadd.f32 1.0, %v3007_v38  ;;  %v4617_v45 = vmul.f32 %v2731_v42, %v4502_v0  ;;  %v2445_v43 = vmul.f32 %v4526_v40, %v2407_v47 }
 0x1a5   : > { %5461 = vst [vmem:[#allocation9_spill] sm:$0xff] %v4587_v34  ;;  %v1651_v31 = vmin.f32 %v4587_v34, 20.0  ;;  %v1415_v30 = vadd.f32 %v1414_v13, %v4315_v23  ;;  %3014 = vrcp.f32 %v4585_v21  ;;  %v1955_v57 = vmul.f32 %v4497_v63, %v1954_v4 }
 0x1a6   : > { %v1961_v38 = vand.u32 2147483647, %v4441_v53  ;;  %v1777_v26 = vmul.f32 %v1745_v44, %v1745_v44  ;;  %v2477_v9 = vadd.f32 %v2445_v43, %v2444_v48  ;;  %v1969_v36 = vsub.f32 1.0, %v1968_v49 }
 0x1a7   : > { %v1698_v2 = vmul.f32 1.442695, %v1651_v31  ;;  %v1963_v31 = vand.u32 2147483648, %v4441_v53  ;;  %vm1972_vm10 = vweird.f32 %v4436_v33  ;;  %vm2376_vm11 = vcmp.gt.f32.partialorder %v4397_v37, 20.0 }
 0x1a8   : > { %v1479_v3 = vpop.f32.mrf.mxu3  ;;  %v1547_v28 = vpop.f32.mrf.mxu0  ;;  %vm1962_vm8 = vcmp.eq.f32.partialorder %v1961_v38, 8.507059e+37  ;;  %2478 = vadd.xlane.f32.xlu0 %v2477_v9  ;;  %v4641_v48 = vadd.f32 -1.0, %v1777_v26  ;;  %vm1974_vm12 = vmor %vm1972_vm10, %vm1973_vm9  ;;  %vm2377_vm14 = vcmp.gt.f32.partialorder %v4395_v12, 20.0  ;;  %vm1987_vm15 = vweird.f32 %v4488_v6 }
 0x1a9   : > { %v3011_v22 = vpop.eup %3010  ;;  %3016 = vpow2.f32 %v1698_v2  ;;  %v4611_v16 = vadd.f32 %v1479_v3, %v1415_v30  ;;  %v1548_v27 = vadd.f32 %v1547_v28, %v4310_v32  ;;  %v1956_v30 = vadd.f32 %v4497_v63, %v1955_v57 }
 0x1aa   : > { %v4614_v7 = vpop.eup %3012  ;;  %v1744_v29 = vadd.f32 1.0, %v3011_v22  ;;  %3018 = vrcp.f32 %v4607_v59  ;;  %v1964_v39 = vor.u32 1.1754944e-38, %v1963_v31  ;;  %v4643_v3 = vadd.f32 1.0, %v1777_v26 }
 0x1ab   : > { %5462 = vst [vmem:[#allocation8_spill] sm:$0xff] %v4611_v16  ;;  %v1650_v18 = vmin.f32 %v4611_v16, 20.0  ;;  %v4631_v8 = vpop.eup %3014  ;;  %v1960_v44 = vsel %vm1959_vm7, %v4497_v63, %v1956_v30  ;;  %v1978_v63 = vand.u32 2147483648, %v4436_v33  ;;  %vm1988_vm0 = vweird.f32 %v4555_v56 }
 0x1ac   : > { %v1776_v2 = vmul.f32 %v1744_v29, %v1744_v29  ;;  %v1965_v22 = vsel %vm1962_vm8, %v1964_v39, %v1960_v44  ;;  %v1970_v29 = vmul.f32 %v4486_v5, %v1969_v36  ;;  %vm1989_vm1 = vmor %vm1987_vm15, %vm1988_vm0  ;;  %vm2003_vm3 = vweird.f32 %v4510_v58 }
 0x1ad   : > { %v1612_v13 = vpop.f32.mrf.mxu1  ;;  %v1696_v42 = vmul.f32 1.442695, %v1650_v18  ;;  %v1966_v4 = vmul.f32 %v1965_v22, %v4466_v62  ;;  %v1976_v18 = vand.u32 2147483647, %v4436_v33  ;;  %v1979_v31 = vor.u32 1.1754944e-38, %v1978_v63 }
 0x1ae   : > { %v4633_v20 = vadd.f32 %v1612_v13, %v1548_v27  ;;  %v4648_v47 = vadd.f32 1.0, %v1776_v2  ;;  %v1417_v57 = vpop.f32.mrf.mxu2  ;;  %v1971_v26 = vadd.f32 %v4486_v5, %v1970_v29  ;;  %v2733_v13 = vadd.f32 -1.0, %v1776_v2 }
 0x1af   : > { %v3017_v53 = vpop.eup %3016  ;;  %3020 = vpow2.f32 %v1696_v42  ;;  %v2408_v49 = vsel %vm2376_vm11, %v4397_v37, %v1966_v4  ;;  %vm1977_vm13 = vcmp.eq.f32.partialorder %v1976_v18, 8.507059e+37  ;;  %v1418_v30 = vadd.f32 %v1417_v57, %v4315_v23 }
 0x1b0   : > { %v1653_v60 = vmin.f32 %v4633_v20, 20.0  ;;  %v1747_v28 = vadd.f32 1.0, %v3017_v53  ;;  %v1550_v38 = vpop.f32.mrf.mxu0  ;;  %v4655_v62 = vpop.eup %3018  ;;  %v1975_v42 = vsel %vm1974_vm12, %v4486_v5, %v1971_v26  ;;  %v1983_v5 = vmul.f32 %v4555_v56, %v4488_v6 }
 0x1b1   : > { %v1551_v39 = vadd.f32 %v1550_v38, %v4310_v32  ;;  %v2446_v4 = vmul.f32 %v4524_v15, %v2408_v49  ;;  %vm2002_vm4 = vweird.f32 %v4450_v55  ;;  %vm2378_vm5 = vcmp.gt.f32.partialorder %v4410_v14, 20.0 }
 0x1b2   : > { %v1702_v27 = vmul.f32 1.442695, %v1653_v60  ;;  %v1779_v43 = vmul.f32 %v1747_v28, %v1747_v28  ;;  %v1980_v60 = vsel %vm1977_vm13, %v1979_v31, %v1975_v42  ;;  %v1984_v57 = vsub.f32 1.0, %v1983_v5  ;;  %vm2004_vm6 = vmor %vm2002_vm4, %vm2003_vm3 }
 0x1b3   : > { %v1482_v44 = vpop.f32.mrf.mxu3  ;;  %v1981_v36 = vmul.f32 %v1980_v60, %v4460_v51  ;;  %v4696_v5 = vmul.f32 %v2733_v13, %v4557_v41  ;;  %vm2379_vm8 = vcmp.gt.f32.partialorder %v4405_v50, 20.0  ;;  %vm2018_vm9 = vweird.f32 %v4614_v7 }
 0x1b4   : > { %3022 = vpow2.f32 %v1702_v27  ;;  %v4663_v33 = vadd.f32 1.0, %v1779_v43  ;;  %v4666_v28 = vadd.f32 %v1482_v44, %v1418_v30  ;;  %v2736_v22 = vadd.f32 -1.0, %v1779_v43 }
 0x1b5   : > { %3024 = vrcp.f32 %v4643_v3  ;;  %v3021_v9 = vpop.eup %3020  ;;  %v2409_v18 = vsel %vm2377_vm14, %v4395_v12, %v1981_v36  ;;  %v1985_v49 = vmul.f32 %v4555_v56, %v1984_v57  ;;  %v1993_v44 = vand.u32 2147483648, %v4488_v6 }
 0x1b6   : > { %3026 = vrcp.f32 %v4648_v47  ;;  %v1746_v53 = vadd.f32 1.0, %v3021_v9  ;;  %v1652_v63 = vmin.f32 %v4666_v28, 20.0  ;;  %v2447_v43 = vmul.f32 %v4526_v40, %v2409_v18 }
 0x1b7   : > { %v1615_v2 = vpop.f32.mrf.mxu1  ;;  %3028 = vrcp.f32 %v4663_v33  ;;  %v1986_v60 = vadd.f32 %v4555_v56, %v1985_v49  ;;  %v4693_v36 = vmul.f32 %v4641_v48, %v4534_v24  ;;  %vm2017_vm10 = vweird.f32 %v4574_v17 }
 0x1b8   : > { %v4668_v37 = vadd.f32 %v1615_v2, %v1551_v39  ;;  %v1778_v27 = vmul.f32 %v1746_v53, %v1746_v53  ;;  %v1700_v31 = vmul.f32 1.442695, %v1652_v63  ;;  %v2480_v39 = vadd.f32 %v2447_v43, %v2446_v4  ;;  %vm4754_vm11 = vmor %vm2017_vm10, %vm2018_vm9 }
 0x1b9   : > { %v1991_v53 = vand.u32 2147483647, %v4488_v6  ;;  %v1998_v2 = vmul.f32 %v4510_v58, %v4450_v55  ;;  %v1990_v18 = vsel %vm1989_vm1, %v4555_v56, %v1986_v60  ;;  %v1994_v63 = vor.u32 1.1754944e-38, %v1993_v44 }
 0x1ba   : > { %v3023_v29 = vpop.eup %3022  ;;  %v1655_v51 = vmin.f32 %v4668_v37, 20.0  ;;  %v2735_v42 = vadd.f32 -1.0, %v1778_v27  ;;  %3030 = vpow2.f32 %v1700_v31  ;;  %2481 = vadd.xlane.f32.xlu1 %v2480_v39  ;;  %v4705_v4 = vadd.f32 1.0, %v1778_v27 }
 0x1bb   : > { %v4677_v38 = vpop.eup %3024  ;;  %v1749_v26 = vadd.f32 1.0, %v3023_v29  ;;  %v4699_v29 = vmul.f32 %v2736_v22, %v4587_v34  ;;  %v1999_v48 = vsub.f32 1.0, %v1998_v2  ;;  %vm1992_vm2 = vcmp.eq.f32.partialorder %v1991_v53, 8.507059e+37 }
 0x1bc   : > { %v1706_v9 = vmul.f32 1.442695, %v1655_v51  ;;  %v4684_v12 = vpop.eup %3026  ;;  %v1420_v51 = vpop.f32.mrf.mxu2  ;;  %v4711_v13 = vmul.f32 %v2735_v42, %v4611_v16  ;;  %v2006_v22 = vand.u32 2147483647, %v4450_v55  ;;  %v1995_v31 = vsel %vm1992_vm2, %v1994_v63, %v1990_v18 }
 0x1bd   : > { %v1781_v30 = vmul.f32 %v1749_v26, %v1749_v26  ;;  %5463 = vst [vmem:[#allocation10_spill] sm:$0xff] %v4699_v29  ;;  %v4708_v57 = vpop.eup %3028  ;;  %v2008_v26 = vand.u32 2147483648, %v4450_v55  ;;  %v1553_v43 = vpop.f32.mrf.mxu0  ;;  %v2000_v27 = vmul.f32 %v4510_v58, %v1999_v48  ;;  %v1421_v49 = vadd.f32 %v1420_v51, %v4315_v23 }
 0x1be   : > { %3032 = vpow2.f32 %v1706_v9  ;;  %v1996_v9 = vmul.f32 %v1995_v31, %v4531_v19  ;;  %v1485_v53 = vpop.f32.mrf.mxu3  ;;  %v1554_v60 = vadd.f32 %v1553_v43, %v4310_v32  ;;  %v2013_v44 = vmul.f32 %v4614_v7, %v4574_v17 }
 0x1bf   : > { %v2738_v6 = vadd.f32 -1.0, %v1781_v30  ;;  %v4717_v56 = vadd.f32 1.0, %v1781_v30  ;;  %v2001_v39 = vadd.f32 %v4510_v58, %v2000_v27  ;;  %vm2007_vm7 = vcmp.eq.f32.partialorder %v2006_v22, 8.507059e+37 }
 0x1c0   : > { %v3031_v42 = vpop.eup %3030  ;;  %v2009_v19 = vor.u32 1.1754944e-38, %v2008_v26  ;;  %v4727_v18 = vadd.f32 %v1485_v53, %v1421_v49  ;;  %v2410_v51 = vsel %vm2378_vm5, %v4410_v14, %v1996_v9  ;;  %v2014_v34 = vsub.f32 1.0, %v2013_v44 }
 0x1c1   : > { %v1748_v30 = vadd.f32 1.0, %v3031_v42  ;;  %v1618_v55 = vpop.f32.mrf.mxu1  ;;  %v2005_v48 = vsel %vm2004_vm6, %v4510_v58, %v2001_v39  ;;  %v2448_v26 = vmul.f32 %v4524_v15, %v2410_v51  ;;  %3034 = vrcp.f32 %v4705_v4 }
 0x1c2   : > { %v4731_v31 = vadd.f32 %v1618_v55, %v1554_v60  ;;  %v2010_v43 = vsel %vm2007_vm7, %v2009_v19, %v2005_v48  ;;  %v1654_v29 = vmin.f32 %v4727_v18, 20.0  ;;  %v2015_v58 = vmul.f32 %v4614_v7, %v2014_v34 }
 0x1c3   : > { %v1780_v27 = vmul.f32 %v1748_v30, %v1748_v30  ;;  %v2011_v42 = vmul.f32 %v2010_v43, %v4469_v46  ;;  %v2021_v60 = vand.u32 2147483647, %v4574_v17  ;;  %3036 = vrcp.f32 %v4717_v56 }
 0x1c4   : > { %v3033_v2 = vpop.eup %3032  ;;  %v1657_v22 = vmin.f32 %v4731_v31, 20.0  ;;  %v1704_v49 = vmul.f32 1.442695, %v1654_v29  ;;  %v2016_v53 = vadd.f32 %v4614_v7, %v2015_v58  ;;  %v4749_v29 = vmul.f32 %v2738_v6, %v4633_v20  ;;  %v1423_v19 = vpop.f32.mrf.mxu2 }
 0x1c5   : > { %v1751_v63 = vadd.f32 1.0, %v3033_v2  ;;  %v2411_v14 = vsel %vm2379_vm8, %v4405_v50, %v2011_v42  ;;  %v4743_v39 = vadd.f32 1.0, %v1780_v27  ;;  %v2023_v44 = vand.u32 2147483648, %v4574_v17  ;;  %v1556_v55 = vpop.f32.mrf.mxu0 }
 0x1c6   : > { %v1710_v9 = vmul.f32 1.442695, %v1657_v22  ;;  %v2449_v46 = vmul.f32 %v4526_v40, %v2411_v14  ;;  %5464 = vst [vmem:[#allocation11_spill] sm:$0xff] %v4749_v29  ;;  %3038 = vpow2.f32 %v1704_v49  ;;  %v2020_v30 = vsel %vm4754_vm11, %v4614_v7, %v2016_v53 }
 0x1c7   : > { %v1783_v16 = vmul.f32 %v1751_v63, %v1751_v63  ;;  %v2028_v6 = vmul.f32 %v4600_v1, %v4540_v11  ;;  %v2737_v63 = vadd.f32 -1.0, %v1780_v27  ;;  %v2024_v51 = vor.u32 1.1754944e-38, %v2023_v44  ;;  %v4766_v42 = vpop.eup %3034  ;;  %v1488_v58 = vpop.f32.mrf.mxu3 }
 0x1c8   : > { %v2483_v2 = vadd.f32 %v2449_v46, %v2448_v26  ;;  %3040 = vpow2.f32 %v1710_v9  ;;  %vm2022_vm12 = vcmp.eq.f32.partialorder %v2021_v60, 8.507059e+37  ;;  %v2036_v43 = vand.u32 2147483647, %v4540_v11 }
 0x1c9   : > { %v4752_v34 = vadd.f32 1.0, %v1783_v16  ;;  %v2740_v48 = vadd.f32 -1.0, %v1783_v16  ;;  %3042 = vrcp.f32 %v4743_v39  ;;  %v2029_v17 = vsub.f32 1.0, %v2028_v6  ;;  %v4775_v9 = vpop.eup %3036 }
 0x1ca   : > { %2484 = vadd.xlane.f32.xlu1 %v2483_v2  ;;  %v2025_v22 = vsel %vm2022_vm12, %v2024_v51, %v2020_v30  ;;  %v2038_v7 = vand.u32 2147483648, %v4540_v11  ;;  %v1424_v26 = vadd.f32 %v1423_v19, %v4315_v23  ;;  %v1557_v49 = vadd.f32 %v1556_v55, %v4310_v32 }
 0x1cb   : > { %3044 = vrcp.f32 %v4752_v34  ;;  %v2026_v16 = vmul.f32 %v2025_v22, %v4583_v10  ;;  %v2030_v27 = vmul.f32 %v4600_v1, %v2029_v17  ;;  %vm2033_vm13 = vweird.f32 %v4600_v1 }
 0x1cc   : > { %v1621_v14 = vpop.f32.mrf.mxu1  ;;  %vm2032_vm14 = vweird.f32 %v4540_v11  ;;  %v4778_v46 = vadd.f32 %v1488_v58, %v1424_v26  ;;  %v2043_v60 = vmul.f32 %v4655_v62, %v4607_v59  ;;  %v3039_v50 = vpop.eup %3038  ;;  %vm2037_vm15 = vcmp.eq.f32.partialorder %v2036_v43, 8.507059e+37 }
 0x1cd   : > { %v4780_v53 = vadd.f32 %v1621_v14, %v1557_v49  ;;  %v2031_v10 = vadd.f32 %v4600_v1, %v2030_v27  ;;  %vm2380_vm0 = vcmp.gt.f32.partialorder %v4438_v25, 20.0  ;;  %vm2381_vm1 = vcmp.gt.f32.partialorder %v4418_v35, 20.0  ;;  %vm2034_vm2 = vmor %vm2032_vm14, %vm2033_vm13 }
 0x1ce   : > { %v3041_v44 = vpop.eup %3040  ;;  %v1750_v2 = vadd.f32 1.0, %v3039_v50  ;;  %v2039_v11 = vor.u32 1.1754944e-38, %v2038_v7  ;;  %v1656_v30 = vmin.f32 %v4778_v46, 20.0  ;;  %v2412_v51 = vsel %vm2380_vm0, %v4438_v25, %v2026_v16 }
 0x1cf   : > { %v1659_v6 = vmin.f32 %v4780_v53, 20.0  ;;  %v4791_v19 = vpop.eup %3042  ;;  %v2035_v55 = vsel %vm2034_vm2, %v4600_v1, %v2031_v10  ;;  %v2044_v17 = vsub.f32 1.0, %v2043_v60  ;;  %v2051_v43 = vand.u32 2147483647, %v4607_v59 }
 0x1d0   : > { %v1753_v22 = vadd.f32 1.0, %v3041_v44  ;;  %v2040_v26 = vsel %vm2037_vm15, %v2039_v11, %v2035_v55  ;;  %v1708_v49 = vmul.f32 1.442695, %v1656_v30  ;;  %v1782_v7 = vmul.f32 %v1750_v2, %v1750_v2 }
 0x1d1   : > { %v1714_v27 = vmul.f32 1.442695, %v1659_v6  ;;  %v4796_v58 = vpop.eup %3044  ;;  %v2041_v14 = vmul.f32 %v2040_v26, %v4571_v61  ;;  %v2045_v50 = vmul.f32 %v4655_v62, %v2044_v17  ;;  %v2053_v29 = vand.u32 2147483648, %v4607_v59  ;;  %v1426_v6 = vpop.f32.mrf.mxu2 }
 0x1d2   : > { %v2450_v1 = vmul.f32 %v4524_v15, %v2412_v51  ;;  %3046 = vpow2.f32 %v1708_v49  ;;  %vm2048_vm3 = vweird.f32 %v4655_v62  ;;  %v2058_v25 = vmul.f32 %v4631_v8, %v4585_v21  ;;  %v1559_v26 = vpop.f32.mrf.mxu0 }
 0x1d3   : > { %v4806_v16 = vmul.f32 %v2737_v63, %v4666_v28  ;;  %v4809_v60 = vmul.f32 %v2740_v48, %v4668_v37  ;;  %v2413_v61 = vsel %vm2381_vm1, %v4418_v35, %v2041_v14  ;;  %3048 = vpow2.f32 %v1714_v27 }
 0x1d4   : > { %v1785_v10 = vmul.f32 %v1753_v22, %v1753_v22  ;;  %v2451_v44 = vmul.f32 %v4526_v40, %v2413_v61  ;;  %v2046_v2 = vadd.f32 %v4655_v62, %v2045_v50  ;;  %vm2047_vm4 = vweird.f32 %v4607_v59 }
 0x1d5   : > { %v2739_v11 = vadd.f32 -1.0, %v1782_v7  ;;  %vm2049_vm5 = vmor %vm2047_vm4, %vm2048_vm3  ;;  %vm2052_vm6 = vcmp.eq.f32.partialorder %v2051_v43, 8.507059e+37  ;;  %v2054_v63 = vor.u32 1.1754944e-38, %v2053_v29  ;;  %v2059_v30 = vsub.f32 1.0, %v2058_v25 }
 0x1d6   : > { %v4817_v48 = vadd.f32 1.0, %v1782_v7  ;;  %v2486_v55 = vadd.f32 %v2451_v44, %v2450_v1  ;;  %v2050_v51 = vsel %vm2049_vm5, %v4655_v62, %v2046_v2  ;;  %vm2063_vm7 = vweird.f32 %v4631_v8  ;;  %v1491_v1 = vpop.f32.mrf.mxu3 }
 0x1d7   : > { %v2055_v35 = vsel %vm2052_vm6, %v2054_v63, %v2050_v51  ;;  %v2060_v17 = vmul.f32 %v4631_v8, %v2059_v30  ;;  %v2066_v22 = vand.u32 2147483647, %v4585_v21  ;;  %v2068_v59 = vand.u32 2147483648, %v4585_v21  ;;  %v1624_v63 = vpop.f32.mrf.mxu1 }
 0x1d8   : > { %v3047_v49 = vpop.eup %3046  ;;  %v2742_v43 = vadd.f32 -1.0, %v1785_v10  ;;  %v4824_v29 = vadd.f32 1.0, %v1785_v10  ;;  %2487 = vadd.xlane.f32.xlu2 %v2486_v55  ;;  %v2056_v27 = vmul.f32 %v2055_v35, %v4617_v45  ;;  %v1427_v7 = vadd.f32 %v1426_v6, %v4315_v23 }
 0x1d9   : > { %v3049_v62 = vpop.eup %3048  ;;  %v1752_v14 = vadd.f32 1.0, %v3047_v49  ;;  %v2061_v50 = vadd.f32 %v4631_v8, %v2060_v17  ;;  %vm2062_vm8 = vweird.f32 %v4585_v21  ;;  %vm2382_vm9 = vcmp.gt.f32.partialorder %v4502_v0, 20.0 }
 0x1da   : > { %vm2064_vm10 = vmor %vm2062_vm8, %vm2063_vm7  ;;  %vm2067_vm11 = vcmp.eq.f32.partialorder %v2066_v22, 8.507059e+37  ;;  %v2069_v25 = vor.u32 1.1754944e-38, %v2068_v59  ;;  %v4833_v61 = vadd.f32 %v1491_v1, %v1427_v7  ;;  %v1560_v45 = vadd.f32 %v1559_v26, %v4310_v32 }
 0x1db   : > { %v1755_v10 = vadd.f32 1.0, %v3049_v62  ;;  %v2065_v44 = vsel %vm2064_vm10, %v4631_v8, %v2061_v50  ;;  %v2414_v2 = vsel %vm2382_vm9, %v4502_v0, %v2056_v27  ;;  %v2073_v21 = vmul.f32 %v4684_v12, %v4648_v47 }
 0x1dc   : > { %v1784_v30 = vmul.f32 %v1752_v14, %v1752_v14  ;;  %v2070_v6 = vsel %vm2067_vm11, %v2069_v25, %v2065_v44  ;;  %v1658_v55 = vmin.f32 %v4833_v61, 20.0  ;;  %v4841_v51 = vadd.f32 %v1624_v63, %v1560_v45  ;;  %v1429_v45 = vpop.f32.mrf.mxu2 }
 0x1dd   : > { %v4844_v35 = vmul.f32 %v2739_v11, %v4727_v18  ;;  %3050 = vrcp.f32 %v4817_v48  ;;  %v2071_v17 = vmul.f32 %v2070_v6, %v4594_v52  ;;  %v2074_v8 = vsub.f32 1.0, %v2073_v21  ;;  %v1562_v21 = vpop.f32.mrf.mxu0 }
 0x1de   : > { %vm2383_vm12 = vcmp.gt.f32.partialorder %v4475_v54, 20.0  ;;  %v2452_v0 = vmul.f32 %v4524_v15, %v2414_v2  ;;  %v1712_v22 = vmul.f32 1.442695, %v1658_v55  ;;  %v1661_v59 = vmin.f32 %v4841_v51, 20.0 }
 0x1df   : > { %v4852_v26 = vmul.f32 %v2742_v43, %v4731_v31  ;;  %v1787_v49 = vmul.f32 %v1755_v10, %v1755_v10  ;;  %v2415_v27 = vsel %vm2383_vm12, %v4475_v54, %v2071_v17  ;;  %v2075_v11 = vmul.f32 %v4684_v12, %v2074_v8 }
 0x1e0   : > { %v2741_v7 = vadd.f32 -1.0, %v1784_v30  ;;  %v4856_v62 = vadd.f32 1.0, %v1784_v30  ;;  %v2453_v52 = vmul.f32 %v4526_v40, %v2415_v27  ;;  %v1718_v14 = vmul.f32 1.442695, %v1661_v59 }
 0x1e1   : > { %3052 = vpow2.f32 %v1712_v22  ;;  %v2076_v50 = vadd.f32 %v4684_v12, %v2075_v11  ;;  %vm2077_vm13 = vweird.f32 %v4648_v47  ;;  %vm2078_vm14 = vweird.f32 %v4684_v12  ;;  %v1494_v22 = vpop.f32.mrf.mxu3 }
 0x1e2   : > { %v2489_v43 = vadd.f32 %v2453_v52, %v2452_v0  ;;  %3054 = vpow2.f32 %v1718_v14  ;;  %vm4862_vm15 = vmor %vm2077_vm13, %vm2078_vm14  ;;  %v2081_v54 = vand.u32 2147483647, %v4648_v47  ;;  %v2083_v25 = vand.u32 2147483648, %v4648_v47  ;;  %v1627_v52 = vpop.f32.mrf.mxu1 }
 0x1e3   : > { %v4868_v10 = vpop.eup %3050  ;;  %3056 = vrcp.f32 %v4824_v29  ;;  %v2744_v44 = vadd.f32 -1.0, %v1787_v49  ;;  %v2080_v2 = vsel %vm4862_vm15, %v4684_v12, %v2076_v50  ;;  %v2088_v63 = vmul.f32 %v4677_v38, %v4643_v3 }
 0x1e4   : > { %v4877_v30 = vmul.f32 %v2741_v7, %v4778_v46  ;;  %3058 = vrcp.f32 %v4856_v62  ;;  %v4880_v47 = vadd.f32 1.0, %v1787_v49  ;;  %2490 = vadd.xlane.f32.xlu2 %v2489_v43  ;;  %v2084_v6 = vor.u32 1.1754944e-38, %v2083_v25 }
 0x1e5   : > { %vm2082_vm0 = vcmp.eq.f32.partialorder %v2081_v54, 8.507059e+37  ;;  %v2089_v55 = vsub.f32 1.0, %v2088_v63  ;;  %vm2093_vm1 = vweird.f32 %v4677_v38  ;;  %v1430_v17 = vadd.f32 %v1429_v45, %v4315_v23 }
 0x1e6   : > { %v2085_v12 = vsel %vm2082_vm0, %v2084_v6, %v2080_v2  ;;  %v2096_v8 = vand.u32 2147483647, %v4643_v3  ;;  %v2098_v0 = vand.u32 2147483648, %v4643_v3  ;;  %v1563_v59 = vadd.f32 %v1562_v21, %v4310_v32 }
 0x1e7   : > { %v3053_v27 = vpop.eup %3052  ;;  %v2086_v49 = vmul.f32 %v2085_v12, %v4696_v5  ;;  %v2090_v11 = vmul.f32 %v4677_v38, %v2089_v55  ;;  %v4889_v7 = vadd.f32 %v1494_v22, %v1430_v17  ;;  %v2103_v14 = vmul.f32 %v4766_v42, %v4705_v4 }
 0x1e8   : > { %v3055_v50 = vpop.eup %3054  ;;  %v4894_v43 = vmul.f32 %v2744_v44, %v4780_v53  ;;  %v1754_v1 = vadd.f32 1.0, %v3053_v27  ;;  %vm2092_vm2 = vweird.f32 %v4643_v3  ;;  %v4897_v54 = vadd.f32 %v1627_v52, %v1563_v59 }
 0x1e9   : > { %v4899_v25 = vpop.eup %3056  ;;  %v1757_v5 = vadd.f32 1.0, %v3055_v50  ;;  %v2091_v45 = vadd.f32 %v4677_v38, %v2090_v11  ;;  %vm2384_vm3 = vcmp.gt.f32.partialorder %v4557_v41, 20.0  ;;  %v1660_v2 = vmin.f32 %v4889_v7, 20.0  ;;  %vm2094_vm4 = vmor %vm2092_vm2, %vm2093_vm1 }
 0x1ea   : > { %v4904_v63 = vpop.eup %3058  ;;  %vm2097_vm5 = vcmp.eq.f32.partialorder %v2096_v8, 8.507059e+37  ;;  %v2099_v44 = vor.u32 1.1754944e-38, %v2098_v0  ;;  %v1663_v3 = vmin.f32 %v4897_v54, 20.0  ;;  %v2104_v21 = vsub.f32 1.0, %v2103_v14 }
 0x1eb   : > { %v1786_v6 = vmul.f32 %v1754_v1, %v1754_v1  ;;  %v2095_v55 = vsel %vm2094_vm4, %v4677_v38, %v2091_v45  ;;  %v2416_v17 = vsel %vm2384_vm3, %v4557_v41, %v2086_v49  ;;  %v1716_v12 = vmul.f32 1.442695, %v1660_v2 }
 0x1ec   : > { %3060 = vrcp.f32 %v4880_v47  ;;  %v2100_v22 = vsel %vm2097_vm5, %v2099_v44, %v2095_v55  ;;  %vm2385_vm6 = vcmp.gt.f32.partialorder %v4534_v24, 20.0  ;;  %v1722_v59 = vmul.f32 1.442695, %v1663_v3  ;;  %v1565_v55 = vpop.f32.mrf.mxu0 }
 0x1ed   : > { %v1789_v27 = vmul.f32 %v1757_v5, %v1757_v5  ;;  %v2101_v11 = vmul.f32 %v2100_v22, %v4693_v36  ;;  %3062 = vpow2.f32 %v1716_v12  ;;  %v2111_v8 = vand.u32 2147483647, %v4705_v4 }
 0x1ee   : > { %v2454_v0 = vmul.f32 %v4524_v15, %v2416_v17  ;;  %v2105_v52 = vmul.f32 %v4766_v42, %v2104_v21  ;;  %vm2107_vm7 = vweird.f32 %v4705_v4  ;;  %vm2108_vm8 = vweird.f32 %v4766_v42 }
 0x1ef   : > { %v2743_v41 = vadd.f32 -1.0, %v1786_v6  ;;  %v4919_v38 = vadd.f32 1.0, %v1786_v6  ;;  %v2417_v49 = vsel %vm2385_vm6, %v4534_v24, %v2101_v11  ;;  %v2113_v14 = vand.u32 2147483648, %v4705_v4  ;;  %vm2109_vm9 = vmor %vm2107_vm7, %vm2108_vm8  ;;  %v1432_v6 = vpop.f32.mrf.mxu2 }
 0x1f0   : > { %v2455_v36 = vmul.f32 %v4526_v40, %v2417_v49  ;;  %3064 = vpow2.f32 %v1722_v59  ;;  %v2106_v50 = vadd.f32 %v4766_v42, %v2105_v52  ;;  %v2118_v1 = vmul.f32 %v4708_v57, %v4663_v33 }
 0x1f1   : > { %v2746_v5 = vadd.f32 -1.0, %v1789_v27  ;;  %v4927_v45 = vadd.f32 1.0, %v1789_v27  ;;  %vm2112_vm10 = vcmp.eq.f32.partialorder %v2111_v8, 8.507059e+37  ;;  %v2114_v2 = vor.u32 1.1754944e-38, %v2113_v14 }
 0x1f2   : > { %v4929_v44 = vpop.eup %3060  ;;  %v2492_v3 = vadd.f32 %v2455_v36, %v2454_v0  ;;  %v2110_v24 = vsel %vm2109_vm9, %v4766_v42, %v2106_v50  ;;  %v2119_v4 = vsub.f32 1.0, %v2118_v1  ;;  %v2126_v21 = vand.u32 2147483647, %v4663_v33  ;;  %v1497_v36 = vpop.f32.mrf.mxu3 }
 0x1f3   : > { %v3063_v17 = vpop.eup %3062  ;;  %v4934_v12 = vmul.f32 %v2743_v41, %v4833_v61  ;;  %3066 = vrcp.f32 %v4919_v38  ;;  %v2115_v22 = vsel %vm2112_vm10, %v2114_v2, %v2110_v24  ;;  %v2128_v59 = vand.u32 2147483648, %v4663_v33  ;;  %v1630_v50 = vpop.f32.mrf.mxu1 }
 0x1f4   : > { %2493 = vadd.xlane.f32.xlu0 %v2492_v3  ;;  %v1756_v27 = vadd.f32 1.0, %v3063_v17  ;;  %v2116_v11 = vmul.f32 %v2115_v22, %v4711_v13  ;;  %v2120_v42 = vmul.f32 %v4708_v57, %v2119_v4  ;;  %vm2123_vm11 = vweird.f32 %v4708_v57  ;;  %v5469_v13 = vld [vmem:[#allocation8_spill] sm:$0xff]  ;;  %v5470_v4 = vld [vmem:[#allocation9_spill] sm:$0xff] }
 0x1f5   : > { %v4942_v8 = vmul.f32 %v2746_v5, %v4841_v51  ;;  %v1433_v0 = vadd.f32 %v1432_v6, %v4315_v23  ;;  %v1566_v52 = vadd.f32 %v1565_v55, %v4310_v32  ;;  %v2133_v41 = vmul.f32 %v4791_v19, %v4743_v39 }
 0x1f6   : > { %v3065_v49 = vpop.eup %3064  ;;  %v2121_v14 = vadd.f32 %v4708_v57, %v2120_v42  ;;  %vm2122_vm12 = vweird.f32 %v4663_v33  ;;  %vm2127_vm13 = vcmp.eq.f32.partialorder %v2126_v21, 8.507059e+37  ;;  %vm2386_vm14 = vcmp.gt.f32.partialorder %v5469_v13, 20.0 }
 0x1f7   : > { %v1788_v1 = vmul.f32 %v1756_v27, %v1756_v27  ;;  %vm2124_vm15 = vmor %vm2122_vm12, %vm2123_vm11  ;;  %v2129_v5 = vor.u32 1.1754944e-38, %v2128_v59  ;;  %v4951_v2 = vadd.f32 %v1497_v36, %v1433_v0  ;;  %v4953_v3 = vadd.f32 %v1630_v50, %v1566_v52  ;;  %v5471_v59 = vld [vmem:[#allocation10_spill] sm:$0xff] }
 0x1f8   : > { %v2125_v24 = vsel %vm2124_vm15, %v4708_v57, %v2121_v14  ;;  %vm2387_vm0 = vcmp.gt.f32.partialorder %v5470_v4, 20.0  ;;  %v2418_v6 = vsel %vm2386_vm14, %v5469_v13, %v2116_v11  ;;  %v2134_v55 = vsub.f32 1.0, %v2133_v41 }
 0x1f9   : > { %v4958_v33 = vpop.eup %3066  ;;  %v1759_v21 = vadd.f32 1.0, %v3065_v49  ;;  %v2130_v17 = vsel %vm2127_vm13, %v2129_v5, %v2125_v24  ;;  %v1662_v22 = vmin.f32 %v4951_v2, 20.0  ;;  %v1665_v27 = vmin.f32 %v4953_v3, 20.0 }
 0x1fa   : > { %v2131_v42 = vmul.f32 %v2130_v17, %v5471_v59  ;;  %v2135_v0 = vmul.f32 %v4791_v19, %v2134_v55  ;;  %vm2137_vm1 = vweird.f32 %v4743_v39  ;;  %vm2138_vm2 = vweird.f32 %v4791_v19 }
 0x1fb   : > { %v2745_v57 = vadd.f32 -1.0, %v1788_v1  ;;  %v2456_v11 = vmul.f32 %v4524_v15, %v2418_v6  ;;  %v1720_v52 = vmul.f32 1.442695, %v1662_v22  ;;  %v1726_v41 = vmul.f32 1.442695, %v1665_v27  ;;  %vm2139_vm3 = vmor %vm2137_vm1, %vm2138_vm2 }
 0x1fc   : > { %v2419_v49 = vsel %vm2387_vm0, %v5470_v4, %v2131_v42  ;;  %v2136_v14 = vadd.f32 %v4791_v19, %v2135_v0  ;;  %v2141_v13 = vand.u32 2147483647, %v4743_v39  ;;  %v2143_v36 = vand.u32 2147483648, %v4743_v39  ;;  %v1435_v39 = vpop.f32.mrf.mxu2 }
 0x1fd   : > { %3068 = vrcp.f32 %v4927_v45  ;;  %v1791_v50 = vmul.f32 %v1759_v21, %v1759_v21  ;;  %v2457_v5 = vmul.f32 %v4526_v40, %v2419_v49  ;;  %v2148_v24 = vmul.f32 %v4775_v9, %v4717_v56 }
 0x1fe   : > { %v4977_v6 = vadd.f32 1.0, %v1788_v1  ;;  %3070 = vpow2.f32 %v1720_v52  ;;  %v2140_v4 = vsel %vm2139_vm3, %v4791_v19, %v2136_v14  ;;  %v2144_v55 = vor.u32 1.1754944e-38, %v2143_v36 }
 0x1ff   : > { %v2495_v17 = vadd.f32 %v2457_v5, %v2456_v11  ;;  %3072 = vpow2.f32 %v1726_v41  ;;  %vm2142_vm4 = vcmp.eq.f32.partialorder %v2141_v13, 8.507059e+37  ;;  %v2149_v22 = vsub.f32 1.0, %v2148_v24 }
 0x200   : > { %v4981_v27 = vmul.f32 %v2745_v57, %v4889_v7  ;;  %v2145_v21 = vsel %vm2142_vm4, %v2144_v55, %v2140_v4  ;;  %v2156_v59 = vand.u32 2147483647, %v4717_v56  ;;  %v2158_v42 = vand.u32 2147483648, %v4717_v56 }
 0x201   : > { %v2748_v0 = vadd.f32 -1.0, %v1791_v50  ;;  %2496 = vadd.xlane.f32.xlu1 %v2495_v17  ;;  %v2146_v1 = vmul.f32 %v2145_v21, %v4806_v16  ;;  %v2150_v19 = vmul.f32 %v4775_v9, %v2149_v22  ;;  %vm2153_vm5 = vweird.f32 %v4775_v9  ;;  %v1500_v16 = vpop.f32.mrf.mxu3 }
 0x202   : > { %v4988_v11 = vadd.f32 1.0, %v1791_v50  ;;  %vm2152_vm6 = vweird.f32 %v4717_v56  ;;  %v1436_v57 = vadd.f32 %v1435_v39, %v4315_v23  ;;  %v2163_v52 = vmul.f32 %v4868_v10, %v4817_v48 }
 0x203   : > { %v4994_v41 = vpop.eup %3068  ;;  %v2151_v49 = vadd.f32 %v4775_v9, %v2150_v19  ;;  %vm4997_vm7 = vcmp.eq.f32.partialorder %v2156_v59, 8.507059e+37  ;;  %vm2388_vm8 = vcmp.gt.f32.partialorder %v4666_v28, 20.0  ;;  %vm2389_vm9 = vcmp.gt.f32.partialorder %v4633_v20, 20.0  ;;  %vm2154_vm10 = vmor %vm2152_vm6, %vm2153_vm5 }
 0x204   : > { %v3071_v13 = vpop.eup %3070  ;;  %v2159_v56 = vor.u32 1.1754944e-38, %v2158_v42  ;;  %v2420_v36 = vsel %vm2388_vm8, %v4666_v28, %v2146_v1  ;;  %v5004_v50 = vadd.f32 %v1500_v16, %v1436_v57  ;;  %v2164_v5 = vsub.f32 1.0, %v2163_v52  ;;  %v5474_v1 = vld [vmem:[#allocation11_spill] sm:$0xff] }
 0x205   : > { %v3073_v24 = vpop.eup %3072  ;;  %v1758_v4 = vadd.f32 1.0, %v3071_v13  ;;  %v2155_v55 = vsel %vm2154_vm10, %v4775_v9, %v2151_v49  ;;  %v2173_v17 = vand.u32 2147483648, %v4817_v48  ;;  %v2178_v22 = vmul.f32 %v4796_v58, %v4752_v34 }
 0x206   : > { %v1761_v39 = vadd.f32 1.0, %v3073_v24  ;;  %v2160_v21 = vsel %vm4997_vm7, %v2159_v56, %v2155_v55  ;;  %v1664_v59 = vmin.f32 %v5004_v50, 20.0  ;;  %v2165_v28 = vmul.f32 %v4868_v10, %v2164_v5 }
 0x207   : > { %v1790_v42 = vmul.f32 %v1758_v4, %v1758_v4  ;;  %v2161_v19 = vmul.f32 %v2160_v21, %v5474_v1  ;;  %vm2168_vm11 = vweird.f32 %v4868_v10  ;;  %v2171_v9 = vand.u32 2147483647, %v4817_v48 }
 0x208   : > { %v2458_v57 = vmul.f32 %v4524_v15, %v2420_v36  ;;  %v1724_v52 = vmul.f32 1.442695, %v1664_v59  ;;  %v2166_v49 = vadd.f32 %v4868_v10, %v2165_v28  ;;  %v2179_v16 = vsub.f32 1.0, %v2178_v22 }
 0x209   : > { %3074 = vrcp.f32 %v4977_v6  ;;  %v5021_v14 = vmul.f32 %v2748_v0, %v4897_v54  ;;  %v2421_v13 = vsel %vm2389_vm9, %v4633_v20, %v2161_v19  ;;  %vm2167_vm12 = vweird.f32 %v4817_v48  ;;  %v1438_v0 = vpop.f32.mrf.mxu2 }
 0x20a   : > { %v1793_v56 = vmul.f32 %v1761_v39, %v1761_v39  ;;  %v2459_v5 = vmul.f32 %v4526_v40, %v2421_v13  ;;  %3076 = vpow2.f32 %v1724_v52  ;;  %vm2169_vm13 = vmor %vm2167_vm12, %vm2168_vm11  ;;  %v2174_v36 = vor.u32 1.1754944e-38, %v2173_v17 }
 0x20b   : > { %v2747_v24 = vadd.f32 -1.0, %v1790_v42  ;;  %v2170_v4 = vsel %vm2169_vm13, %v4868_v10, %v2166_v49  ;;  %vm2172_vm14 = vcmp.eq.f32.partialorder %v2171_v9, 8.507059e+37  ;;  %v2180_v55 = vmul.f32 %v4796_v58, %v2179_v16 }
 0x20c   : > { %3078 = vrcp.f32 %v4988_v11  ;;  %v2498_v22 = vadd.f32 %v2459_v5, %v2458_v57  ;;  %v2175_v21 = vsel %vm2172_vm14, %v2174_v36, %v2170_v4  ;;  %vm2182_vm15 = vweird.f32 %v4752_v34  ;;  %v1503_v57 = vpop.f32.mrf.mxu3 }
 0x20d   : > { %v2176_v20 = vmul.f32 %v2175_v21, %v4844_v35  ;;  %v2181_v48 = vadd.f32 %v4796_v58, %v2180_v55  ;;  %vm2183_vm0 = vweird.f32 %v4796_v58  ;;  %v2186_v17 = vand.u32 2147483647, %v4752_v34 }
 0x20e   : > { %v5036_v39 = vadd.f32 1.0, %v1790_v42  ;;  %v5038_v10 = vadd.f32 -1.0, %v1793_v56  ;;  %2499 = vadd.xlane.f32.xlu2 %v2498_v22  ;;  %vm5040_vm1 = vmor %vm2182_vm15, %vm2183_vm0  ;;  %v2188_v28 = vand.u32 2147483648, %v4752_v34  ;;  %v1439_v1 = vadd.f32 %v1438_v0, %v4315_v23 }
 0x20f   : > { %v5046_v35 = vpop.eup %3074  ;;  %v5049_v19 = vmul.f32 %v2747_v24, %v4951_v2  ;;  %v5051_v9 = vadd.f32 1.0, %v1793_v56  ;;  %v2185_v42 = vsel %vm5040_vm1, %v4796_v58, %v2181_v48  ;;  %v2193_v52 = vmul.f32 %v4904_v63, %v4856_v62 }
 0x210   : > { %v3077_v49 = vpop.eup %3076  ;;  %v2189_v16 = vor.u32 1.1754944e-38, %v2188_v28  ;;  %vm2390_vm2 = vcmp.gt.f32.partialorder %v4727_v18, 20.0  ;;  %vm2391_vm3 = vcmp.gt.f32.partialorder %v4668_v37, 20.0  ;;  %v5060_v23 = vadd.f32 %v1503_v57, %v1439_v1 }
 0x211   : > { %v1760_v34 = vadd.f32 1.0, %v3077_v49  ;;  %vm2187_vm4 = vcmp.eq.f32.partialorder %v2186_v17, 8.507059e+37  ;;  %v2422_v13 = vsel %vm2390_vm2, %v4727_v18, %v2176_v20  ;;  %v2194_v56 = vsub.f32 1.0, %v2193_v52  ;;  %v1568_v57 = vpop.f32.mrf.mxu2 }
 0x212   : > { %v5063_v5 = vpop.eup %3078  ;;  %v2190_v58 = vsel %vm2187_vm4, %v2189_v16, %v2185_v42  ;;  %v1666_v36 = vmin.f32 %v5060_v23, 20.0  ;;  %v2203_v24 = vand.u32 2147483648, %v4856_v62  ;;  %v2208_v4 = vmul.f32 %v4899_v25, %v4824_v29 }
 0x213   : > { %v2191_v55 = vmul.f32 %v2190_v58, %v4809_v60  ;;  %v2195_v0 = vmul.f32 %v4904_v63, %v2194_v56  ;;  %vm2198_vm5 = vweird.f32 %v4904_v63  ;;  %v2201_v22 = vand.u32 2147483647, %v4856_v62 }
 0x214   : > { %v2460_v18 = vmul.f32 %v4524_v15, %v2422_v13  ;;  %v1728_v21 = vmul.f32 1.442695, %v1666_v36  ;;  %vm2197_vm6 = vweird.f32 %v4856_v62  ;;  %v2209_v20 = vsub.f32 1.0, %v2208_v4 }
 0x215   : > { %v1792_v48 = vmul.f32 %v1760_v34, %v1760_v34  ;;  %v2423_v17 = vsel %vm2391_vm3, %v4668_v37, %v2191_v55  ;;  %v2196_v59 = vadd.f32 %v4904_v63, %v2195_v0  ;;  %v2204_v60 = vor.u32 1.1754944e-38, %v2203_v24  ;;  %vm2199_vm7 = vmor %vm2197_vm6, %vm2198_vm5 }
 0x216   : > { %v2461_v28 = vmul.f32 %v4526_v40, %v2423_v17  ;;  %3080 = vpow2.f32 %v1728_v21  ;;  %v2210_v1 = vmul.f32 %v4899_v25, %v2209_v20  ;;  %vm2213_vm8 = vweird.f32 %v4899_v25 }
 0x217   : > { %v2200_v42 = vsel %vm2199_vm7, %v4904_v63, %v2196_v59  ;;  %vm2202_vm9 = vcmp.eq.f32.partialorder %v2201_v22, 8.507059e+37  ;;  %vm2212_vm10 = vweird.f32 %v4824_v29  ;;  %v2216_v62 = vand.u32 2147483647, %v4824_v29 }
 0x218   : > { %v2501_v37 = vadd.f32 %v2461_v28, %v2460_v18  ;;  %v2205_v52 = vsel %vm2202_vm9, %v2204_v60, %v2200_v42  ;;  %v2211_v49 = vadd.f32 %v4899_v25, %v2210_v1  ;;  %v2218_v16 = vand.u32 2147483648, %v4824_v29  ;;  %vm2214_vm11 = vmor %vm2212_vm10, %vm2213_vm8  ;;  %v1633_v29 = vpop.f32.mrf.mxu1 }
 0x219   : > { %3082 = vrcp.f32 %v5036_v39  ;;  %v2749_v34 = vadd.f32 -1.0, %v1792_v48  ;;  %v2206_v13 = vmul.f32 %v2205_v52, %v4877_v30  ;;  %vm2392_vm12 = vcmp.gt.f32.partialorder %v4778_v46, 20.0 }
 0x21a   : > { %2502 = vadd.xlane.f32.xlu0 %v2501_v37  ;;  %v2215_v63 = vsel %vm2214_vm11, %v4899_v25, %v2211_v49  ;;  %v2219_v56 = vor.u32 1.1754944e-38, %v2218_v16  ;;  %v1569_v58 = vadd.f32 %v1568_v57, %v4310_v32  ;;  %v2223_v36 = vmul.f32 %v4958_v33, %v4919_v38 }
 0x21b   : > { %v5094_v24 = vadd.f32 1.0, %v1792_v48  ;;  %vm2217_vm13 = vcmp.eq.f32.partialorder %v2216_v62, 8.507059e+37  ;;  %v2424_v4 = vsel %vm2392_vm12, %v4778_v46, %v2206_v13  ;;  %v2231_v30 = vand.u32 2147483647, %v4919_v38 }
 0x21c   : > { %v3081_v55 = vpop.eup %3080  ;;  %v2220_v0 = vsel %vm2217_vm13, %v2219_v56, %v2215_v63  ;;  %vm2393_vm14 = vcmp.gt.f32.partialorder %v4731_v31, 20.0  ;;  %v5099_v22 = vadd.f32 %v1633_v29, %v1569_v58  ;;  %v2224_v25 = vsub.f32 1.0, %v2223_v36 }
 0x21d   : > { %v1762_v18 = vadd.f32 1.0, %v3081_v55  ;;  %v2221_v32 = vmul.f32 %v2220_v0, %v4852_v26  ;;  %vm2228_vm15 = vweird.f32 %v4958_v33  ;;  %v2233_v21 = vand.u32 2147483648, %v4919_v38 }
 0x21e   : > { %v2462_v20 = vmul.f32 %v4524_v15, %v2424_v4  ;;  %v1667_v46 = vmin.f32 %v5099_v22, 20.0  ;;  %v2225_v48 = vmul.f32 %v4958_v33, %v2224_v25  ;;  %v2238_v17 = vmul.f32 %v4929_v44, %v4880_v47 }
 0x21f   : > { %v5109_v59 = vpop.eup %3082  ;;  %v1794_v60 = vmul.f32 %v1762_v18, %v1762_v18  ;;  %v2425_v28 = vsel %vm2393_vm14, %v4731_v31, %v2221_v32  ;;  %vm2227_vm0 = vweird.f32 %v4919_v38  ;;  %vm5113_vm1 = vcmp.eq.f32.partialorder %v2231_v30, 8.507059e+37 }
 0x220   : > { %v2463_v1 = vmul.f32 %v4526_v40, %v2425_v28  ;;  %v1730_v42 = vmul.f32 1.442695, %v1667_v46  ;;  %v2226_v62 = vadd.f32 %v4958_v33, %v2225_v48  ;;  %v2239_v57 = vsub.f32 1.0, %v2238_v17  ;;  %vm2229_vm2 = vmor %vm2227_vm0, %vm2228_vm15 }
 0x221   : > { %v2234_v37 = vor.u32 1.1754944e-38, %v2233_v21  ;;  %vm2243_vm3 = vweird.f32 %v4929_v44  ;;  %v2246_v31 = vand.u32 2147483647, %v4880_v47  ;;  %v2248_v38 = vand.u32 2147483648, %v4880_v47 }
 0x222   : > { %v2504_v52 = vadd.f32 %v2463_v1, %v2462_v20  ;;  %3084 = vpow2.f32 %v1730_v42  ;;  %v2230_v49 = vsel %vm2229_vm2, %v4958_v33, %v2226_v62  ;;  %v2240_v16 = vmul.f32 %v4929_v44, %v2239_v57 }
 0x223   : > { %v5128_v13 = vmul.f32 %v5038_v10, %v4953_v3  ;;  %3086 = vrcp.f32 %v5051_v9  ;;  %v5131_v63 = vadd.f32 1.0, %v1794_v60  ;;  %v2235_v56 = vsel %vm5113_vm1, %v2234_v37, %v2230_v49 }
 0x224   : > { %v5136_v58 = vmul.f32 %v2749_v34, %v5004_v50  ;;  %2505 = vadd.xlane.f32.xlu1 %v2504_v52  ;;  %v2236_v36 = vmul.f32 %v2235_v56, %v4934_v12  ;;  %v2241_v33 = vadd.f32 %v4929_v44, %v2240_v16  ;;  %vm2242_vm4 = vweird.f32 %v4880_v47 }
 0x225   : > { %3088 = vrcp.f32 %v5094_v24  ;;  %vm2244_vm5 = vmor %vm2242_vm4, %vm2243_vm3  ;;  %v2249_v10 = vor.u32 1.1754944e-38, %v2248_v38  ;;  %vm2394_vm6 = vcmp.gt.f32.partialorder %v4833_v61, 20.0  ;;  %v2253_v29 = vmul.f32 %v5046_v35, %v4977_v6 }
 0x226   : > { %v5147_v34 = vadd.f32 -1.0, %v1794_v60  ;;  %v2245_v4 = vsel %vm2244_vm5, %v4929_v44, %v2241_v33  ;;  %vm2247_vm7 = vcmp.eq.f32.partialorder %v2246_v31, 8.507059e+37  ;;  %v2426_v12 = vsel %vm2394_vm6, %v4833_v61, %v2236_v36 }
 0x227   : > { %3090 = vrcp.f32 %v5131_v63  ;;  %v2250_v47 = vsel %vm2247_vm7, %v2249_v10, %v2245_v4  ;;  %v2254_v30 = vsub.f32 1.0, %v2253_v29  ;;  %v2268_v55 = vmul.f32 %v4994_v41, %v4927_v45  ;;  %v2476_v29 = vpop.xlane.xlu0 %2475 }
 0x228   : > { %v3085_v0 = vpop.eup %3084  ;;  %v2251_v25 = vmul.f32 %v2250_v47, %v4894_v43  ;;  %vm2395_vm8 = vcmp.gt.f32.partialorder %v4780_v53, 20.0  ;;  %v2261_v18 = vand.u32 2147483647, %v4977_v6  ;;  %v2263_v32 = vand.u32 2147483648, %v4977_v6 }
 0x229   : > { %v5158_v44 = vpop.eup %3086  ;;  %v2464_v61 = vmul.f32 %v4524_v15, %v2426_v12  ;;  %v2255_v21 = vmul.f32 %v5046_v35, %v2254_v30  ;;  %vm2258_vm9 = vweird.f32 %v5046_v35  ;;  %v2269_v20 = vsub.f32 1.0, %v2268_v55 }
 0x22a   : > { %v1763_v46 = vadd.f32 1.0, %v3085_v0  ;;  %v2427_v48 = vsel %vm2395_vm8, %v4780_v53, %v2251_v25  ;;  %vm2257_vm10 = vweird.f32 %v4977_v6  ;;  %v2276_v43 = vand.u32 2147483647, %v4927_v45 }
 0x22b   : > { %v5166_v17 = vpop.eup %3088  ;;  %v2465_v60 = vmul.f32 %v4526_v40, %v2427_v48  ;;  %v2256_v28 = vadd.f32 %v5046_v35, %v2255_v21  ;;  %v2270_v26 = vmul.f32 %v4994_v41, %v2269_v20  ;;  %v2278_v1 = vand.u32 2147483648, %v4927_v45  ;;  %vm2259_vm11 = vmor %vm2257_vm10, %vm2258_vm9 }
 0x22c   : > { %vm2262_vm12 = vcmp.eq.f32.partialorder %v2261_v18, 8.507059e+37  ;;  %v2264_v42 = vor.u32 1.1754944e-38, %v2263_v32  ;;  %vm2273_vm13 = vweird.f32 %v4994_v41  ;;  %v2283_v53 = vmul.f32 %v5109_v59, %v5036_v39 }
 0x22d   : > { %v5175_v6 = vpop.eup %3090  ;;  %v2507_v62 = vadd.f32 %v2465_v60, %v2464_v61  ;;  %v2260_v57 = vsel %vm2259_vm11, %v5046_v35, %v2256_v28  ;;  %vm2272_vm14 = vweird.f32 %v4927_v45  ;;  %vm2396_vm15 = vcmp.gt.f32.partialorder %v4889_v7, 20.0  ;;  %v5231_v60 = vld [vmem:[%s5369_s6] ss:$0 sm:$0xff] }
 0x22e   : > { %v5180_v37 = vmul.f32 %v1763_v46, %v1763_v46  ;;  %v2265_v31 = vsel %vm2262_vm12, %v2264_v42, %v2260_v57  ;;  %v2271_v38 = vadd.f32 %v4994_v41, %v2270_v26  ;;  %v2284_v52 = vsub.f32 1.0, %v2283_v53  ;;  %vm2274_vm0 = vmor %vm2272_vm14, %vm2273_vm13  ;;  %v2482_v26 = vpop.xlane.xlu1 %2481 }
 0x22f   : > { %2508 = vadd.xlane.f32.xlu2 %v2507_v62  ;;  %v2266_v49 = vmul.f32 %v2265_v31, %v4981_v27  ;;  %vm2277_vm1 = vcmp.eq.f32.partialorder %v2276_v43, 8.507059e+37  ;;  %v2279_v16 = vor.u32 1.1754944e-38, %v2278_v1  ;;  %vm2288_vm2 = vweird.f32 %v5109_v59  ;;  %v2479_v62 = vpop.xlane.xlu0 %2478 }
 0x230   : > { %v2275_v35 = vsel %vm2274_vm0, %v4994_v41, %v2271_v38  ;;  %v2285_v45 = vmul.f32 %v5109_v59, %v2284_v52  ;;  %v2291_v56 = vand.u32 2147483647, %v5036_v39  ;;  %v2293_v36 = vand.u32 2147483648, %v5036_v39 }
 0x231   : > { %v2280_v33 = vsel %vm2277_vm1, %v2279_v16, %v2275_v35  ;;  %vm2397_vm3 = vcmp.gt.f32.partialorder %v4841_v51, 20.0  ;;  %v2428_v27 = vsel %vm2396_vm15, %v4889_v7, %v2266_v49  ;;  %v2298_v10 = vmul.f32 %v5063_v5, %v4988_v11 }
 0x232   : > { %v5196_v4 = vadd.f32 1.0, %v5180_v37  ;;  %v2281_v41 = vmul.f32 %v2280_v33, %v4942_v8  ;;  %v2286_v12 = vadd.f32 %v5109_v59, %v2285_v45  ;;  %vm2287_vm4 = vweird.f32 %v5036_v39 }
 0x233   : > { %v2466_v47 = vmul.f32 %v4524_v15, %v2428_v27  ;;  %vm2289_vm5 = vmor %vm2287_vm4, %vm2288_vm2  ;;  %v2294_v7 = vor.u32 1.1754944e-38, %v2293_v36  ;;  %v2299_v30 = vsub.f32 1.0, %v2298_v10  ;;  %v2306_v55 = vand.u32 2147483647, %v4988_v11 }
 0x234   : > { %v2429_v0 = vsel %vm2397_vm3, %v4841_v51, %v2281_v41  ;;  %v2290_v25 = vsel %vm2289_vm5, %v5109_v59, %v2286_v12  ;;  %vm2292_vm6 = vcmp.eq.f32.partialorder %v2291_v56, 8.507059e+37  ;;  %v2308_v8 = vand.u32 2147483648, %v4988_v11 }
 0x235   : > { %v2467_v18 = vmul.f32 %v4526_v40, %v2429_v0  ;;  %v2295_v39 = vsel %vm2292_vm6, %v2294_v7, %v2290_v25  ;;  %v2300_v32 = vmul.f32 %v5063_v5, %v2299_v30  ;;  %vm2303_vm7 = vweird.f32 %v5063_v5 }
 0x236   : > { %3092 = vrcp.f32 %v5196_v4  ;;  %v2296_v61 = vmul.f32 %v2295_v39, %v5049_v19  ;;  %vm2302_vm8 = vweird.f32 %v4988_v11  ;;  %v2313_v51 = vmul.f32 %v5166_v17, %v5094_v24 }
 0x237   : > { %v2510_v59 = vadd.f32 %v2467_v18, %v2466_v47  ;;  %v2301_v21 = vadd.f32 %v5063_v5, %v2300_v32  ;;  %vm2307_vm9 = vcmp.eq.f32.partialorder %v2306_v55, 8.507059e+37  ;;  %vm2398_vm10 = vcmp.gt.f32.partialorder %v4951_v2, 20.0  ;;  %vm2304_vm11 = vmor %vm2302_vm8, %vm2303_vm7 }
 0x238   : > { %v2309_v20 = vor.u32 1.1754944e-38, %v2308_v8  ;;  %v2430_v46 = vsel %vm2398_vm10, %v4951_v2, %v2296_v61  ;;  %v2314_v48 = vsub.f32 1.0, %v2313_v51  ;;  %v2323_v19 = vand.u32 2147483648, %v5094_v24 }
 0x239   : > { %2511 = vadd.xlane.f32.xlu0 %v2510_v59  ;;  %v2305_v11 = vsel %vm2304_vm11, %v5063_v5, %v2301_v21  ;;  %vm2399_vm12 = vcmp.gt.f32.partialorder %v4897_v54, 20.0  ;;  %vm2317_vm13 = vweird.f32 %v5094_v24  ;;  %v2328_v43 = vmul.f32 %v5158_v44, %v5051_v9 }
 0x23a   : > { %v2310_v2 = vsel %vm2307_vm9, %v2309_v20, %v2305_v11  ;;  %v2315_v28 = vmul.f32 %v5166_v17, %v2314_v48  ;;  %vm2318_vm14 = vweird.f32 %v5166_v17  ;;  %v2321_v5 = vand.u32 2147483647, %v5094_v24 }
 0x23b   : > { %v2311_v1 = vmul.f32 %v2310_v2, %v5021_v14  ;;  %v2468_v42 = vmul.f32 %v4524_v15, %v2430_v46  ;;  %v2329_v53 = vsub.f32 1.0, %v2328_v43  ;;  %vm2332_vm15 = vweird.f32 %v5051_v9  ;;  %vm2319_vm0 = vmor %vm2317_vm13, %vm2318_vm14 }
 0x23c   : > { %v5239_v57 = vpop.eup %3092  ;;  %v2316_v31 = vadd.f32 %v5166_v17, %v2315_v28  ;;  %v2324_v38 = vor.u32 1.1754944e-38, %v2323_v19  ;;  %v2336_v52 = vand.u32 2147483647, %v5051_v9  ;;  %v2338_v49 = vand.u32 2147483648, %v5051_v9 }
 0x23d   : > { %v2431_v16 = vsel %vm2399_vm12, %v4897_v54, %v2311_v1  ;;  %v2330_v14 = vmul.f32 %v5158_v44, %v2329_v53  ;;  %vm2333_vm1 = vweird.f32 %v5158_v44  ;;  %v2526_v35 = vadd.f32 %v5231_v60, %v2476_v29  ;;  %v2485_v25 = vpop.xlane.xlu1 %2484 }
 0x23e   : > { %v2469_v45 = vmul.f32 %v4526_v40, %v2431_v16  ;;  %v2320_v56 = vsel %vm2319_vm0, %v5166_v17, %v2316_v31  ;;  %vm2322_vm2 = vcmp.eq.f32.partialorder %v2321_v5, 8.507059e+37  ;;  %v2527_v36 = vadd.f32 %v5231_v60, %v2479_v62  ;;  %vm2334_vm4 = vmor %vm2332_vm15, %vm2333_vm1 }
 0x23f   : > { %v2325_v33 = vsel %vm2322_vm2, %v2324_v38, %v2320_v56  ;;  %v2331_v27 = vadd.f32 %v5158_v44, %v2330_v14  ;;  %vm2400_vm3 = vcmp.gt.f32.partialorder %v5004_v50, 20.0  ;;  %2542 = vst [vmem:[%s5257_s29] sm:$0xff] %v2526_v35  ;;  %v2343_v54 = vmul.f32 %v5175_v6, %v5131_v63 }
 0x240   : > { %v2513_v24 = vadd.f32 %v2469_v45, %v2468_v42  ;;  %v2326_v10 = vmul.f32 %v2325_v33, %v5136_v58  ;;  %vm2337_vm5 = vcmp.eq.f32.partialorder %v2336_v52, 8.507059e+37  ;;  %v2339_v17 = vor.u32 1.1754944e-38, %v2338_v49  ;;  %2543 = vst [vmem:[%s5257_s29 + $0x8] sm:$0xff] %v2527_v36 }
 0x241   : > { %v2335_v29 = vsel %vm2334_vm4, %v5158_v44, %v2331_v27  ;;  %v2344_v41 = vsub.f32 1.0, %v2343_v54  ;;  %v2353_v12 = vand.u32 2147483648, %v5131_v63  ;;  %v2358_v47 = vmul.f32 %v5239_v57, %v5196_v4 }
 0x242   : > { %v1858_v7 = vmul.f32 %v5147_v34, %v5060_v23  ;;  %v2752_v30 = vadd.f32 -1.0, %v5180_v37  ;;  %2514 = vadd.xlane.f32.xlu1 %v2513_v24  ;;  %v2340_v58 = vsel %vm2337_vm5, %v2339_v17, %v2335_v29  ;;  %v2432_v9 = vsel %vm2400_vm3, %v5004_v50, %v2326_v10 }
 0x243   : > { %v2341_v55 = vmul.f32 %v2340_v58, %v5128_v13  ;;  %v2345_v44 = vmul.f32 %v5175_v6, %v2344_v41  ;;  %vm2348_vm6 = vweird.f32 %v5175_v6  ;;  %v2351_v0 = vand.u32 2147483647, %v5131_v63 }
 0x244   : > { %vm2401_vm7 = vcmp.gt.f32.partialorder %v4953_v3, 20.0  ;;  %v2470_v34 = vmul.f32 %v4524_v15, %v2432_v9  ;;  %vm2347_vm8 = vweird.f32 %v5131_v63  ;;  %v2359_v37 = vsub.f32 1.0, %v2358_v47 }
 0x245   : > { %v2433_v8 = vsel %vm2401_vm7, %v4953_v3, %v2341_v55  ;;  %v2346_v50 = vadd.f32 %v5175_v6, %v2345_v44  ;;  %v2354_v18 = vor.u32 1.1754944e-38, %v2353_v12  ;;  %v2368_v13 = vand.u32 2147483648, %v5196_v4  ;;  %vm2349_vm9 = vmor %vm2347_vm8, %vm2348_vm6 }
 0x246   : > { %v2471_v39 = vmul.f32 %v4526_v40, %v2433_v8  ;;  %v2360_v32 = vmul.f32 %v5239_v57, %v2359_v37  ;;  %vm2363_vm10 = vweird.f32 %v5239_v57  ;;  %v2366_v61 = vand.u32 2147483647, %v5196_v4 }
 0x247   : > { %v2350_v63 = vsel %vm2349_vm9, %v5175_v6, %v2346_v50  ;;  %vm2352_vm11 = vcmp.eq.f32.partialorder %v2351_v0, 8.507059e+37  ;;  %v2528_v3 = vadd.f32 %v5231_v60, %v2482_v26  ;;  %v2529_v51 = vadd.f32 %v5231_v60, %v2485_v25 }
 0x248   : > { %v2516_v59 = vadd.f32 %v2471_v39, %v2470_v34  ;;  %v2355_v21 = vsel %vm2352_vm11, %v2354_v18, %v2350_v63  ;;  %v2361_v20 = vadd.f32 %v5239_v57, %v2360_v32  ;;  %vm2362_vm12 = vweird.f32 %v5196_v4 }
 0x249   : > { %v2356_v46 = vmul.f32 %v2355_v21, %v1858_v7  ;;  %vm2364_vm13 = vmor %vm2362_vm12, %vm2363_vm10  ;;  %v2369_v48 = vor.u32 1.1754944e-38, %v2368_v13  ;;  %2544 = vst [vmem:[%s5257_s29 + $0x10] sm:$0xff] %v2528_v3  ;;  %v1859_v19 = vmul.f32 %v2752_v30, %v5099_v22  ;;  %vm2367_vm14 = vcmp.eq.f32.partialorder %v2366_v61, 8.507059e+37 }
 0x24a   : > { %2517 = vadd.xlane.f32.xlu2 %v2516_v59  ;;  %v2365_v6 = vsel %vm2364_vm13, %v5239_v57, %v2361_v20  ;;  %2545 = vst [vmem:[%s5257_s29 + $0x18] sm:$0xff] %v2529_v51  ;;  %vm2402_vm15 = vcmp.gt.f32.partialorder %v5060_v23, 20.0  ;;  %vm2403_vm0 = vcmp.gt.f32.partialorder %v5099_v22, 20.0 }
 0x24b   : > { %v2370_v11 = vsel %vm2367_vm14, %v2369_v48, %v2365_v6  ;;  %v2488_v43 = vpop.xlane.xlu2 %2487  ;;  %v2434_v4 = vsel %vm2402_vm15, %v5060_v23, %v2356_v46 }
 0x24c   : > { %v2371_v2 = vmul.f32 %v2370_v11, %v1859_v19  ;;  %v2530_v28 = vadd.f32 %v5231_v60, %v2488_v43  ;;  %v2472_v26 = vmul.f32 %v4524_v15, %v2434_v4 }
 0x24e   : > { %v2435_v5 = vsel %vm2403_vm0, %v5099_v22, %v2371_v2  ;;  %2546 = vst [vmem:[%s5257_s29 + $0x20] sm:$0xff] %v2530_v28 }
 0x24f   : > { %v2473_v1 = vmul.f32 %v4526_v40, %v2435_v5 }
 0x251   : > { %v2519_v42 = vadd.f32 %v2473_v1, %v2472_v26 }
 0x253   : > { %2520 = vadd.xlane.f32.xlu0 %v2519_v42 }
 0x257   : > { %v2491_v53 = vpop.xlane.xlu2 %2490 }
 0x258   : > { %v2531_v62 = vadd.f32 %v5231_v60, %v2491_v53 }
 0x25a   : > { %2547 = vst [vmem:[%s5257_s29 + $0x28] sm:$0xff] %v2531_v62 }
 0x267   : > { %v2494_v23 = vpop.xlane.xlu0 %2493 }
 0x268   : > { %v2532_v57 = vadd.f32 %v5231_v60, %v2494_v23 }
 0x26a   : > { %2548 = vst [vmem:[%s5257_s29 + $0x30] sm:$0xff] %v2532_v57 }
 0x274   : > { %v2497_v22 = vpop.xlane.xlu1 %2496 }
 0x275   : > { %v2533_v31 = vadd.f32 %v5231_v60, %v2497_v22 }
 0x277   : > { %2549 = vst [vmem:[%s5257_s29 + $0x38] sm:$0xff] %v2533_v31 }
 0x281   : > { %v2500_v15 = vpop.xlane.xlu2 %2499 }
 0x282   : > { %v2534_v40 = vadd.f32 %v5231_v60, %v2500_v15 }
 0x284   : > { %2550 = vst [vmem:[%s5257_s29 + $0x40] sm:$0xff] %v2534_v40 }
 0x28d   : > { %v2503_v38 = vpop.xlane.xlu0 %2502 }
 0x28e   : > { %v2535_v52 = vadd.f32 %v5231_v60, %v2503_v38 }
 0x290   : > { %2551 = vst [vmem:[%s5257_s29 + $0x48] sm:$0xff] %v2535_v52 }
 0x297   : > { %v2506_v49 = vpop.xlane.xlu1 %2505 }
 0x298   : > { %v2536_v16 = vadd.f32 %v5231_v60, %v2506_v49 }
 0x29a   : > { %2552 = vst [vmem:[%s5257_s29 + $0x50] sm:$0xff] %v2536_v16 }
 0x2a2   : > { %v2509_v14 = vpop.xlane.xlu2 %2508 }
 0x2a3   : > { %v2537_v35 = vadd.f32 %v5231_v60, %v2509_v14 }
 0x2a5   : > { %2553 = vst [vmem:[%s5257_s29 + $0x58] sm:$0xff] %v2537_v35 }
 0x2ac   : > { %v2512_v45 = vpop.xlane.xlu0 %2511 }
 0x2ad   : > { %v2538_v56 = vadd.f32 %v5231_v60, %v2512_v45 }
 0x2af   : > { %2554 = vst [vmem:[%s5257_s29 + $0x60] sm:$0xff] %v2538_v56 }
 0x2b5   : > { %v2515_v36 = vpop.xlane.xlu1 %2514 }
 0x2b6   : > { %v2539_v33 = vadd.f32 %v5231_v60, %v2515_v36 }
 0x2b8   : > { %2555 = vst [vmem:[%s5257_s29 + $0x68] sm:$0xff] %v2539_v33 }
 0x2bd   : > { %v2518_v27 = vpop.xlane.xlu2 %2517 }
 0x2be   : > { %v2540_v54 = vadd.f32 %v5231_v60, %v2518_v27 }
 0x2c0   : > { %2556 = vst [vmem:[%s5257_s29 + $0x70] sm:$0xff] %v2540_v54 }
 0x2c6   : > { %v2521_v24 = vpop.xlane.xlu0 %2520 }
 0x2c7   : > { %v2541_v10 = vadd.f32 %v5231_v60, %v2521_v24 }
 0x2c9   : > { %2557 = vst [vmem:[%s5257_s29 + $0x78] sm:$0xff] %v2541_v10 }
 0x2ca   : > { %3151 = shalt.err (!%p3148_p8)
}
 0x2cb   : > { %s3195_s19 = smov 128   ;;  %s3196_s29 = smov 8  }
 0x2cc   : > { %2787 = dma.vmem_to_hbm [thread:$0]  (%p3275_p5), %s2572_s14, 2048, %s2574_s15, %s2559_s16, %s3195_s19, %s3195_s19, %s3196_s29  }
 0x2cd PF: > { %p2799_p9 = scmp.ge.s32.totalorder %s3190_s27, 2  ;;  %s2588_s9 = sand.u32 1, %s3178_s24  }
 0x2ce   : > { %s2589_s13 = scalar_lea.sflag [#allocation4], %s2588_s9 }
 0x2cf   : > { %p2794_p10 = pnand %p2799_p9, %p3279_p6 }
 0x2d1   : > { %p2795_p11 = pneg %p2794_p10 }
 0x2d3   : > { %3173 = dma.done.wait (%p2795_p11), %s2589_s13, 2048  }
 0x2d4   : > { %3175 = vsyncadd (%p2795_p11), %s2589_s13, 4294965248  ;;  %p18_p12 = scmp.ge.s32.totalorder %s3262_s30, 4   ;;  %s5479_s24 = smov %s3182_s25 }
 0x2d5   : > { %s5480_s25 = smov %s3186_s26  ;;  %s5481_s26 = smov %s3273_s10 }
 0x2d6   : > { %s5482_s27 = smov %s3262_s30  ;;  %20 = sbr.rel (!%p18_p12) target bundleno = 4 (0x4), region = 88 }
 0x2db   :  { %2595 = vsyncpa [#allocation3], 1 }
 0x2dc   :  { %2597 = vsyncpa [#allocation3 + $0x1], 1 }
 0x2dd   :  { %2598 = vsyncpa [#allocation4], 1 }
 0x2de   :  { %2600 = vsyncpa [#allocation4 + $0x1], 1 }

</bundles_post_ra>
